<compile_context>
chip_gen: v5e
topology: v5e:2x2
jax: 0.10.0
libtpu: 0.0.40
codegen_flags: <defaults>
</compile_context>

<pallas_src>
import functools

import jax
import jax.numpy as jnp
from jax import lax
from jax.experimental import pallas as pl
from jax.experimental.pallas import tpu as pltpu

LANE = 128
SUBLANE = 8
T_CHUNK_TARGET = 32      # per-chunk gx precompute depth (time steps)
RECUR_UNROLL = 8         # bounded unroll of the per-step recurrence


def _round_up(n, m):
    return ((n + m - 1) // m) * m


# ---------------------------------------------------------------------------
# Kernel
# ---------------------------------------------------------------------------
def _lstm_step(gx, h, c, whh_t):
    """One LSTM step with gates packed [i, f, o, g].

    gx:    (BB, 4Hp) f32  precomputed W_ih @ x_t + b_ih + b_hh
    h, c:  (BB, Hp)  f32  carries
    whh_t: (Hp, 4Hp) bf16 transposed recurrent weights
    """
    Hp = h.shape[-1]
    gates = gx + jnp.dot(h.astype(jnp.bfloat16), whh_t,
                         preferred_element_type=jnp.float32)
    sig = jax.nn.sigmoid(gates[:, :3 * Hp])      # i, f, o in one EUP dispatch
    g = jnp.tanh(gates[:, 3 * Hp:])
    i = sig[:, 0 * Hp:1 * Hp]
    f = sig[:, 1 * Hp:2 * Hp]
    o = sig[:, 2 * Hp:3 * Hp]
    c_new = f * c + i * g
    h_new = o * jnp.tanh(c_new)
    return h_new, c_new


def anya_ae_kernel(
    x_ref,                                # (T, BB, Dp)  bf16
    win_t_ref, b_in_ref,                  # (Dp, Hp) bf16, (1, Hp) f32
    wih_e_t_ref, whh_e_t_ref, b_e_ref,    # (Hp, 4Hp) bf16 x2, (1, 4Hp) f32
    wz_t_ref, b_z_ref,                    # (Hp, Zp) bf16, (1, Zp) f32
    wd_t_ref, b_d_ref,                    # (Zp, Hp) bf16, (1, Hp) f32
    wih_d_t_ref, whh_d_t_ref, b_dl_ref,   # (Hp, 4Hp) bf16 x2, (1, 4Hp) f32
    wout_t_ref, b_out_ref,                # (Hp, Dp) bf16, (1, Dp) f32
    out_ref,                              # (T, BB, Dp)  f32
    gx_ref,                               # scratch (TC, BB, 4Hp) f32
    hs_ref,                               # scratch (T,  BB, Hp)  bf16 (enc h_t)
    hd_ref,                               # scratch (TC, BB, Hp)  bf16 (dec h_t)
    *, t_chunk, unroll,
):
    T, BB, Dp = x_ref.shape
    Hp = whh_e_t_ref.shape[0]
    TC = t_chunk
    n_full, rem = T // TC, T % TC

    whh_e_t = whh_e_t_ref[...]
    whh_d_t = whh_d_t_ref[...]
    # TODO(synk): pin whh_* in MXU staging regs (pltpu.matmul_push_rhs) once the
    # per-step weight push shows up on the critical path (measure per chip gen).

    def recur(clen, whh_t, write_ref, base, h, c):
        """clen sequential LSTM steps over gx_ref[0:clen]; h_t -> write_ref."""
        def body(t, carry):
            hh, cc = carry
            hh, cc = _lstm_step(gx_ref[t], hh, cc, whh_t)
            write_ref[base + t] = hh.astype(jnp.bfloat16)
            return (hh, cc)
        return lax.fori_loop(0, clen, body, (h, c),
                             unroll=max(1, min(unroll, clen)))

    def enc_chunk(t0, clen, h, c):
        # ReLU(Linear) + LSTM input-gate GEMM for this time chunk (batched MXU).
        xf = x_ref[pl.ds(t0, clen)].reshape(clen * BB, Dp)           # bf16
        h1 = jnp.maximum(
            jnp.dot(xf, win_t_ref[...], preferred_element_type=jnp.float32)
            + b_in_ref[...], 0.0)
        gx = jnp.dot(h1.astype(jnp.bfloat16), wih_e_t_ref[...],
                     preferred_element_type=jnp.float32) + b_e_ref[...]
        gx_ref[pl.ds(0, clen)] = gx.reshape(clen, BB, 4 * Hp)
        return recur(clen, whh_e_t, hs_ref, t0, h, c)

    def dec_chunk(t0, clen, h, c):
        # bottleneck + decoder input-gate GEMMs for this chunk of encoder h_t.
        hsc = hs_ref[pl.ds(t0, clen)].reshape(clen * BB, Hp)         # bf16
        z = jnp.maximum(
            jnp.dot(hsc, wz_t_ref[...], preferred_element_type=jnp.float32)
            + b_z_ref[...], 0.0)
        xd = jnp.maximum(
            jnp.dot(z.astype(jnp.bfloat16), wd_t_ref[...],
                    preferred_element_type=jnp.float32) + b_d_ref[...], 0.0)
        gx = jnp.dot(xd.astype(jnp.bfloat16), wih_d_t_ref[...],
                     preferred_element_type=jnp.float32) + b_dl_ref[...]
        gx_ref[pl.ds(0, clen)] = gx.reshape(clen, BB, 4 * Hp)

        h, c = recur(clen, whh_d_t, hd_ref, 0, h, c)

        # output projection for this chunk (lane-dense last dim = Dp)
        hd = hd_ref[pl.ds(0, clen)].reshape(clen * BB, Hp)           # bf16
        out = jnp.dot(hd, wout_t_ref[...], preferred_element_type=jnp.float32) \
            + b_out_ref[...]
        out_ref[pl.ds(t0, clen)] = out.reshape(clen, BB, Dp)
        return h, c

    def run_chunks(chunk_fn, h, c):
        if n_full == 1:
            h, c = chunk_fn(0, TC, h, c)
        elif n_full > 1:
            def outer(ci, carry):
                t0 = pl.multiple_of(ci * TC, TC)
                return chunk_fn(t0, TC, *carry)
            h, c = lax.fori_loop(0, n_full, outer, (h, c))
        if rem:
            h, c = chunk_fn(n_full * TC, rem, h, c)
        return h, c

    h0 = jnp.zeros((BB, Hp), jnp.float32)
    c0 = jnp.zeros((BB, Hp), jnp.float32)

    # ---- encoder pass (chunked gx precompute + sequential recurrence) ----
    h_enc, c_enc = run_chunks(enc_chunk, h0, c0)

    # ---- decoder pass seeded with the encoder's final (h, c) ----
    run_chunks(dec_chunk, h_enc, c_enc)


# ---------------------------------------------------------------------------
# One-time parameter packing (hoisted out of the forward hot path)
# ---------------------------------------------------------------------------
def pack_params(p):
    """Transpose to (fan_in, fan_out), reorder LSTM gates [i,f,g,o]->[i,f,o,g],
    zero-pad every lane dim to a multiple of 128, cast matmul weights to bf16.
    Zero padding preserves the exact un-padded math (padded h/c lanes stay 0)."""
    H = p["whh_e"].shape[1]
    D = p["w_in"].shape[1]
    Z = p["w_z"].shape[0]
    Hp = _round_up(H, LANE)
    Dp = _round_up(D, LANE)
    Zp = _round_up(Z, LANE)
    # NOTE: for H far below 128 the per-gate padding makes the recurrence ~4x
    # wider than needed; packing all 4 gates into one 128-lane group with masked
    # selects would shrink it but is only worth doing for genuinely tiny H.

    def pad2(w, r, c):
        return jnp.pad(w, ((0, r - w.shape[0]), (0, c - w.shape[1])))

    def pad1(v, n):
        return jnp.pad(v, (0, n - v.shape[0]))

    def lin(w, b, out_p, in_p):
        # torch layout (out, in) -> padded, transposed (in_p, out_p)
        return (pad2(w, out_p, in_p).T.astype(jnp.bfloat16),
                pad1(b, out_p).reshape(1, -1).astype(jnp.float32))

    def lstm(w_ih, w_hh, b_ih, b_hh, in_p):
        def w_pack(w, inp):   # (4H, in) -> (inp, 4Hp), gates [i,f,o,g]
            gs = [w[0 * H:1 * H], w[1 * H:2 * H], w[3 * H:4 * H], w[2 * H:3 * H]]
            gs = [pad2(g, Hp, inp) for g in gs]
            return jnp.concatenate(gs, axis=0).T.astype(jnp.bfloat16)

        def b_pack(b):
            gs = [b[0 * H:1 * H], b[1 * H:2 * H], b[3 * H:4 * H], b[2 * H:3 * H]]
            return jnp.concatenate([pad1(g, Hp) for g in gs])

        wih_t = w_pack(w_ih, in_p)
        whh_t = w_pack(w_hh, Hp)
        bias = (b_pack(b_ih) + b_pack(b_hh)).reshape(1, -1).astype(jnp.float32)
        return wih_t, whh_t, bias

    win_t, b_in = lin(p["w_in"], p["b_in"], Hp, Dp)       # (Dp, Hp)
    wz_t, b_z = lin(p["w_z"], p["b_z"], Zp, Hp)           # (Hp, Zp)
    wd_t, b_d = lin(p["w_d"], p["b_d"], Hp, Zp)           # (Zp, Hp)
    wout_t, b_out = lin(p["w_out"], p["b_out"], Dp, Hp)   # (Hp, Dp)
    wih_e_t, whh_e_t, b_e = lstm(p["wih_e"], p["whh_e"],
                                 p["bih_e"], p["bhh_e"], Hp)
    wih_d_t, whh_d_t, b_dl = lstm(p["wih_d"], p["whh_d"],
                                  p["bih_d"], p["bhh_d"], Hp)

    return dict(
        win_t=win_t, b_in=b_in,
        wih_e_t=wih_e_t, whh_e_t=whh_e_t, b_e=b_e,
        wz_t=wz_t, b_z=b_z, wd_t=wd_t, b_d=b_d,
        wih_d_t=wih_d_t, whh_d_t=whh_d_t, b_dl=b_dl,
        wout_t=wout_t, b_out=b_out,
    )


# ---------------------------------------------------------------------------
# Generation-aware sizing helpers
# ---------------------------------------------------------------------------
def _tpu_vmem_and_multi_tc():
    """Best-effort (vmem_capacity_bytes, is_multi_tc_chip). Conservative on
    failure so the kernel still compiles everywhere."""
    kind = ""
    try:
        kind = jax.devices()[0].device_kind.lower()
    except Exception:
        pass
    multi_tc = ("v7" in kind) or ("7x" in kind)

    cap = None
    try:
        info = pltpu.get_tpu_info()
        cap = getattr(info, "vmem_capacity_bytes", None)
    except Exception:
        cap = None
    if not cap:
        if multi_tc:
            cap = 64 * 1024 * 1024                      # v7x per-TC VMEM
        elif ("v5" in kind) or ("v6" in kind):
            cap = 128 * 1024 * 1024                     # v5e / v6e
        else:
            cap = 64 * 1024 * 1024                      # unknown -> conservative
    return int(cap), multi_tc


def _choose_block_b(B, T, t_chunk, Dp, Hp, weight_bytes, vmem_limit, multi_tc):
    """Largest sublane-aligned batch tile whose working set fits the budget."""
    b_needed = _round_up(B, SUBLANE)
    per_row = (
        2 * T * Dp * 2            # x block (bf16, double-buffered by pipeline)
        + 2 * T * Dp * 4          # out block (f32, double-buffered)
        + T * Hp * 2              # hs scratch (bf16, full T)
        + t_chunk * 4 * Hp * 4    # gx chunk scratch (f32)
        + t_chunk * Hp * 2        # hd chunk scratch (bf16)
        + t_chunk * 12 * Hp * 4   # slack for in-kernel chunk temporaries
    )
    budget = int(0.6 * vmem_limit) - 2 * weight_bytes   # weights double-buffered
    cap = budget // per_row if per_row > 0 else b_needed
    cap = max(SUBLANE, (cap // SUBLANE) * SUBLANE)
    hard_cap = 128 if multi_tc else 256   # v7x: modest tiles; v5e/v6e: fill MXU
    return max(SUBLANE, min(b_needed, cap, hard_cap))


# ---------------------------------------------------------------------------
# Forward wrapper
# ---------------------------------------------------------------------------
@jax.jit
def anya_ae_forward(x, packed):
    """x: (B, T, in_dim), batch_first like the PyTorch module. Returns f32."""
    B, T, D = x.shape
    Hp = packed["whh_e_t"].shape[0]
    Dp = packed["win_t"].shape[0]

    t_chunk = min(T, T_CHUNK_TARGET)

    weights = (
        packed["win_t"], packed["b_in"],
        packed["wih_e_t"], packed["whh_e_t"], packed["b_e"],
        packed["wz_t"], packed["b_z"],
        packed["wd_t"], packed["b_d"],
        packed["wih_d_t"], packed["whh_d_t"], packed["b_dl"],
        packed["wout_t"], packed["b_out"],
    )
    weight_bytes = sum(int(w.size) * w.dtype.itemsize for w in weights)

    vmem_cap, multi_tc = _tpu_vmem_and_multi_tc()
    vmem_limit = min(int(vmem_cap * 0.85), 100 * 1024 * 1024)

    block_b = _choose_block_b(B, T, t_chunk, Dp, Hp,
                              weight_bytes, vmem_limit, multi_tc)
    B_pad = _round_up(B, block_b)
    n_blocks = B_pad // block_b
    # v7x has 2 TensorCores: make sure the "parallel" batch axis has >=2 blocks
    # when the batch is big enough, so the second core doesn't idle.
    if multi_tc and n_blocks == 1 and block_b >= 2 * SUBLANE:
        block_b = max(SUBLANE, (block_b // 2 // SUBLANE) * SUBLANE)
        B_pad = _round_up(B, block_b)
        n_blocks = B_pad // block_b

    # time-major, bf16, zero-padded (padded rows/lanes are sliced away after)
    x_tm = jnp.transpose(x, (1, 0, 2)).astype(jnp.bfloat16)         # (T, B, D)
    x_p = jnp.pad(x_tm, ((0, 0), (0, B_pad - B), (0, Dp - D)))

    def const_spec(a):
        # Constant index_map -> weights stay VMEM-resident across the grid.
        # TODO(synk): add pipeline_mode=pl.Buffered(1) here (halves weight VMEM
        # on v7x) once buffer_count=1 is confirmed supported by this Mosaic.
        return pl.BlockSpec(a.shape, lambda b, _nd=a.ndim: (0,) * _nd)

    in_specs = ([pl.BlockSpec((T, block_b, Dp), lambda b: (0, b, 0))]
                + [const_spec(w) for w in weights])

    kernel = functools.partial(anya_ae_kernel,
                               t_chunk=t_chunk, unroll=RECUR_UNROLL)

    out_tm = pl.pallas_call(
        kernel,
        out_shape=jax.ShapeDtypeStruct((T, B_pad, Dp), jnp.float32),
        grid=(n_blocks,),
        in_specs=in_specs,
        out_specs=pl.BlockSpec((T, block_b, Dp), lambda b: (0, b, 0)),
        scratch_shapes=[
            pltpu.VMEM((t_chunk, block_b, 4 * Hp), jnp.float32),   # gate inputs
            pltpu.VMEM((T, block_b, Hp), jnp.bfloat16),            # encoder h_t
            pltpu.VMEM((t_chunk, block_b, Hp), jnp.bfloat16),      # decoder h_t
        ],
        compiler_params=pltpu.CompilerParams(
            dimension_semantics=("parallel",),
            vmem_limit_bytes=int(vmem_limit),
        ),
    )(x_p, *weights)

    return jnp.transpose(out_tm, (1, 0, 2))[:B, :, :D]


# ---------------------------------------------------------------------------
# Pure-JAX reference (PyTorch semantics, f32) for validation
# ---------------------------------------------------------------------------
def _ref_lstm(x_seq, w_ih, w_hh, b_ih, b_hh, h0, c0):
    def step(carry, xt):
        h, c = carry
        gates = xt @ w_ih.T + b_ih + h @ w_hh.T + b_hh
        i, f, g, o = jnp.split(gates, 4, axis=-1)
        i, f, o = jax.nn.sigmoid(i), jax.nn.sigmoid(f), jax.nn.sigmoid(o)
        g = jnp.tanh(g)
        c = f * c + i * g
        h = o * jnp.tanh(c)
        return (h, c), h

    (hT, cT), ys = lax.scan(step, (h0, c0), jnp.transpose(x_seq, (1, 0, 2)))
    return jnp.transpose(ys, (1, 0, 2)), (hT, cT)


def ref_forward(x, p):
    B = x.shape[0]
    H = p["whh_e"].shape[1]
    h = jax.nn.relu(x @ p["w_in"].T + p["b_in"])
    h, (he, ce) = _ref_lstm(h, p["wih_e"], p["whh_e"], p["bih_e"], p["bhh_e"],
                            jnp.zeros((B, H), jnp.float32),
                            jnp.zeros((B, H), jnp.float32))
    z = jax.nn.relu(h @ p["w_z"].T + p["b_z"])
    d = jax.nn.relu(z @ p["w_d"].T + p["b_d"])
    d, _ = _ref_lstm(d, p["wih_d"], p["whh_d"], p["bih_d"], p["bhh_d"], he, ce)
    return d @ p["w_out"].T + p["b_out"]


# ---------------------------------------------------------------------------
# Deterministic parameter init (PyTorch-style uniform, synthetic)
# ---------------------------------------------------------------------------
def init_params(key, in_dim, hidden_dim, z_dim):
    def u(k, shape, fan_in):
        bound = 1.0 / jnp.sqrt(jnp.float32(fan_in))
        return jax.random.uniform(k, shape, jnp.float32, -bound, bound)

    ks = jax.random.split(key, 18)
    H, Z, D = hidden_dim, z_dim, in_dim
    return {
        "w_in": u(ks[0], (H, D), D),   "b_in": u(ks[1], (H,), D),
        "wih_e": u(ks[2], (4 * H, H), H), "whh_e": u(ks[3], (4 * H, H), H),
        "bih_e": u(ks[4], (4 * H,), H),   "bhh_e": u(ks[5], (4 * H,), H),
        "w_z": u(ks[6], (Z, H), H),    "b_z": u(ks[7], (Z,), H),
        "w_d": u(ks[8], (H, Z), Z),    "b_d": u(ks[9], (H,), Z),
        "wih_d": u(ks[10], (4 * H, H), H), "whh_d": u(ks[11], (4 * H, H), H),
        "bih_d": u(ks[12], (4 * H,), H),   "bhh_d": u(ks[13], (4 * H,), H),
        "w_out": u(ks[14], (D, H), H), "b_out": u(ks[15], (D,), H),
    }


if __name__ == "__main__":
    B, T, IN_DIM, HIDDEN, Z_DIM = 2, 8, 16, 32, 8

    key = jax.random.PRNGKey(0)
    k_x, k_p = jax.random.split(key)
    x = jax.random.normal(k_x, (B, T, IN_DIM), jnp.float32)
    params = init_params(k_p, IN_DIM, HIDDEN, Z_DIM)

    # one-time packing (transpose / gate-reorder / pad / bf16 cast)
    packed = pack_params(params)

    out = anya_ae_forward(x, packed)
    out = jax.block_until_ready(out)

    ref = jax.block_until_ready(ref_forward(x, params))
    assert out.shape == (B, T, IN_DIM)
    err = float(jnp.max(jnp.abs(out - ref)))
    # matmul operands are bf16 (f32 accumulation), so allow a slightly looser
    # tolerance than a pure-f32 comparison.
    assert err < 2e-2, f"max abs err {err}"

    print("KERNEL_OK")
</pallas_src>

<mosaic_0001>
module attributes {stable_mosaic.version = 11 : i64} {
  func.func @anya_ae_kernel(%arg0: i32, %arg1: memref<8x8x128xbf16, #tpu.memory_space<vmem>>, %arg2: memref<128x128xbf16, #tpu.memory_space<vmem>>, %arg3: memref<1x128xf32, #tpu.memory_space<vmem>>, %arg4: memref<128x512xbf16, #tpu.memory_space<vmem>>, %arg5: memref<128x512xbf16, #tpu.memory_space<vmem>>, %arg6: memref<1x512xf32, #tpu.memory_space<vmem>>, %arg7: memref<128x128xbf16, #tpu.memory_space<vmem>>, %arg8: memref<1x128xf32, #tpu.memory_space<vmem>>, %arg9: memref<128x128xbf16, #tpu.memory_space<vmem>>, %arg10: memref<1x128xf32, #tpu.memory_space<vmem>>, %arg11: memref<128x512xbf16, #tpu.memory_space<vmem>>, %arg12: memref<128x512xbf16, #tpu.memory_space<vmem>>, %arg13: memref<1x512xf32, #tpu.memory_space<vmem>>, %arg14: memref<128x128xbf16, #tpu.memory_space<vmem>>, %arg15: memref<1x128xf32, #tpu.memory_space<vmem>>, %arg16: memref<8x8x128xf32, #tpu.memory_space<vmem>>, %arg17: memref<8x8x512xf32, #tpu.memory_space<vmem>>, %arg18: memref<8x8x128xbf16, #tpu.memory_space<vmem>>, %arg19: memref<8x8x128xbf16, #tpu.memory_space<vmem>>) attributes {dimension_semantics = [#tpu.dimension_semantics<parallel>], iteration_bounds = array<i64: 1>, scalar_prefetch = 0 : i64, scratch_operands = 3 : i64, tpu.core_type = #tpu.core_type<tc>, window_params = [{transform_indices = @transform_0, window_bounds = array<i64: 8, 8, 128>}, {pipeline_mode = #tpu.pipeline_mode<synchronous>, transform_indices = @transform_1, window_bounds = array<i64: 128, 128>}, {pipeline_mode = #tpu.pipeline_mode<synchronous>, transform_indices = @transform_2, window_bounds = array<i64: 1, 128>}, {pipeline_mode = #tpu.pipeline_mode<synchronous>, transform_indices = @transform_3, window_bounds = array<i64: 128, 512>}, {pipeline_mode = #tpu.pipeline_mode<synchronous>, transform_indices = @transform_4, window_bounds = array<i64: 128, 512>}, {pipeline_mode = #tpu.pipeline_mode<synchronous>, transform_indices = @transform_5, window_bounds = array<i64: 1, 512>}, {pipeline_mode = #tpu.pipeline_mode<synchronous>, transform_indices = @transform_6, window_bounds = array<i64: 128, 128>}, {pipeline_mode = #tpu.pipeline_mode<synchronous>, transform_indices = @transform_7, window_bounds = array<i64: 1, 128>}, {pipeline_mode = #tpu.pipeline_mode<synchronous>, transform_indices = @transform_8, window_bounds = array<i64: 128, 128>}, {pipeline_mode = #tpu.pipeline_mode<synchronous>, transform_indices = @transform_9, window_bounds = array<i64: 1, 128>}, {pipeline_mode = #tpu.pipeline_mode<synchronous>, transform_indices = @transform_10, window_bounds = array<i64: 128, 512>}, {pipeline_mode = #tpu.pipeline_mode<synchronous>, transform_indices = @transform_11, window_bounds = array<i64: 128, 512>}, {pipeline_mode = #tpu.pipeline_mode<synchronous>, transform_indices = @transform_12, window_bounds = array<i64: 1, 512>}, {pipeline_mode = #tpu.pipeline_mode<synchronous>, transform_indices = @transform_13, window_bounds = array<i64: 128, 128>}, {pipeline_mode = #tpu.pipeline_mode<synchronous>, transform_indices = @transform_14, window_bounds = array<i64: 1, 128>}, {transform_indices = @transform_15, window_bounds = array<i64: 8, 8, 128>}]} {
    %c0 = arith.constant 0 : index
    %c0_0 = arith.constant 0 : index
    %0 = vector.load %arg5[%c0, %c0_0] : memref<128x512xbf16, #tpu.memory_space<vmem>>, vector<128x512xbf16>
    %c0_1 = arith.constant 0 : index
    %c0_2 = arith.constant 0 : index
    %1 = vector.load %arg12[%c0_1, %c0_2] : memref<128x512xbf16, #tpu.memory_space<vmem>>, vector<128x512xbf16>
    %cst = arith.constant 0.000000e+00 : f32
    %2 = vector.broadcast %cst : f32 to vector<8x128xf32>
    %cst_3 = arith.constant 0.000000e+00 : f32
    %3 = vector.broadcast %cst_3 : f32 to vector<8x128xf32>
    %c0_4 = arith.constant 0 : index
    %c0_5 = arith.constant 0 : index
    %c0_6 = arith.constant 0 : index
    %4 = vector.load %arg1[%c0_4, %c0_5, %c0_6] : memref<8x8x128xbf16, #tpu.memory_space<vmem>>, vector<8x8x128xbf16>
    %5 = vector.shape_cast %4 : vector<8x8x128xbf16> to vector<64x128xbf16>
    %c0_7 = arith.constant 0 : index
    %c0_8 = arith.constant 0 : index
    %6 = vector.load %arg2[%c0_7, %c0_8] : memref<128x128xbf16, #tpu.memory_space<vmem>>, vector<128x128xbf16>
    %cst_9 = arith.constant dense<0.000000e+00> : vector<64x128xf32>
    %7 = tpu.matmul %5, %6, %cst_9 {dimension_numbers = #tpu.dot_dimension_numbers<[1], [0], [0], [1], [0, 0, 1, 1], [], []>} : vector<64x128xbf16>, vector<128x128xbf16>, vector<64x128xf32> -> vector<64x128xf32>
    %c0_10 = arith.constant 0 : index
    %c0_11 = arith.constant 0 : index
    %8 = vector.load %arg3[%c0_10, %c0_11] : memref<1x128xf32, #tpu.memory_space<vmem>>, vector<1x128xf32>
    %9 = vector.broadcast %8 : vector<1x128xf32> to vector<64x128xf32>
    %10 = arith.addf %7, %9 : vector<64x128xf32>
    %cst_12 = arith.constant 0.000000e+00 : f32
    %11 = vector.broadcast %cst_12 : f32 to vector<64x128xf32>
    %12 = arith.maximumf %10, %11 : vector<64x128xf32>
    %13 = arith.truncf %12 : vector<64x128xf32> to vector<64x128xbf16>
    %c0_13 = arith.constant 0 : index
    %c0_14 = arith.constant 0 : index
    %14 = vector.load %arg4[%c0_13, %c0_14] : memref<128x512xbf16, #tpu.memory_space<vmem>>, vector<128x512xbf16>
    %cst_15 = arith.constant dense<0.000000e+00> : vector<64x512xf32>
    %15 = tpu.matmul %13, %14, %cst_15 {dimension_numbers = #tpu.dot_dimension_numbers<[1], [0], [0], [1], [0, 0, 1, 1], [], []>} : vector<64x128xbf16>, vector<128x512xbf16>, vector<64x512xf32> -> vector<64x512xf32>
    %c0_16 = arith.constant 0 : index
    %c0_17 = arith.constant 0 : index
    %16 = vector.load %arg6[%c0_16, %c0_17] : memref<1x512xf32, #tpu.memory_space<vmem>>, vector<1x512xf32>
    %17 = vector.broadcast %16 : vector<1x512xf32> to vector<64x512xf32>
    %18 = arith.addf %15, %17 : vector<64x512xf32>
    %19 = vector.shape_cast %18 : vector<64x512xf32> to vector<8x8x512xf32>
    %c0_18 = arith.constant 0 : index
    %c0_19 = arith.constant 0 : index
    %c0_20 = arith.constant 0 : index
    %20 = vector.load %arg17[%c0_18, %c0_19, %c0_20] : memref<8x8x512xf32, #tpu.memory_space<vmem>>, vector<8x8x512xf32>
    tpu.vector_store %arg17[%c0_18, %c0_19, %c0_20], %19 {strides = array<i32>} : memref<8x8x512xf32, #tpu.memory_space<vmem>>, vector<8x8x512xf32>,
    %c0_i32 = arith.constant 0 : i32
    %21 = arith.index_cast %c0_i32 : i32 to index
    %c0_21 = arith.constant 0 : index
    %c0_22 = arith.constant 0 : index
    %22 = vector.load %arg17[%21, %c0_21, %c0_22] : memref<8x8x512xf32, #tpu.memory_space<vmem>>, vector<1x8x512xf32>
    %23 = vector.shape_cast %22 : vector<1x8x512xf32> to vector<8x512xf32>
    %24 = arith.truncf %2 : vector<8x128xf32> to vector<8x128xbf16>
    %cst_23 = arith.constant dense<0.000000e+00> : vector<8x512xf32>
    %25 = tpu.matmul %24, %0, %cst_23 {dimension_numbers = #tpu.dot_dimension_numbers<[1], [0], [0], [1], [0, 0, 1, 1], [], []>} : vector<8x128xbf16>, vector<128x512xbf16>, vector<8x512xf32> -> vector<8x512xf32>
    %26 = arith.addf %23, %25 : vector<8x512xf32>
    %27 = vector.extract_strided_slice %26 {offsets = [0, 0], sizes = [8, 384], strides = [1, 1]} : vector<8x512xf32> to vector<8x384xf32>
    %28 = arith.negf %27 : vector<8x384xf32>
    %29 = math.exp %28 : vector<8x384xf32>
    %cst_24 = arith.constant 1.000000e+00 : f32
    %30 = vector.broadcast %cst_24 : f32 to vector<8x384xf32>
    %31 = arith.addf %30, %29 : vector<8x384xf32>
    %32 = arith.divf %30, %31 : vector<8x384xf32>
    %33 = vector.extract_strided_slice %26 {offsets = [0, 384], sizes = [8, 128], strides = [1, 1]} : vector<8x512xf32> to vector<8x128xf32>
    %34 = math.tanh %33 : vector<8x128xf32>
    %35 = vector.extract_strided_slice %32 {offsets = [0, 0], sizes = [8, 128], strides = [1, 1]} : vector<8x384xf32> to vector<8x128xf32>
    %36 = vector.extract_strided_slice %32 {offsets = [0, 128], sizes = [8, 128], strides = [1, 1]} : vector<8x384xf32> to vector<8x128xf32>
    %37 = vector.extract_strided_slice %32 {offsets = [0, 256], sizes = [8, 128], strides = [1, 1]} : vector<8x384xf32> to vector<8x128xf32>
    %38 = arith.mulf %36, %3 : vector<8x128xf32>
    %39 = arith.mulf %35, %34 : vector<8x128xf32>
    %40 = arith.addf %38, %39 : vector<8x128xf32>
    %41 = math.tanh %40 : vector<8x128xf32>
    %42 = arith.mulf %37, %41 : vector<8x128xf32>
    %43 = arith.truncf %42 : vector<8x128xf32> to vector<8x128xbf16>
    %c0_i32_25 = arith.constant 0 : i32
    %44 = arith.addi %c0_i32_25, %c0_i32 : i32
    %45 = arith.index_cast %44 : i32 to index
    %c0_26 = arith.constant 0 : index
    %c0_27 = arith.constant 0 : index
    %46 = vector.load %arg18[%45, %c0_26, %c0_27] : memref<8x8x128xbf16, #tpu.memory_space<vmem>>, vector<1x8x128xbf16>
    %47 = vector.shape_cast %46 : vector<1x8x128xbf16> to vector<8x128xbf16>
    %48 = vector.shape_cast %43 : vector<8x128xbf16> to vector<1x8x128xbf16>
    tpu.vector_store %arg18[%45, %c0_26, %c0_27], %48 {strides = array<i32>} : memref<8x8x128xbf16, #tpu.memory_space<vmem>>, vector<1x8x128xbf16>,
    %c1_i32 = arith.constant 1 : i32
    %49 = arith.index_cast %c1_i32 : i32 to index
    %c0_28 = arith.constant 0 : index
    %c0_29 = arith.constant 0 : index
    %50 = vector.load %arg17[%49, %c0_28, %c0_29] : memref<8x8x512xf32, #tpu.memory_space<vmem>>, vector<1x8x512xf32>
    %51 = vector.shape_cast %50 : vector<1x8x512xf32> to vector<8x512xf32>
    %52 = arith.truncf %42 : vector<8x128xf32> to vector<8x128xbf16>
    %cst_30 = arith.constant dense<0.000000e+00> : vector<8x512xf32>
    %53 = tpu.matmul %52, %0, %cst_30 {dimension_numbers = #tpu.dot_dimension_numbers<[1], [0], [0], [1], [0, 0, 1, 1], [], []>} : vector<8x128xbf16>, vector<128x512xbf16>, vector<8x512xf32> -> vector<8x512xf32>
    %54 = arith.addf %51, %53 : vector<8x512xf32>
    %55 = vector.extract_strided_slice %54 {offsets = [0, 0], sizes = [8, 384], strides = [1, 1]} : vector<8x512xf32> to vector<8x384xf32>
    %56 = arith.negf %55 : vector<8x384xf32>
    %57 = math.exp %56 : vector<8x384xf32>
    %cst_31 = arith.constant 1.000000e+00 : f32
    %58 = vector.broadcast %cst_31 : f32 to vector<8x384xf32>
    %59 = arith.addf %58, %57 : vector<8x384xf32>
    %60 = arith.divf %58, %59 : vector<8x384xf32>
    %61 = vector.extract_strided_slice %54 {offsets = [0, 384], sizes = [8, 128], strides = [1, 1]} : vector<8x512xf32> to vector<8x128xf32>
    %62 = math.tanh %61 : vector<8x128xf32>
    %63 = vector.extract_strided_slice %60 {offsets = [0, 0], sizes = [8, 128], strides = [1, 1]} : vector<8x384xf32> to vector<8x128xf32>
    %64 = vector.extract_strided_slice %60 {offsets = [0, 128], sizes = [8, 128], strides = [1, 1]} : vector<8x384xf32> to vector<8x128xf32>
    %65 = vector.extract_strided_slice %60 {offsets = [0, 256], sizes = [8, 128], strides = [1, 1]} : vector<8x384xf32> to vector<8x128xf32>
    %66 = arith.mulf %64, %40 : vector<8x128xf32>
    %67 = arith.mulf %63, %62 : vector<8x128xf32>
    %68 = arith.addf %66, %67 : vector<8x128xf32>
    %69 = math.tanh %68 : vector<8x128xf32>
    %70 = arith.mulf %65, %69 : vector<8x128xf32>
    %71 = arith.truncf %70 : vector<8x128xf32> to vector<8x128xbf16>
    %c0_i32_32 = arith.constant 0 : i32
    %72 = arith.addi %c0_i32_32, %c1_i32 : i32
    %73 = arith.index_cast %72 : i32 to index
    %c0_33 = arith.constant 0 : index
    %c0_34 = arith.constant 0 : index
    %74 = vector.load %arg18[%73, %c0_33, %c0_34] : memref<8x8x128xbf16, #tpu.memory_space<vmem>>, vector<1x8x128xbf16>
    %75 = vector.shape_cast %74 : vector<1x8x128xbf16> to vector<8x128xbf16>
    %76 = vector.shape_cast %71 : vector<8x128xbf16> to vector<1x8x128xbf16>
    tpu.vector_store %arg18[%73, %c0_33, %c0_34], %76 {strides = array<i32>} : memref<8x8x128xbf16, #tpu.memory_space<vmem>>, vector<1x8x128xbf16>,
    %c2_i32 = arith.constant 2 : i32
    %77 = arith.index_cast %c2_i32 : i32 to index
    %c0_35 = arith.constant 0 : index
    %c0_36 = arith.constant 0 : index
    %78 = vector.load %arg17[%77, %c0_35, %c0_36] : memref<8x8x512xf32, #tpu.memory_space<vmem>>, vector<1x8x512xf32>
    %79 = vector.shape_cast %78 : vector<1x8x512xf32> to vector<8x512xf32>
    %80 = arith.truncf %70 : vector<8x128xf32> to vector<8x128xbf16>
    %cst_37 = arith.constant dense<0.000000e+00> : vector<8x512xf32>
    %81 = tpu.matmul %80, %0, %cst_37 {dimension_numbers = #tpu.dot_dimension_numbers<[1], [0], [0], [1], [0, 0, 1, 1], [], []>} : vector<8x128xbf16>, vector<128x512xbf16>, vector<8x512xf32> -> vector<8x512xf32>
    %82 = arith.addf %79, %81 : vector<8x512xf32>
    %83 = vector.extract_strided_slice %82 {offsets = [0, 0], sizes = [8, 384], strides = [1, 1]} : vector<8x512xf32> to vector<8x384xf32>
    %84 = arith.negf %83 : vector<8x384xf32>
    %85 = math.exp %84 : vector<8x384xf32>
    %cst_38 = arith.constant 1.000000e+00 : f32
    %86 = vector.broadcast %cst_38 : f32 to vector<8x384xf32>
    %87 = arith.addf %86, %85 : vector<8x384xf32>
    %88 = arith.divf %86, %87 : vector<8x384xf32>
    %89 = vector.extract_strided_slice %82 {offsets = [0, 384], sizes = [8, 128], strides = [1, 1]} : vector<8x512xf32> to vector<8x128xf32>
    %90 = math.tanh %89 : vector<8x128xf32>
    %91 = vector.extract_strided_slice %88 {offsets = [0, 0], sizes = [8, 128], strides = [1, 1]} : vector<8x384xf32> to vector<8x128xf32>
    %92 = vector.extract_strided_slice %88 {offsets = [0, 128], sizes = [8, 128], strides = [1, 1]} : vector<8x384xf32> to vector<8x128xf32>
    %93 = vector.extract_strided_slice %88 {offsets = [0, 256], sizes = [8, 128], strides = [1, 1]} : vector<8x384xf32> to vector<8x128xf32>
    %94 = arith.mulf %92, %68 : vector<8x128xf32>
    %95 = arith.mulf %91, %90 : vector<8x128xf32>
    %96 = arith.addf %94, %95 : vector<8x128xf32>
    %97 = math.tanh %96 : vector<8x128xf32>
    %98 = arith.mulf %93, %97 : vector<8x128xf32>
    %99 = arith.truncf %98 : vector<8x128xf32> to vector<8x128xbf16>
    %c0_i32_39 = arith.constant 0 : i32
    %100 = arith.addi %c0_i32_39, %c2_i32 : i32
    %101 = arith.index_cast %100 : i32 to index
    %c0_40 = arith.constant 0 : index
    %c0_41 = arith.constant 0 : index
    %102 = vector.load %arg18[%101, %c0_40, %c0_41] : memref<8x8x128xbf16, #tpu.memory_space<vmem>>, vector<1x8x128xbf16>
    %103 = vector.shape_cast %102 : vector<1x8x128xbf16> to vector<8x128xbf16>
    %104 = vector.shape_cast %99 : vector<8x128xbf16> to vector<1x8x128xbf16>
    tpu.vector_store %arg18[%101, %c0_40, %c0_41], %104 {strides = array<i32>} : memref<8x8x128xbf16, #tpu.memory_space<vmem>>, vector<1x8x128xbf16>,
    %c3_i32 = arith.constant 3 : i32
    %105 = arith.index_cast %c3_i32 : i32 to index
    %c0_42 = arith.constant 0 : index
    %c0_43 = arith.constant 0 : index
    %106 = vector.load %arg17[%105, %c0_42, %c0_43] : memref<8x8x512xf32, #tpu.memory_space<vmem>>, vector<1x8x512xf32>
    %107 = vector.shape_cast %106 : vector<1x8x512xf32> to vector<8x512xf32>
    %108 = arith.truncf %98 : vector<8x128xf32> to vector<8x128xbf16>
    %cst_44 = arith.constant dense<0.000000e+00> : vector<8x512xf32>
    %109 = tpu.matmul %108, %0, %cst_44 {dimension_numbers = #tpu.dot_dimension_numbers<[1], [0], [0], [1], [0, 0, 1, 1], [], []>} : vector<8x128xbf16>, vector<128x512xbf16>, vector<8x512xf32> -> vector<8x512xf32>
    %110 = arith.addf %107, %109 : vector<8x512xf32>
    %111 = vector.extract_strided_slice %110 {offsets = [0, 0], sizes = [8, 384], strides = [1, 1]} : vector<8x512xf32> to vector<8x384xf32>
    %112 = arith.negf %111 : vector<8x384xf32>
    %113 = math.exp %112 : vector<8x384xf32>
    %cst_45 = arith.constant 1.000000e+00 : f32
    %114 = vector.broadcast %cst_45 : f32 to vector<8x384xf32>
    %115 = arith.addf %114, %113 : vector<8x384xf32>
    %116 = arith.divf %114, %115 : vector<8x384xf32>
    %117 = vector.extract_strided_slice %110 {offsets = [0, 384], sizes = [8, 128], strides = [1, 1]} : vector<8x512xf32> to vector<8x128xf32>
    %118 = math.tanh %117 : vector<8x128xf32>
    %119 = vector.extract_strided_slice %116 {offsets = [0, 0], sizes = [8, 128], strides = [1, 1]} : vector<8x384xf32> to vector<8x128xf32>
    %120 = vector.extract_strided_slice %116 {offsets = [0, 128], sizes = [8, 128], strides = [1, 1]} : vector<8x384xf32> to vector<8x128xf32>
    %121 = vector.extract_strided_slice %116 {offsets = [0, 256], sizes = [8, 128], strides = [1, 1]} : vector<8x384xf32> to vector<8x128xf32>
    %122 = arith.mulf %120, %96 : vector<8x128xf32>
    %123 = arith.mulf %119, %118 : vector<8x128xf32>
    %124 = arith.addf %122, %123 : vector<8x128xf32>
    %125 = math.tanh %124 : vector<8x128xf32>
    %126 = arith.mulf %121, %125 : vector<8x128xf32>
    %127 = arith.truncf %126 : vector<8x128xf32> to vector<8x128xbf16>
    %c0_i32_46 = arith.constant 0 : i32
    %128 = arith.addi %c0_i32_46, %c3_i32 : i32
    %129 = arith.index_cast %128 : i32 to index
    %c0_47 = arith.constant 0 : index
    %c0_48 = arith.constant 0 : index
    %130 = vector.load %arg18[%129, %c0_47, %c0_48] : memref<8x8x128xbf16, #tpu.memory_space<vmem>>, vector<1x8x128xbf16>
    %131 = vector.shape_cast %130 : vector<1x8x128xbf16> to vector<8x128xbf16>
    %132 = vector.shape_cast %127 : vector<8x128xbf16> to vector<1x8x128xbf16>
    tpu.vector_store %arg18[%129, %c0_47, %c0_48], %132 {strides = array<i32>} : memref<8x8x128xbf16, #tpu.memory_space<vmem>>, vector<1x8x128xbf16>,
    %c4_i32 = arith.constant 4 : i32
    %133 = arith.index_cast %c4_i32 : i32 to index
    %c0_49 = arith.constant 0 : index
    %c0_50 = arith.constant 0 : index
    %134 = vector.load %arg17[%133, %c0_49, %c0_50] : memref<8x8x512xf32, #tpu.memory_space<vmem>>, vector<1x8x512xf32>
    %135 = vector.shape_cast %134 : vector<1x8x512xf32> to vector<8x512xf32>
    %136 = arith.truncf %126 : vector<8x128xf32> to vector<8x128xbf16>
    %cst_51 = arith.constant dense<0.000000e+00> : vector<8x512xf32>
    %137 = tpu.matmul %136, %0, %cst_51 {dimension_numbers = #tpu.dot_dimension_numbers<[1], [0], [0], [1], [0, 0, 1, 1], [], []>} : vector<8x128xbf16>, vector<128x512xbf16>, vector<8x512xf32> -> vector<8x512xf32>
    %138 = arith.addf %135, %137 : vector<8x512xf32>
    %139 = vector.extract_strided_slice %138 {offsets = [0, 0], sizes = [8, 384], strides = [1, 1]} : vector<8x512xf32> to vector<8x384xf32>
    %140 = arith.negf %139 : vector<8x384xf32>
    %141 = math.exp %140 : vector<8x384xf32>
    %cst_52 = arith.constant 1.000000e+00 : f32
    %142 = vector.broadcast %cst_52 : f32 to vector<8x384xf32>
    %143 = arith.addf %142, %141 : vector<8x384xf32>
    %144 = arith.divf %142, %143 : vector<8x384xf32>
    %145 = vector.extract_strided_slice %138 {offsets = [0, 384], sizes = [8, 128], strides = [1, 1]} : vector<8x512xf32> to vector<8x128xf32>
    %146 = math.tanh %145 : vector<8x128xf32>
    %147 = vector.extract_strided_slice %144 {offsets = [0, 0], sizes = [8, 128], strides = [1, 1]} : vector<8x384xf32> to vector<8x128xf32>
    %148 = vector.extract_strided_slice %144 {offsets = [0, 128], sizes = [8, 128], strides = [1, 1]} : vector<8x384xf32> to vector<8x128xf32>
    %149 = vector.extract_strided_slice %144 {offsets = [0, 256], sizes = [8, 128], strides = [1, 1]} : vector<8x384xf32> to vector<8x128xf32>
    %150 = arith.mulf %148, %124 : vector<8x128xf32>
    %151 = arith.mulf %147, %146 : vector<8x128xf32>
    %152 = arith.addf %150, %151 : vector<8x128xf32>
    %153 = math.tanh %152 : vector<8x128xf32>
    %154 = arith.mulf %149, %153 : vector<8x128xf32>
    %155 = arith.truncf %154 : vector<8x128xf32> to vector<8x128xbf16>
    %c0_i32_53 = arith.constant 0 : i32
    %156 = arith.addi %c0_i32_53, %c4_i32 : i32
    %157 = arith.index_cast %156 : i32 to index
    %c0_54 = arith.constant 0 : index
    %c0_55 = arith.constant 0 : index
    %158 = vector.load %arg18[%157, %c0_54, %c0_55] : memref<8x8x128xbf16, #tpu.memory_space<vmem>>, vector<1x8x128xbf16>
    %159 = vector.shape_cast %158 : vector<1x8x128xbf16> to vector<8x128xbf16>
    %160 = vector.shape_cast %155 : vector<8x128xbf16> to vector<1x8x128xbf16>
    tpu.vector_store %arg18[%157, %c0_54, %c0_55], %160 {strides = array<i32>} : memref<8x8x128xbf16, #tpu.memory_space<vmem>>, vector<1x8x128xbf16>,
    %c5_i32 = arith.constant 5 : i32
    %161 = arith.index_cast %c5_i32 : i32 to index
    %c0_56 = arith.constant 0 : index
    %c0_57 = arith.constant 0 : index
    %162 = vector.load %arg17[%161, %c0_56, %c0_57] : memref<8x8x512xf32, #tpu.memory_space<vmem>>, vector<1x8x512xf32>
    %163 = vector.shape_cast %162 : vector<1x8x512xf32> to vector<8x512xf32>
    %164 = arith.truncf %154 : vector<8x128xf32> to vector<8x128xbf16>
    %cst_58 = arith.constant dense<0.000000e+00> : vector<8x512xf32>
    %165 = tpu.matmul %164, %0, %cst_58 {dimension_numbers = #tpu.dot_dimension_numbers<[1], [0], [0], [1], [0, 0, 1, 1], [], []>} : vector<8x128xbf16>, vector<128x512xbf16>, vector<8x512xf32> -> vector<8x512xf32>
    %166 = arith.addf %163, %165 : vector<8x512xf32>
    %167 = vector.extract_strided_slice %166 {offsets = [0, 0], sizes = [8, 384], strides = [1, 1]} : vector<8x512xf32> to vector<8x384xf32>
    %168 = arith.negf %167 : vector<8x384xf32>
    %169 = math.exp %168 : vector<8x384xf32>
    %cst_59 = arith.constant 1.000000e+00 : f32
    %170 = vector.broadcast %cst_59 : f32 to vector<8x384xf32>
    %171 = arith.addf %170, %169 : vector<8x384xf32>
    %172 = arith.divf %170, %171 : vector<8x384xf32>
    %173 = vector.extract_strided_slice %166 {offsets = [0, 384], sizes = [8, 128], strides = [1, 1]} : vector<8x512xf32> to vector<8x128xf32>
    %174 = math.tanh %173 : vector<8x128xf32>
    %175 = vector.extract_strided_slice %172 {offsets = [0, 0], sizes = [8, 128], strides = [1, 1]} : vector<8x384xf32> to vector<8x128xf32>
    %176 = vector.extract_strided_slice %172 {offsets = [0, 128], sizes = [8, 128], strides = [1, 1]} : vector<8x384xf32> to vector<8x128xf32>
    %177 = vector.extract_strided_slice %172 {offsets = [0, 256], sizes = [8, 128], strides = [1, 1]} : vector<8x384xf32> to vector<8x128xf32>
    %178 = arith.mulf %176, %152 : vector<8x128xf32>
    %179 = arith.mulf %175, %174 : vector<8x128xf32>
    %180 = arith.addf %178, %179 : vector<8x128xf32>
    %181 = math.tanh %180 : vector<8x128xf32>
    %182 = arith.mulf %177, %181 : vector<8x128xf32>
    %183 = arith.truncf %182 : vector<8x128xf32> to vector<8x128xbf16>
    %c0_i32_60 = arith.constant 0 : i32
    %184 = arith.addi %c0_i32_60, %c5_i32 : i32
    %185 = arith.index_cast %184 : i32 to index
    %c0_61 = arith.constant 0 : index
    %c0_62 = arith.constant 0 : index
    %186 = vector.load %arg18[%185, %c0_61, %c0_62] : memref<8x8x128xbf16, #tpu.memory_space<vmem>>, vector<1x8x128xbf16>
    %187 = vector.shape_cast %186 : vector<1x8x128xbf16> to vector<8x128xbf16>
    %188 = vector.shape_cast %183 : vector<8x128xbf16> to vector<1x8x128xbf16>
    tpu.vector_store %arg18[%185, %c0_61, %c0_62], %188 {strides = array<i32>} : memref<8x8x128xbf16, #tpu.memory_space<vmem>>, vector<1x8x128xbf16>,
    %c6_i32 = arith.constant 6 : i32
    %189 = arith.index_cast %c6_i32 : i32 to index
    %c0_63 = arith.constant 0 : index
    %c0_64 = arith.constant 0 : index
    %190 = vector.load %arg17[%189, %c0_63, %c0_64] : memref<8x8x512xf32, #tpu.memory_space<vmem>>, vector<1x8x512xf32>
    %191 = vector.shape_cast %190 : vector<1x8x512xf32> to vector<8x512xf32>
    %192 = arith.truncf %182 : vector<8x128xf32> to vector<8x128xbf16>
    %cst_65 = arith.constant dense<0.000000e+00> : vector<8x512xf32>
    %193 = tpu.matmul %192, %0, %cst_65 {dimension_numbers = #tpu.dot_dimension_numbers<[1], [0], [0], [1], [0, 0, 1, 1], [], []>} : vector<8x128xbf16>, vector<128x512xbf16>, vector<8x512xf32> -> vector<8x512xf32>
    %194 = arith.addf %191, %193 : vector<8x512xf32>
    %195 = vector.extract_strided_slice %194 {offsets = [0, 0], sizes = [8, 384], strides = [1, 1]} : vector<8x512xf32> to vector<8x384xf32>
    %196 = arith.negf %195 : vector<8x384xf32>
    %197 = math.exp %196 : vector<8x384xf32>
    %cst_66 = arith.constant 1.000000e+00 : f32
    %198 = vector.broadcast %cst_66 : f32 to vector<8x384xf32>
    %199 = arith.addf %198, %197 : vector<8x384xf32>
    %200 = arith.divf %198, %199 : vector<8x384xf32>
    %201 = vector.extract_strided_slice %194 {offsets = [0, 384], sizes = [8, 128], strides = [1, 1]} : vector<8x512xf32> to vector<8x128xf32>
    %202 = math.tanh %201 : vector<8x128xf32>
    %203 = vector.extract_strided_slice %200 {offsets = [0, 0], sizes = [8, 128], strides = [1, 1]} : vector<8x384xf32> to vector<8x128xf32>
    %204 = vector.extract_strided_slice %200 {offsets = [0, 128], sizes = [8, 128], strides = [1, 1]} : vector<8x384xf32> to vector<8x128xf32>
    %205 = vector.extract_strided_slice %200 {offsets = [0, 256], sizes = [8, 128], strides = [1, 1]} : vector<8x384xf32> to vector<8x128xf32>
    %206 = arith.mulf %204, %180 : vector<8x128xf32>
    %207 = arith.mulf %203, %202 : vector<8x128xf32>
    %208 = arith.addf %206, %207 : vector<8x128xf32>
    %209 = math.tanh %208 : vector<8x128xf32>
    %210 = arith.mulf %205, %209 : vector<8x128xf32>
    %211 = arith.truncf %210 : vector<8x128xf32> to vector<8x128xbf16>
    %c0_i32_67 = arith.constant 0 : i32
    %212 = arith.addi %c0_i32_67, %c6_i32 : i32
    %213 = arith.index_cast %212 : i32 to index
    %c0_68 = arith.constant 0 : index
    %c0_69 = arith.constant 0 : index
    %214 = vector.load %arg18[%213, %c0_68, %c0_69] : memref<8x8x128xbf16, #tpu.memory_space<vmem>>, vector<1x8x128xbf16>
    %215 = vector.shape_cast %214 : vector<1x8x128xbf16> to vector<8x128xbf16>
    %216 = vector.shape_cast %211 : vector<8x128xbf16> to vector<1x8x128xbf16>
    tpu.vector_store %arg18[%213, %c0_68, %c0_69], %216 {strides = array<i32>} : memref<8x8x128xbf16, #tpu.memory_space<vmem>>, vector<1x8x128xbf16>,
    %c7_i32 = arith.constant 7 : i32
    %217 = arith.index_cast %c7_i32 : i32 to index
    %c0_70 = arith.constant 0 : index
    %c0_71 = arith.constant 0 : index
    %218 = vector.load %arg17[%217, %c0_70, %c0_71] : memref<8x8x512xf32, #tpu.memory_space<vmem>>, vector<1x8x512xf32>
    %219 = vector.shape_cast %218 : vector<1x8x512xf32> to vector<8x512xf32>
    %220 = arith.truncf %210 : vector<8x128xf32> to vector<8x128xbf16>
    %cst_72 = arith.constant dense<0.000000e+00> : vector<8x512xf32>
    %221 = tpu.matmul %220, %0, %cst_72 {dimension_numbers = #tpu.dot_dimension_numbers<[1], [0], [0], [1], [0, 0, 1, 1], [], []>} : vector<8x128xbf16>, vector<128x512xbf16>, vector<8x512xf32> -> vector<8x512xf32>
    %222 = arith.addf %219, %221 : vector<8x512xf32>
    %223 = vector.extract_strided_slice %222 {offsets = [0, 0], sizes = [8, 384], strides = [1, 1]} : vector<8x512xf32> to vector<8x384xf32>
    %224 = arith.negf %223 : vector<8x384xf32>
    %225 = math.exp %224 : vector<8x384xf32>
    %cst_73 = arith.constant 1.000000e+00 : f32
    %226 = vector.broadcast %cst_73 : f32 to vector<8x384xf32>
    %227 = arith.addf %226, %225 : vector<8x384xf32>
    %228 = arith.divf %226, %227 : vector<8x384xf32>
    %229 = vector.extract_strided_slice %222 {offsets = [0, 384], sizes = [8, 128], strides = [1, 1]} : vector<8x512xf32> to vector<8x128xf32>
    %230 = math.tanh %229 : vector<8x128xf32>
    %231 = vector.extract_strided_slice %228 {offsets = [0, 0], sizes = [8, 128], strides = [1, 1]} : vector<8x384xf32> to vector<8x128xf32>
    %232 = vector.extract_strided_slice %228 {offsets = [0, 128], sizes = [8, 128], strides = [1, 1]} : vector<8x384xf32> to vector<8x128xf32>
    %233 = vector.extract_strided_slice %228 {offsets = [0, 256], sizes = [8, 128], strides = [1, 1]} : vector<8x384xf32> to vector<8x128xf32>
    %234 = arith.mulf %232, %208 : vector<8x128xf32>
    %235 = arith.mulf %231, %230 : vector<8x128xf32>
    %236 = arith.addf %234, %235 : vector<8x128xf32>
    %237 = math.tanh %236 : vector<8x128xf32>
    %238 = arith.mulf %233, %237 : vector<8x128xf32>
    %239 = arith.truncf %238 : vector<8x128xf32> to vector<8x128xbf16>
    %c0_i32_74 = arith.constant 0 : i32
    %240 = arith.addi %c0_i32_74, %c7_i32 : i32
    %241 = arith.index_cast %240 : i32 to index
    %c0_75 = arith.constant 0 : index
    %c0_76 = arith.constant 0 : index
    %242 = vector.load %arg18[%241, %c0_75, %c0_76] : memref<8x8x128xbf16, #tpu.memory_space<vmem>>, vector<1x8x128xbf16>
    %243 = vector.shape_cast %242 : vector<1x8x128xbf16> to vector<8x128xbf16>
    %244 = vector.shape_cast %239 : vector<8x128xbf16> to vector<1x8x128xbf16>
    tpu.vector_store %arg18[%241, %c0_75, %c0_76], %244 {strides = array<i32>} : memref<8x8x128xbf16, #tpu.memory_space<vmem>>, vector<1x8x128xbf16>,
    %c8_i32 = arith.constant 8 : i32
    %c0_77 = arith.constant 0 : index
    %c0_78 = arith.constant 0 : index
    %c0_79 = arith.constant 0 : index
    %245 = vector.load %arg18[%c0_77, %c0_78, %c0_79] : memref<8x8x128xbf16, #tpu.memory_space<vmem>>, vector<8x8x128xbf16>
    %246 = vector.shape_cast %245 : vector<8x8x128xbf16> to vector<64x128xbf16>
    %c0_80 = arith.constant 0 : index
    %c0_81 = arith.constant 0 : index
    %247 = vector.load %arg7[%c0_80, %c0_81] : memref<128x128xbf16, #tpu.memory_space<vmem>>, vector<128x128xbf16>
    %cst_82 = arith.constant dense<0.000000e+00> : vector<64x128xf32>
    %248 = tpu.matmul %246, %247, %cst_82 {dimension_numbers = #tpu.dot_dimension_numbers<[1], [0], [0], [1], [0, 0, 1, 1], [], []>} : vector<64x128xbf16>, vector<128x128xbf16>, vector<64x128xf32> -> vector<64x128xf32>
    %c0_83 = arith.constant 0 : index
    %c0_84 = arith.constant 0 : index
    %249 = vector.load %arg8[%c0_83, %c0_84] : memref<1x128xf32, #tpu.memory_space<vmem>>, vector<1x128xf32>
    %250 = vector.broadcast %249 : vector<1x128xf32> to vector<64x128xf32>
    %251 = arith.addf %248, %250 : vector<64x128xf32>
    %cst_85 = arith.constant 0.000000e+00 : f32
    %252 = vector.broadcast %cst_85 : f32 to vector<64x128xf32>
    %253 = arith.maximumf %251, %252 : vector<64x128xf32>
    %254 = arith.truncf %253 : vector<64x128xf32> to vector<64x128xbf16>
    %c0_86 = arith.constant 0 : index
    %c0_87 = arith.constant 0 : index
    %255 = vector.load %arg9[%c0_86, %c0_87] : memref<128x128xbf16, #tpu.memory_space<vmem>>, vector<128x128xbf16>
    %cst_88 = arith.constant dense<0.000000e+00> : vector<64x128xf32>
    %256 = tpu.matmul %254, %255, %cst_88 {dimension_numbers = #tpu.dot_dimension_numbers<[1], [0], [0], [1], [0, 0, 1, 1], [], []>} : vector<64x128xbf16>, vector<128x128xbf16>, vector<64x128xf32> -> vector<64x128xf32>
    %c0_89 = arith.constant 0 : index
    %c0_90 = arith.constant 0 : index
    %257 = vector.load %arg10[%c0_89, %c0_90] : memref<1x128xf32, #tpu.memory_space<vmem>>, vector<1x128xf32>
    %258 = vector.broadcast %257 : vector<1x128xf32> to vector<64x128xf32>
    %259 = arith.addf %256, %258 : vector<64x128xf32>
    %cst_91 = arith.constant 0.000000e+00 : f32
    %260 = vector.broadcast %cst_91 : f32 to vector<64x128xf32>
    %261 = arith.maximumf %259, %260 : vector<64x128xf32>
    %262 = arith.truncf %261 : vector<64x128xf32> to vector<64x128xbf16>
    %c0_92 = arith.constant 0 : index
    %c0_93 = arith.constant 0 : index
    %263 = vector.load %arg11[%c0_92, %c0_93] : memref<128x512xbf16, #tpu.memory_space<vmem>>, vector<128x512xbf16>
    %cst_94 = arith.constant dense<0.000000e+00> : vector<64x512xf32>
    %264 = tpu.matmul %262, %263, %cst_94 {dimension_numbers = #tpu.dot_dimension_numbers<[1], [0], [0], [1], [0, 0, 1, 1], [], []>} : vector<64x128xbf16>, vector<128x512xbf16>, vector<64x512xf32> -> vector<64x512xf32>
    %c0_95 = arith.constant 0 : index
    %c0_96 = arith.constant 0 : index
    %265 = vector.load %arg13[%c0_95, %c0_96] : memref<1x512xf32, #tpu.memory_space<vmem>>, vector<1x512xf32>
    %266 = vector.broadcast %265 : vector<1x512xf32> to vector<64x512xf32>
    %267 = arith.addf %264, %266 : vector<64x512xf32>
    %268 = vector.shape_cast %267 : vector<64x512xf32> to vector<8x8x512xf32>
    %c0_97 = arith.constant 0 : index
    %c0_98 = arith.constant 0 : index
    %c0_99 = arith.constant 0 : index
    %269 = vector.load %arg17[%c0_97, %c0_98, %c0_99] : memref<8x8x512xf32, #tpu.memory_space<vmem>>, vector<8x8x512xf32>
    tpu.vector_store %arg17[%c0_97, %c0_98, %c0_99], %268 {strides = array<i32>} : memref<8x8x512xf32, #tpu.memory_space<vmem>>, vector<8x8x512xf32>,
    %c0_i32_100 = arith.constant 0 : i32
    %270 = arith.index_cast %c0_i32_100 : i32 to index
    %c0_101 = arith.constant 0 : index
    %c0_102 = arith.constant 0 : index
    %271 = vector.load %arg17[%270, %c0_101, %c0_102] : memref<8x8x512xf32, #tpu.memory_space<vmem>>, vector<1x8x512xf32>
    %272 = vector.shape_cast %271 : vector<1x8x512xf32> to vector<8x512xf32>
    %273 = arith.truncf %238 : vector<8x128xf32> to vector<8x128xbf16>
    %cst_103 = arith.constant dense<0.000000e+00> : vector<8x512xf32>
    %274 = tpu.matmul %273, %1, %cst_103 {dimension_numbers = #tpu.dot_dimension_numbers<[1], [0], [0], [1], [0, 0, 1, 1], [], []>} : vector<8x128xbf16>, vector<128x512xbf16>, vector<8x512xf32> -> vector<8x512xf32>
    %275 = arith.addf %272, %274 : vector<8x512xf32>
    %276 = vector.extract_strided_slice %275 {offsets = [0, 0], sizes = [8, 384], strides = [1, 1]} : vector<8x512xf32> to vector<8x384xf32>
    %277 = arith.negf %276 : vector<8x384xf32>
    %278 = math.exp %277 : vector<8x384xf32>
    %cst_104 = arith.constant 1.000000e+00 : f32
    %279 = vector.broadcast %cst_104 : f32 to vector<8x384xf32>
    %280 = arith.addf %279, %278 : vector<8x384xf32>
    %281 = arith.divf %279, %280 : vector<8x384xf32>
    %282 = vector.extract_strided_slice %275 {offsets = [0, 384], sizes = [8, 128], strides = [1, 1]} : vector<8x512xf32> to vector<8x128xf32>
    %283 = math.tanh %282 : vector<8x128xf32>
    %284 = vector.extract_strided_slice %281 {offsets = [0, 0], sizes = [8, 128], strides = [1, 1]} : vector<8x384xf32> to vector<8x128xf32>
    %285 = vector.extract_strided_slice %281 {offsets = [0, 128], sizes = [8, 128], strides = [1, 1]} : vector<8x384xf32> to vector<8x128xf32>
    %286 = vector.extract_strided_slice %281 {offsets = [0, 256], sizes = [8, 128], strides = [1, 1]} : vector<8x384xf32> to vector<8x128xf32>
    %287 = arith.mulf %285, %236 : vector<8x128xf32>
    %288 = arith.mulf %284, %283 : vector<8x128xf32>
    %289 = arith.addf %287, %288 : vector<8x128xf32>
    %290 = math.tanh %289 : vector<8x128xf32>
    %291 = arith.mulf %286, %290 : vector<8x128xf32>
    %292 = arith.truncf %291 : vector<8x128xf32> to vector<8x128xbf16>
    %c0_i32_105 = arith.constant 0 : i32
    %293 = arith.addi %c0_i32_105, %c0_i32_100 : i32
    %294 = arith.index_cast %293 : i32 to index
    %c0_106 = arith.constant 0 : index
    %c0_107 = arith.constant 0 : index
    %295 = vector.load %arg19[%294, %c0_106, %c0_107] : memref<8x8x128xbf16, #tpu.memory_space<vmem>>, vector<1x8x128xbf16>
    %296 = vector.shape_cast %295 : vector<1x8x128xbf16> to vector<8x128xbf16>
    %297 = vector.shape_cast %292 : vector<8x128xbf16> to vector<1x8x128xbf16>
    tpu.vector_store %arg19[%294, %c0_106, %c0_107], %297 {strides = array<i32>} : memref<8x8x128xbf16, #tpu.memory_space<vmem>>, vector<1x8x128xbf16>,
    %c1_i32_108 = arith.constant 1 : i32
    %298 = arith.index_cast %c1_i32_108 : i32 to index
    %c0_109 = arith.constant 0 : index
    %c0_110 = arith.constant 0 : index
    %299 = vector.load %arg17[%298, %c0_109, %c0_110] : memref<8x8x512xf32, #tpu.memory_space<vmem>>, vector<1x8x512xf32>
    %300 = vector.shape_cast %299 : vector<1x8x512xf32> to vector<8x512xf32>
    %301 = arith.truncf %291 : vector<8x128xf32> to vector<8x128xbf16>
    %cst_111 = arith.constant dense<0.000000e+00> : vector<8x512xf32>
    %302 = tpu.matmul %301, %1, %cst_111 {dimension_numbers = #tpu.dot_dimension_numbers<[1], [0], [0], [1], [0, 0, 1, 1], [], []>} : vector<8x128xbf16>, vector<128x512xbf16>, vector<8x512xf32> -> vector<8x512xf32>
    %303 = arith.addf %300, %302 : vector<8x512xf32>
    %304 = vector.extract_strided_slice %303 {offsets = [0, 0], sizes = [8, 384], strides = [1, 1]} : vector<8x512xf32> to vector<8x384xf32>
    %305 = arith.negf %304 : vector<8x384xf32>
    %306 = math.exp %305 : vector<8x384xf32>
    %cst_112 = arith.constant 1.000000e+00 : f32
    %307 = vector.broadcast %cst_112 : f32 to vector<8x384xf32>
    %308 = arith.addf %307, %306 : vector<8x384xf32>
    %309 = arith.divf %307, %308 : vector<8x384xf32>
    %310 = vector.extract_strided_slice %303 {offsets = [0, 384], sizes = [8, 128], strides = [1, 1]} : vector<8x512xf32> to vector<8x128xf32>
    %311 = math.tanh %310 : vector<8x128xf32>
    %312 = vector.extract_strided_slice %309 {offsets = [0, 0], sizes = [8, 128], strides = [1, 1]} : vector<8x384xf32> to vector<8x128xf32>
    %313 = vector.extract_strided_slice %309 {offsets = [0, 128], sizes = [8, 128], strides = [1, 1]} : vector<8x384xf32> to vector<8x128xf32>
    %314 = vector.extract_strided_slice %309 {offsets = [0, 256], sizes = [8, 128], strides = [1, 1]} : vector<8x384xf32> to vector<8x128xf32>
    %315 = arith.mulf %313, %289 : vector<8x128xf32>
    %316 = arith.mulf %312, %311 : vector<8x128xf32>
    %317 = arith.addf %315, %316 : vector<8x128xf32>
    %318 = math.tanh %317 : vector<8x128xf32>
    %319 = arith.mulf %314, %318 : vector<8x128xf32>
    %320 = arith.truncf %319 : vector<8x128xf32> to vector<8x128xbf16>
    %c0_i32_113 = arith.constant 0 : i32
    %321 = arith.addi %c0_i32_113, %c1_i32_108 : i32
    %322 = arith.index_cast %321 : i32 to index
    %c0_114 = arith.constant 0 : index
    %c0_115 = arith.constant 0 : index
    %323 = vector.load %arg19[%322, %c0_114, %c0_115] : memref<8x8x128xbf16, #tpu.memory_space<vmem>>, vector<1x8x128xbf16>
    %324 = vector.shape_cast %323 : vector<1x8x128xbf16> to vector<8x128xbf16>
    %325 = vector.shape_cast %320 : vector<8x128xbf16> to vector<1x8x128xbf16>
    tpu.vector_store %arg19[%322, %c0_114, %c0_115], %325 {strides = array<i32>} : memref<8x8x128xbf16, #tpu.memory_space<vmem>>, vector<1x8x128xbf16>,
    %c2_i32_116 = arith.constant 2 : i32
    %326 = arith.index_cast %c2_i32_116 : i32 to index
    %c0_117 = arith.constant 0 : index
    %c0_118 = arith.constant 0 : index
    %327 = vector.load %arg17[%326, %c0_117, %c0_118] : memref<8x8x512xf32, #tpu.memory_space<vmem>>, vector<1x8x512xf32>
    %328 = vector.shape_cast %327 : vector<1x8x512xf32> to vector<8x512xf32>
    %329 = arith.truncf %319 : vector<8x128xf32> to vector<8x128xbf16>
    %cst_119 = arith.constant dense<0.000000e+00> : vector<8x512xf32>
    %330 = tpu.matmul %329, %1, %cst_119 {dimension_numbers = #tpu.dot_dimension_numbers<[1], [0], [0], [1], [0, 0, 1, 1], [], []>} : vector<8x128xbf16>, vector<128x512xbf16>, vector<8x512xf32> -> vector<8x512xf32>
    %331 = arith.addf %328, %330 : vector<8x512xf32>
    %332 = vector.extract_strided_slice %331 {offsets = [0, 0], sizes = [8, 384], strides = [1, 1]} : vector<8x512xf32> to vector<8x384xf32>
    %333 = arith.negf %332 : vector<8x384xf32>
    %334 = math.exp %333 : vector<8x384xf32>
    %cst_120 = arith.constant 1.000000e+00 : f32
    %335 = vector.broadcast %cst_120 : f32 to vector<8x384xf32>
    %336 = arith.addf %335, %334 : vector<8x384xf32>
    %337 = arith.divf %335, %336 : vector<8x384xf32>
    %338 = vector.extract_strided_slice %331 {offsets = [0, 384], sizes = [8, 128], strides = [1, 1]} : vector<8x512xf32> to vector<8x128xf32>
    %339 = math.tanh %338 : vector<8x128xf32>
    %340 = vector.extract_strided_slice %337 {offsets = [0, 0], sizes = [8, 128], strides = [1, 1]} : vector<8x384xf32> to vector<8x128xf32>
    %341 = vector.extract_strided_slice %337 {offsets = [0, 128], sizes = [8, 128], strides = [1, 1]} : vector<8x384xf32> to vector<8x128xf32>
    %342 = vector.extract_strided_slice %337 {offsets = [0, 256], sizes = [8, 128], strides = [1, 1]} : vector<8x384xf32> to vector<8x128xf32>
    %343 = arith.mulf %341, %317 : vector<8x128xf32>
    %344 = arith.mulf %340, %339 : vector<8x128xf32>
    %345 = arith.addf %343, %344 : vector<8x128xf32>
    %346 = math.tanh %345 : vector<8x128xf32>
    %347 = arith.mulf %342, %346 : vector<8x128xf32>
    %348 = arith.truncf %347 : vector<8x128xf32> to vector<8x128xbf16>
    %c0_i32_121 = arith.constant 0 : i32
    %349 = arith.addi %c0_i32_121, %c2_i32_116 : i32
    %350 = arith.index_cast %349 : i32 to index
    %c0_122 = arith.constant 0 : index
    %c0_123 = arith.constant 0 : index
    %351 = vector.load %arg19[%350, %c0_122, %c0_123] : memref<8x8x128xbf16, #tpu.memory_space<vmem>>, vector<1x8x128xbf16>
    %352 = vector.shape_cast %351 : vector<1x8x128xbf16> to vector<8x128xbf16>
    %353 = vector.shape_cast %348 : vector<8x128xbf16> to vector<1x8x128xbf16>
    tpu.vector_store %arg19[%350, %c0_122, %c0_123], %353 {strides = array<i32>} : memref<8x8x128xbf16, #tpu.memory_space<vmem>>, vector<1x8x128xbf16>,
    %c3_i32_124 = arith.constant 3 : i32
    %354 = arith.index_cast %c3_i32_124 : i32 to index
    %c0_125 = arith.constant 0 : index
    %c0_126 = arith.constant 0 : index
    %355 = vector.load %arg17[%354, %c0_125, %c0_126] : memref<8x8x512xf32, #tpu.memory_space<vmem>>, vector<1x8x512xf32>
    %356 = vector.shape_cast %355 : vector<1x8x512xf32> to vector<8x512xf32>
    %357 = arith.truncf %347 : vector<8x128xf32> to vector<8x128xbf16>
    %cst_127 = arith.constant dense<0.000000e+00> : vector<8x512xf32>
    %358 = tpu.matmul %357, %1, %cst_127 {dimension_numbers = #tpu.dot_dimension_numbers<[1], [0], [0], [1], [0, 0, 1, 1], [], []>} : vector<8x128xbf16>, vector<128x512xbf16>, vector<8x512xf32> -> vector<8x512xf32>
    %359 = arith.addf %356, %358 : vector<8x512xf32>
    %360 = vector.extract_strided_slice %359 {offsets = [0, 0], sizes = [8, 384], strides = [1, 1]} : vector<8x512xf32> to vector<8x384xf32>
    %361 = arith.negf %360 : vector<8x384xf32>
    %362 = math.exp %361 : vector<8x384xf32>
    %cst_128 = arith.constant 1.000000e+00 : f32
    %363 = vector.broadcast %cst_128 : f32 to vector<8x384xf32>
    %364 = arith.addf %363, %362 : vector<8x384xf32>
    %365 = arith.divf %363, %364 : vector<8x384xf32>
    %366 = vector.extract_strided_slice %359 {offsets = [0, 384], sizes = [8, 128], strides = [1, 1]} : vector<8x512xf32> to vector<8x128xf32>
    %367 = math.tanh %366 : vector<8x128xf32>
    %368 = vector.extract_strided_slice %365 {offsets = [0, 0], sizes = [8, 128], strides = [1, 1]} : vector<8x384xf32> to vector<8x128xf32>
    %369 = vector.extract_strided_slice %365 {offsets = [0, 128], sizes = [8, 128], strides = [1, 1]} : vector<8x384xf32> to vector<8x128xf32>
    %370 = vector.extract_strided_slice %365 {offsets = [0, 256], sizes = [8, 128], strides = [1, 1]} : vector<8x384xf32> to vector<8x128xf32>
    %371 = arith.mulf %369, %345 : vector<8x128xf32>
    %372 = arith.mulf %368, %367 : vector<8x128xf32>
    %373 = arith.addf %371, %372 : vector<8x128xf32>
    %374 = math.tanh %373 : vector<8x128xf32>
    %375 = arith.mulf %370, %374 : vector<8x128xf32>
    %376 = arith.truncf %375 : vector<8x128xf32> to vector<8x128xbf16>
    %c0_i32_129 = arith.constant 0 : i32
    %377 = arith.addi %c0_i32_129, %c3_i32_124 : i32
    %378 = arith.index_cast %377 : i32 to index
    %c0_130 = arith.constant 0 : index
    %c0_131 = arith.constant 0 : index
    %379 = vector.load %arg19[%378, %c0_130, %c0_131] : memref<8x8x128xbf16, #tpu.memory_space<vmem>>, vector<1x8x128xbf16>
    %380 = vector.shape_cast %379 : vector<1x8x128xbf16> to vector<8x128xbf16>
    %381 = vector.shape_cast %376 : vector<8x128xbf16> to vector<1x8x128xbf16>
    tpu.vector_store %arg19[%378, %c0_130, %c0_131], %381 {strides = array<i32>} : memref<8x8x128xbf16, #tpu.memory_space<vmem>>, vector<1x8x128xbf16>,
    %c4_i32_132 = arith.constant 4 : i32
    %382 = arith.index_cast %c4_i32_132 : i32 to index
    %c0_133 = arith.constant 0 : index
    %c0_134 = arith.constant 0 : index
    %383 = vector.load %arg17[%382, %c0_133, %c0_134] : memref<8x8x512xf32, #tpu.memory_space<vmem>>, vector<1x8x512xf32>
    %384 = vector.shape_cast %383 : vector<1x8x512xf32> to vector<8x512xf32>
    %385 = arith.truncf %375 : vector<8x128xf32> to vector<8x128xbf16>
    %cst_135 = arith.constant dense<0.000000e+00> : vector<8x512xf32>
    %386 = tpu.matmul %385, %1, %cst_135 {dimension_numbers = #tpu.dot_dimension_numbers<[1], [0], [0], [1], [0, 0, 1, 1], [], []>} : vector<8x128xbf16>, vector<128x512xbf16>, vector<8x512xf32> -> vector<8x512xf32>
    %387 = arith.addf %384, %386 : vector<8x512xf32>
    %388 = vector.extract_strided_slice %387 {offsets = [0, 0], sizes = [8, 384], strides = [1, 1]} : vector<8x512xf32> to vector<8x384xf32>
    %389 = arith.negf %388 : vector<8x384xf32>
    %390 = math.exp %389 : vector<8x384xf32>
    %cst_136 = arith.constant 1.000000e+00 : f32
    %391 = vector.broadcast %cst_136 : f32 to vector<8x384xf32>
    %392 = arith.addf %391, %390 : vector<8x384xf32>
    %393 = arith.divf %391, %392 : vector<8x384xf32>
    %394 = vector.extract_strided_slice %387 {offsets = [0, 384], sizes = [8, 128], strides = [1, 1]} : vector<8x512xf32> to vector<8x128xf32>
    %395 = math.tanh %394 : vector<8x128xf32>
    %396 = vector.extract_strided_slice %393 {offsets = [0, 0], sizes = [8, 128], strides = [1, 1]} : vector<8x384xf32> to vector<8x128xf32>
    %397 = vector.extract_strided_slice %393 {offsets = [0, 128], sizes = [8, 128], strides = [1, 1]} : vector<8x384xf32> to vector<8x128xf32>
    %398 = vector.extract_strided_slice %393 {offsets = [0, 256], sizes = [8, 128], strides = [1, 1]} : vector<8x384xf32> to vector<8x128xf32>
    %399 = arith.mulf %397, %373 : vector<8x128xf32>
    %400 = arith.mulf %396, %395 : vector<8x128xf32>
    %401 = arith.addf %399, %400 : vector<8x128xf32>
    %402 = math.tanh %401 : vector<8x128xf32>
    %403 = arith.mulf %398, %402 : vector<8x128xf32>
    %404 = arith.truncf %403 : vector<8x128xf32> to vector<8x128xbf16>
    %c0_i32_137 = arith.constant 0 : i32
    %405 = arith.addi %c0_i32_137, %c4_i32_132 : i32
    %406 = arith.index_cast %405 : i32 to index
    %c0_138 = arith.constant 0 : index
    %c0_139 = arith.constant 0 : index
    %407 = vector.load %arg19[%406, %c0_138, %c0_139] : memref<8x8x128xbf16, #tpu.memory_space<vmem>>, vector<1x8x128xbf16>
    %408 = vector.shape_cast %407 : vector<1x8x128xbf16> to vector<8x128xbf16>
    %409 = vector.shape_cast %404 : vector<8x128xbf16> to vector<1x8x128xbf16>
    tpu.vector_store %arg19[%406, %c0_138, %c0_139], %409 {strides = array<i32>} : memref<8x8x128xbf16, #tpu.memory_space<vmem>>, vector<1x8x128xbf16>,
    %c5_i32_140 = arith.constant 5 : i32
    %410 = arith.index_cast %c5_i32_140 : i32 to index
    %c0_141 = arith.constant 0 : index
    %c0_142 = arith.constant 0 : index
    %411 = vector.load %arg17[%410, %c0_141, %c0_142] : memref<8x8x512xf32, #tpu.memory_space<vmem>>, vector<1x8x512xf32>
    %412 = vector.shape_cast %411 : vector<1x8x512xf32> to vector<8x512xf32>
    %413 = arith.truncf %403 : vector<8x128xf32> to vector<8x128xbf16>
    %cst_143 = arith.constant dense<0.000000e+00> : vector<8x512xf32>
    %414 = tpu.matmul %413, %1, %cst_143 {dimension_numbers = #tpu.dot_dimension_numbers<[1], [0], [0], [1], [0, 0, 1, 1], [], []>} : vector<8x128xbf16>, vector<128x512xbf16>, vector<8x512xf32> -> vector<8x512xf32>
    %415 = arith.addf %412, %414 : vector<8x512xf32>
    %416 = vector.extract_strided_slice %415 {offsets = [0, 0], sizes = [8, 384], strides = [1, 1]} : vector<8x512xf32> to vector<8x384xf32>
    %417 = arith.negf %416 : vector<8x384xf32>
    %418 = math.exp %417 : vector<8x384xf32>
    %cst_144 = arith.constant 1.000000e+00 : f32
    %419 = vector.broadcast %cst_144 : f32 to vector<8x384xf32>
    %420 = arith.addf %419, %418 : vector<8x384xf32>
    %421 = arith.divf %419, %420 : vector<8x384xf32>
    %422 = vector.extract_strided_slice %415 {offsets = [0, 384], sizes = [8, 128], strides = [1, 1]} : vector<8x512xf32> to vector<8x128xf32>
    %423 = math.tanh %422 : vector<8x128xf32>
    %424 = vector.extract_strided_slice %421 {offsets = [0, 0], sizes = [8, 128], strides = [1, 1]} : vector<8x384xf32> to vector<8x128xf32>
    %425 = vector.extract_strided_slice %421 {offsets = [0, 128], sizes = [8, 128], strides = [1, 1]} : vector<8x384xf32> to vector<8x128xf32>
    %426 = vector.extract_strided_slice %421 {offsets = [0, 256], sizes = [8, 128], strides = [1, 1]} : vector<8x384xf32> to vector<8x128xf32>
    %427 = arith.mulf %425, %401 : vector<8x128xf32>
    %428 = arith.mulf %424, %423 : vector<8x128xf32>
    %429 = arith.addf %427, %428 : vector<8x128xf32>
    %430 = math.tanh %429 : vector<8x128xf32>
    %431 = arith.mulf %426, %430 : vector<8x128xf32>
    %432 = arith.truncf %431 : vector<8x128xf32> to vector<8x128xbf16>
    %c0_i32_145 = arith.constant 0 : i32
    %433 = arith.addi %c0_i32_145, %c5_i32_140 : i32
    %434 = arith.index_cast %433 : i32 to index
    %c0_146 = arith.constant 0 : index
    %c0_147 = arith.constant 0 : index
    %435 = vector.load %arg19[%434, %c0_146, %c0_147] : memref<8x8x128xbf16, #tpu.memory_space<vmem>>, vector<1x8x128xbf16>
    %436 = vector.shape_cast %435 : vector<1x8x128xbf16> to vector<8x128xbf16>
    %437 = vector.shape_cast %432 : vector<8x128xbf16> to vector<1x8x128xbf16>
    tpu.vector_store %arg19[%434, %c0_146, %c0_147], %437 {strides = array<i32>} : memref<8x8x128xbf16, #tpu.memory_space<vmem>>, vector<1x8x128xbf16>,
    %c6_i32_148 = arith.constant 6 : i32
    %438 = arith.index_cast %c6_i32_148 : i32 to index
    %c0_149 = arith.constant 0 : index
    %c0_150 = arith.constant 0 : index
    %439 = vector.load %arg17[%438, %c0_149, %c0_150] : memref<8x8x512xf32, #tpu.memory_space<vmem>>, vector<1x8x512xf32>
    %440 = vector.shape_cast %439 : vector<1x8x512xf32> to vector<8x512xf32>
    %441 = arith.truncf %431 : vector<8x128xf32> to vector<8x128xbf16>
    %cst_151 = arith.constant dense<0.000000e+00> : vector<8x512xf32>
    %442 = tpu.matmul %441, %1, %cst_151 {dimension_numbers = #tpu.dot_dimension_numbers<[1], [0], [0], [1], [0, 0, 1, 1], [], []>} : vector<8x128xbf16>, vector<128x512xbf16>, vector<8x512xf32> -> vector<8x512xf32>
    %443 = arith.addf %440, %442 : vector<8x512xf32>
    %444 = vector.extract_strided_slice %443 {offsets = [0, 0], sizes = [8, 384], strides = [1, 1]} : vector<8x512xf32> to vector<8x384xf32>
    %445 = arith.negf %444 : vector<8x384xf32>
    %446 = math.exp %445 : vector<8x384xf32>
    %cst_152 = arith.constant 1.000000e+00 : f32
    %447 = vector.broadcast %cst_152 : f32 to vector<8x384xf32>
    %448 = arith.addf %447, %446 : vector<8x384xf32>
    %449 = arith.divf %447, %448 : vector<8x384xf32>
    %450 = vector.extract_strided_slice %443 {offsets = [0, 384], sizes = [8, 128], strides = [1, 1]} : vector<8x512xf32> to vector<8x128xf32>
    %451 = math.tanh %450 : vector<8x128xf32>
    %452 = vector.extract_strided_slice %449 {offsets = [0, 0], sizes = [8, 128], strides = [1, 1]} : vector<8x384xf32> to vector<8x128xf32>
    %453 = vector.extract_strided_slice %449 {offsets = [0, 128], sizes = [8, 128], strides = [1, 1]} : vector<8x384xf32> to vector<8x128xf32>
    %454 = vector.extract_strided_slice %449 {offsets = [0, 256], sizes = [8, 128], strides = [1, 1]} : vector<8x384xf32> to vector<8x128xf32>
    %455 = arith.mulf %453, %429 : vector<8x128xf32>
    %456 = arith.mulf %452, %451 : vector<8x128xf32>
    %457 = arith.addf %455, %456 : vector<8x128xf32>
    %458 = math.tanh %457 : vector<8x128xf32>
    %459 = arith.mulf %454, %458 : vector<8x128xf32>
    %460 = arith.truncf %459 : vector<8x128xf32> to vector<8x128xbf16>
    %c0_i32_153 = arith.constant 0 : i32
    %461 = arith.addi %c0_i32_153, %c6_i32_148 : i32
    %462 = arith.index_cast %461 : i32 to index
    %c0_154 = arith.constant 0 : index
    %c0_155 = arith.constant 0 : index
    %463 = vector.load %arg19[%462, %c0_154, %c0_155] : memref<8x8x128xbf16, #tpu.memory_space<vmem>>, vector<1x8x128xbf16>
    %464 = vector.shape_cast %463 : vector<1x8x128xbf16> to vector<8x128xbf16>
    %465 = vector.shape_cast %460 : vector<8x128xbf16> to vector<1x8x128xbf16>
    tpu.vector_store %arg19[%462, %c0_154, %c0_155], %465 {strides = array<i32>} : memref<8x8x128xbf16, #tpu.memory_space<vmem>>, vector<1x8x128xbf16>,
    %c7_i32_156 = arith.constant 7 : i32
    %466 = arith.index_cast %c7_i32_156 : i32 to index
    %c0_157 = arith.constant 0 : index
    %c0_158 = arith.constant 0 : index
    %467 = vector.load %arg17[%466, %c0_157, %c0_158] : memref<8x8x512xf32, #tpu.memory_space<vmem>>, vector<1x8x512xf32>
    %468 = vector.shape_cast %467 : vector<1x8x512xf32> to vector<8x512xf32>
    %469 = arith.truncf %459 : vector<8x128xf32> to vector<8x128xbf16>
    %cst_159 = arith.constant dense<0.000000e+00> : vector<8x512xf32>
    %470 = tpu.matmul %469, %1, %cst_159 {dimension_numbers = #tpu.dot_dimension_numbers<[1], [0], [0], [1], [0, 0, 1, 1], [], []>} : vector<8x128xbf16>, vector<128x512xbf16>, vector<8x512xf32> -> vector<8x512xf32>
    %471 = arith.addf %468, %470 : vector<8x512xf32>
    %472 = vector.extract_strided_slice %471 {offsets = [0, 0], sizes = [8, 384], strides = [1, 1]} : vector<8x512xf32> to vector<8x384xf32>
    %473 = arith.negf %472 : vector<8x384xf32>
    %474 = math.exp %473 : vector<8x384xf32>
    %cst_160 = arith.constant 1.000000e+00 : f32
    %475 = vector.broadcast %cst_160 : f32 to vector<8x384xf32>
    %476 = arith.addf %475, %474 : vector<8x384xf32>
    %477 = arith.divf %475, %476 : vector<8x384xf32>
    %478 = vector.extract_strided_slice %471 {offsets = [0, 384], sizes = [8, 128], strides = [1, 1]} : vector<8x512xf32> to vector<8x128xf32>
    %479 = math.tanh %478 : vector<8x128xf32>
    %480 = vector.extract_strided_slice %477 {offsets = [0, 0], sizes = [8, 128], strides = [1, 1]} : vector<8x384xf32> to vector<8x128xf32>
    %481 = vector.extract_strided_slice %477 {offsets = [0, 128], sizes = [8, 128], strides = [1, 1]} : vector<8x384xf32> to vector<8x128xf32>
    %482 = vector.extract_strided_slice %477 {offsets = [0, 256], sizes = [8, 128], strides = [1, 1]} : vector<8x384xf32> to vector<8x128xf32>
    %483 = arith.mulf %481, %457 : vector<8x128xf32>
    %484 = arith.mulf %480, %479 : vector<8x128xf32>
    %485 = arith.addf %483, %484 : vector<8x128xf32>
    %486 = math.tanh %485 : vector<8x128xf32>
    %487 = arith.mulf %482, %486 : vector<8x128xf32>
    %488 = arith.truncf %487 : vector<8x128xf32> to vector<8x128xbf16>
    %c0_i32_161 = arith.constant 0 : i32
    %489 = arith.addi %c0_i32_161, %c7_i32_156 : i32
    %490 = arith.index_cast %489 : i32 to index
    %c0_162 = arith.constant 0 : index
    %c0_163 = arith.constant 0 : index
    %491 = vector.load %arg19[%490, %c0_162, %c0_163] : memref<8x8x128xbf16, #tpu.memory_space<vmem>>, vector<1x8x128xbf16>
    %492 = vector.shape_cast %491 : vector<1x8x128xbf16> to vector<8x128xbf16>
    %493 = vector.shape_cast %488 : vector<8x128xbf16> to vector<1x8x128xbf16>
    tpu.vector_store %arg19[%490, %c0_162, %c0_163], %493 {strides = array<i32>} : memref<8x8x128xbf16, #tpu.memory_space<vmem>>, vector<1x8x128xbf16>,
    %c8_i32_164 = arith.constant 8 : i32
    %c0_165 = arith.constant 0 : index
    %c0_166 = arith.constant 0 : index
    %c0_167 = arith.constant 0 : index
    %494 = vector.load %arg19[%c0_165, %c0_166, %c0_167] : memref<8x8x128xbf16, #tpu.memory_space<vmem>>, vector<8x8x128xbf16>
    %495 = vector.shape_cast %494 : vector<8x8x128xbf16> to vector<64x128xbf16>
    %c0_168 = arith.constant 0 : index
    %c0_169 = arith.constant 0 : index
    %496 = vector.load %arg14[%c0_168, %c0_169] : memref<128x128xbf16, #tpu.memory_space<vmem>>, vector<128x128xbf16>
    %cst_170 = arith.constant dense<0.000000e+00> : vector<64x128xf32>
    %497 = tpu.matmul %495, %496, %cst_170 {dimension_numbers = #tpu.dot_dimension_numbers<[1], [0], [0], [1], [0, 0, 1, 1], [], []>} : vector<64x128xbf16>, vector<128x128xbf16>, vector<64x128xf32> -> vector<64x128xf32>
    %c0_171 = arith.constant 0 : index
    %c0_172 = arith.constant 0 : index
    %498 = vector.load %arg15[%c0_171, %c0_172] : memref<1x128xf32, #tpu.memory_space<vmem>>, vector<1x128xf32>
    %499 = vector.broadcast %498 : vector<1x128xf32> to vector<64x128xf32>
    %500 = arith.addf %497, %499 : vector<64x128xf32>
    %501 = vector.shape_cast %500 : vector<64x128xf32> to vector<8x8x128xf32>
    %c0_173 = arith.constant 0 : index
    %c0_174 = arith.constant 0 : index
    %c0_175 = arith.constant 0 : index
    %502 = vector.load %arg16[%c0_173, %c0_174, %c0_175] : memref<8x8x128xf32, #tpu.memory_space<vmem>>, vector<8x8x128xf32>
    tpu.vector_store %arg16[%c0_173, %c0_174, %c0_175], %501 {strides = array<i32>} : memref<8x8x128xf32, #tpu.memory_space<vmem>>, vector<8x8x128xf32>,
    return
  }
  func.func @transform_0(%arg0: i32) -> (i32, i32, i32) {
    %c0_i32 = arith.constant 0 : i32
    %c0_i32_0 = arith.constant 0 : i32
    %c0_i32_1 = arith.constant 0 : i32
    return %c0_i32, %arg0, %c0_i32_0 : i32, i32, i32
  }
  func.func @transform_1(%arg0: i32) -> (i32, i32) {
    %c0_i32 = arith.constant 0 : i32
    %c0_i32_0 = arith.constant 0 : i32
    %c0_i32_1 = arith.constant 0 : i32
    return %c0_i32, %c0_i32_0 : i32, i32
  }
  func.func @transform_2(%arg0: i32) -> (i32, i32) {
    %c0_i32 = arith.constant 0 : i32
    %c0_i32_0 = arith.constant 0 : i32
    %c0_i32_1 = arith.constant 0 : i32
    return %c0_i32, %c0_i32_0 : i32, i32
  }
  func.func @transform_3(%arg0: i32) -> (i32, i32) {
    %c0_i32 = arith.constant 0 : i32
    %c0_i32_0 = arith.constant 0 : i32
    %c0_i32_1 = arith.constant 0 : i32
    return %c0_i32, %c0_i32_0 : i32, i32
  }
  func.func @transform_4(%arg0: i32) -> (i32, i32) {
    %c0_i32 = arith.constant 0 : i32
    %c0_i32_0 = arith.constant 0 : i32
    %c0_i32_1 = arith.constant 0 : i32
    return %c0_i32, %c0_i32_0 : i32, i32
  }
  func.func @transform_5(%arg0: i32) -> (i32, i32) {
    %c0_i32 = arith.constant 0 : i32
    %c0_i32_0 = arith.constant 0 : i32
    %c0_i32_1 = arith.constant 0 : i32
    return %c0_i32, %c0_i32_0 : i32, i32
  }
  func.func @transform_6(%arg0: i32) -> (i32, i32) {
    %c0_i32 = arith.constant 0 : i32
    %c0_i32_0 = arith.constant 0 : i32
    %c0_i32_1 = arith.constant 0 : i32
    return %c0_i32, %c0_i32_0 : i32, i32
  }
  func.func @transform_7(%arg0: i32) -> (i32, i32) {
    %c0_i32 = arith.constant 0 : i32
    %c0_i32_0 = arith.constant 0 : i32
    %c0_i32_1 = arith.constant 0 : i32
    return %c0_i32, %c0_i32_0 : i32, i32
  }
  func.func @transform_8(%arg0: i32) -> (i32, i32) {
    %c0_i32 = arith.constant 0 : i32
    %c0_i32_0 = arith.constant 0 : i32
    %c0_i32_1 = arith.constant 0 : i32
    return %c0_i32, %c0_i32_0 : i32, i32
  }
  func.func @transform_9(%arg0: i32) -> (i32, i32) {
    %c0_i32 = arith.constant 0 : i32
    %c0_i32_0 = arith.constant 0 : i32
    %c0_i32_1 = arith.constant 0 : i32
    return %c0_i32, %c0_i32_0 : i32, i32
  }
  func.func @transform_10(%arg0: i32) -> (i32, i32) {
    %c0_i32 = arith.constant 0 : i32
    %c0_i32_0 = arith.constant 0 : i32
    %c0_i32_1 = arith.constant 0 : i32
    return %c0_i32, %c0_i32_0 : i32, i32
  }
  func.func @transform_11(%arg0: i32) -> (i32, i32) {
    %c0_i32 = arith.constant 0 : i32
    %c0_i32_0 = arith.constant 0 : i32
    %c0_i32_1 = arith.constant 0 : i32
    return %c0_i32, %c0_i32_0 : i32, i32
  }
  func.func @transform_12(%arg0: i32) -> (i32, i32) {
    %c0_i32 = arith.constant 0 : i32
    %c0_i32_0 = arith.constant 0 : i32
    %c0_i32_1 = arith.constant 0 : i32
    return %c0_i32, %c0_i32_0 : i32, i32
  }
  func.func @transform_13(%arg0: i32) -> (i32, i32) {
    %c0_i32 = arith.constant 0 : i32
    %c0_i32_0 = arith.constant 0 : i32
    %c0_i32_1 = arith.constant 0 : i32
    return %c0_i32, %c0_i32_0 : i32, i32
  }
  func.func @transform_14(%arg0: i32) -> (i32, i32) {
    %c0_i32 = arith.constant 0 : i32
    %c0_i32_0 = arith.constant 0 : i32
    %c0_i32_1 = arith.constant 0 : i32
    return %c0_i32, %c0_i32_0 : i32, i32
  }
  func.func @transform_15(%arg0: i32) -> (i32, i32, i32) {
    %c0_i32 = arith.constant 0 : i32
    %c0_i32_0 = arith.constant 0 : i32
    %c0_i32_1 = arith.constant 0 : i32
    return %c0_i32, %arg0, %c0_i32_0 : i32, i32, i32
  }
}

</mosaic_0001>

<bundles_post_ra>
// kernel: anya_ae_forward.1
= control target key start
LH: loop header
LB: loop body
LE: loop exit
PB: predicated region body
PF: predicated region fallthrough
CT: control target
= control target key end

     0   :  { %20 = vsyncpa [#allocation6], 0  ;;  %s6446_s0 = inlined_call_operand.vmem [shape: bf16[8,8,128], index: 0, kind: input, shape index: {}]   ;;  %s6447_s1 = inlined_call_operand.vmem [shape: bf16[128,128], index: 1, kind: input, shape index: {}]   ;;  %s6448_s2 = inlined_call_operand.vmem [shape: f32[1,128], index: 2, kind: input, shape index: {}]   ;;  %s6449_s3 = inlined_call_operand.hbm [shape: bf16[128,512], index: 3, kind: input, shape index: {}]   ;;  %s6450_s4 = inlined_call_operand.hbm [shape: bf16[128,512], index: 4, kind: input, shape index: {}]   ;;  %s6451_s5 = inlined_call_operand.vmem [shape: f32[1,512], index: 5, kind: input, shape index: {}]   ;;  %s6452_s6 = inlined_call_operand.hbm [shape: bf16[128,128], index: 6, kind: input, shape index: {}]   ;;  %s6453_s7 = inlined_call_operand.vmem [shape: f32[1,128], index: 7, kind: input, shape index: {}]   ;;  %s6454_s8 = inlined_call_operand.hbm [shape: bf16[128,128], index: 8, kind: input, shape index: {}]   ;;  %s6455_s9 = inlined_call_operand.vmem [shape: f32[1,128], index: 9, kind: input, shape index: {}]   ;;  %s6456_s10 = inlined_call_operand.hbm [shape: bf16[128,512], index: 10, kind: input, shape index: {}]   ;;  %s6457_s11 = inlined_call_operand.hbm [shape: bf16[128,512], index: 11, kind: input, shape index: {}]   ;;  %s6458_s12 = inlined_call_operand.vmem [shape: f32[1,512], index: 12, kind: input, shape index: {}]   ;;  %s6459_s13 = inlined_call_operand.hbm [shape: bf16[128,128], index: 13, kind: input, shape index: {}]   ;;  %s6460_s14 = inlined_call_operand.vmem [shape: f32[1,128], index: 14, kind: input, shape index: {}]   ;;  %s6461_s15 = inlined_call_operand.vmem [shape: f32[8,8,128], index: 15, kind: output, shape index: {}]  }
   0x1   :  { %21 = vsyncpa [#allocation8], 0 }
   0x2   :  { %22 = vsyncpa [#allocation11], 0 }
   0x3   :  { %23 = vsyncpa [#allocation14], 0  ;;  %s47_s20 = sshll.u32 %s6450_s4, 4  ;;  %s5165_s21 = smov [#allocation7]   ;;  %s48_s20 = int_to_ptr.hbm [resolvable:$true] %s47_s20 }
   0x4   :  { %s49_s22 = sshll.u32 %s5165_s21, 4  ;;  %s5166_s23 = smov 256   ;;  %s50_s22 = int_to_ptr.vmem [resolvable:$true] %s49_s22 }
   0x5   :  { %s5167_s24 = smov 16   ;;  %s77_s27 = sshll.u32 %s6454_s8, 4  ;;  %s78_s27 = int_to_ptr.hbm [resolvable:$true] %s77_s27 }
   0x6   :  { %55 = dma.hbm_to_vmem [thread:$0]  %s48_s20, 4096, %s50_s22, [#allocation8], %s5166_s23, %s5166_s23, %s5167_s24  }
   0x7   :  { %s5168_s28 = smov [#allocation10]   ;;  %s105_s4 = sshll.u32 %s6457_s11, 4  ;;  %s106_s4 = int_to_ptr.hbm [resolvable:$true] %s105_s4 }
   0x8   :  { %s79_s29 = sshll.u32 %s5168_s28, 4  ;;  %s5169_s17 = smov 64   ;;  %s80_s29 = int_to_ptr.vmem [resolvable:$true] %s79_s29 }
   0x9   :  { %s5170_s18 = smov 4   ;;  %s34_s21 = sshll.u32 %s6449_s3, 4  ;;  %s35_s21 = int_to_ptr.hbm [resolvable:$true] %s34_s21 }
   0xa   :  { %85 = dma.hbm_to_vmem [thread:$0]  %s78_s27, 1024, %s80_s29, [#allocation11], %s5169_s17, %s5169_s17, %s5170_s18  }
   0xb   :  { %s5171_s8 = smov [#allocation13]   ;;  %s5172_s11 = smov [#allocation5]  }
   0xc   :  { %s107_s22 = sshll.u32 %s5171_s8, 4  ;;  %s36_s25 = sshll.u32 %s5172_s11, 4  ;;  %s108_s22 = int_to_ptr.vmem [resolvable:$true] %s107_s22  ;;  %s37_s25 = int_to_ptr.vmem [resolvable:$true] %s36_s25 }
   0xd   :  { %113 = dma.hbm_to_vmem [thread:$0]  %s106_s4, 4096, %s108_s22, [#allocation14], %s5166_s23, %s5166_s23, %s5167_s24  }
   0xe   :  { %s62_s30 = sshll.u32 %s6452_s6, 4  ;;  %s92_s29 = sshll.u32 %s6456_s10, 4  ;;  %s63_s30 = int_to_ptr.hbm [resolvable:$true] %s62_s30  ;;  %s93_s29 = int_to_ptr.hbm [resolvable:$true] %s92_s29 }
   0xf   :  { %42 = dma.hbm_to_vmem [thread:$0]  %s35_s21, 4096, %s37_s25, [#allocation6], %s5166_s23, %s5166_s23, %s5167_s24  }
  0x10   :  { %s5173_s16 = smov [#allocation9]   ;;  %s5174_s4 = smov [#allocation12]  }
  0x11   :  { %s64_s19 = sshll.u32 %s5173_s16, 4  ;;  %s94_s6 = sshll.u32 %s5174_s4, 4  ;;  %s65_s19 = int_to_ptr.vmem [resolvable:$true] %s64_s19  ;;  %s95_s6 = int_to_ptr.vmem [resolvable:$true] %s94_s6 }
  0x12   :  { %70 = dma.hbm_to_vmem [thread:$0]  %s63_s30, 1024, %s65_s19, [#allocation8], %s5169_s17, %s5169_s17, %s5170_s18  }
  0x13   :  { %s120_s22 = sshll.u32 %s6459_s13, 4  ;;  %s5175_s10 = smov [#allocation15]   ;;  %s121_s22 = int_to_ptr.hbm [resolvable:$true] %s120_s22 }
  0x14   :  { %100 = dma.hbm_to_vmem [thread:$0]  %s93_s29, 4096, %s95_s6, [#allocation11], %s5166_s23, %s5166_s23, %s5167_s24  }
  0x15   :  { %s122_s21 = sshll.u32 %s5175_s10, 4  ;;  %s123_s21 = int_to_ptr.vmem [resolvable:$true] %s122_s21 }
  0x16   :  { %128 = dma.hbm_to_vmem [thread:$0]  %s121_s22, 1024, %s123_s21, [#allocation14], %s5169_s17, %s5169_s17, %s5170_s18  }
  0x17   :  { %5157 = dma.done.wait [#allocation6], 4096  }
  0x18   :  { %5158 = vsyncadd [#allocation6], 4294963200 }
  0x19   :  { %5159 = dma.done.wait [#allocation8], 5120  }
  0x1a   :  { %5160 = vsyncadd [#allocation8], 4294962176 }
  0x1b   :  { %5161 = dma.done.wait [#allocation11], 5120  }
  0x1c   :  { %5162 = vsyncadd [#allocation11], 4294962176 }
  0x1d   :  { %5163 = dma.done.wait [#allocation14], 5120  }
  0x1e   :  { %5164 = vsyncadd [#allocation14], 4294962176  ;;  %v4612_v0 = vld [vmem:[%s6447_s1 + $0x38] sm:$0xff]  ;;  %v4611_v1 = vld [vmem:[%s6447_s1 + $0x30] sm:$0xff] }
  0x1f   :  { %324 = vmatpush.bf16.msra.mxu0 %v4612_v0  ;;  %v4610_v2 = vld [vmem:[%s6447_s1 + $0x28] sm:$0xff]  ;;  %v4609_v3 = vld [vmem:[%s6447_s1 + $0x20] sm:$0xff]  ;;  %v4608_v4 = vld [vmem:[%s6447_s1 + $0x18] sm:$0xff] }
  0x20   :  { %v4607_v5 = vld [vmem:[%s6447_s1 + $0x10] sm:$0xff]  ;;  %v4606_v6 = vld [vmem:[%s6447_s1 + $0x8] sm:$0xff]  ;;  %v4605_v7 = vld [vmem:[%s6447_s1] sm:$0xff] }
  0x21   :  { %v4601_v8 = vld [vmem:[%s6446_s0] sm:$0xff]  ;;  %v4602_v9 = vld [vmem:[%s6446_s0 + $0x8] sm:$0xff]  ;;  %v4643_v11 = vld [vmem:[#allocation5 + $0xec] sm:$0xf0] }
  0x22   :  { %v3963_v10 = vld [vmem:[#allocation5 + $0xe0] sm:$0xf]  ;;  %v4641_v12 = vld [vmem:[#allocation5 + $0xe4] sm:$0xf]  ;;  %v3965_v14 = vld [vmem:[#allocation5 + $0xf0] sm:$0xf0] }
  0x23   :  { %325 = vmatpush.bf16.msra.mxu0 %v4611_v1  ;;  %v3964_v13 = vor.u32 %v4643_v11, %v3963_v10  ;;  %v4642_v15 = vld [vmem:[#allocation5 + $0xec] sm:$0xf]  ;;  %v3973_v16 = vld [vmem:[#allocation5 + $0xf8] sm:$0xf0]  ;;  %v3968_v17 = vor.u32 %v4641_v12, %v3965_v14  ;;  %v3947_v19 = vld [vmem:[#allocation5 + $0xc0] sm:$0xf] }
  0x24   :  { %v3976_v18 = vor.u32 %v4642_v15, %v3973_v16  ;;  %v4639_v20 = vld [vmem:[#allocation5 + $0xcc] sm:$0xf0]  ;;  %v4637_v21 = vld [vmem:[#allocation5 + $0xc4] sm:$0xf]  ;;  %v3949_v23 = vld [vmem:[#allocation5 + $0xd0] sm:$0xf0] }
  0x25   :  { %567 = vmatpush.bf16.msra.mxu1 %v3964_v13  ;;  %v3948_v22 = vor.u32 %v4639_v20, %v3947_v19  ;;  %v4638_v24 = vld [vmem:[#allocation5 + $0xcc] sm:$0xf]  ;;  %v3957_v25 = vld [vmem:[#allocation5 + $0xd8] sm:$0xf0]  ;;  %596 = vmatpush.bf16.msra.mxu2 %v3968_v17  ;;  %v3952_v26 = vor.u32 %v4637_v21, %v3949_v23  ;;  %v3931_v28 = vld [vmem:[#allocation5 + $0xa0] sm:$0xf] }
  0x26   :  { %v3960_v27 = vor.u32 %v4638_v24, %v3957_v25  ;;  %v4635_v29 = vld [vmem:[#allocation5 + $0xac] sm:$0xf0]  ;;  %v4633_v30 = vld [vmem:[#allocation5 + $0xa4] sm:$0xf]  ;;  %v3933_v31 = vld [vmem:[#allocation5 + $0xb0] sm:$0xf0]  ;;  %4709 = vmatpush.bf16.msra.mxu3 %v3968_v17 }
  0x27   :  { %326 = vmatpush.bf16.msra.mxu0 %v4610_v2  ;;  %v4634_v32 = vld [vmem:[#allocation5 + $0xac] sm:$0xf]  ;;  %v3941_v33 = vld [vmem:[#allocation5 + $0xb8] sm:$0xf0]  ;;  %v3932_v34 = vor.u32 %v4635_v29, %v3931_v28  ;;  %v3936_v35 = vor.u32 %v4633_v30, %v3933_v31  ;;  %v3915_v37 = vld [vmem:[#allocation5 + $0x80] sm:$0xf] }
  0x28   :  { %v3944_v36 = vor.u32 %v4634_v32, %v3941_v33  ;;  %v4631_v38 = vld [vmem:[#allocation5 + $0x8c] sm:$0xf0]  ;;  %v4629_v39 = vld [vmem:[#allocation5 + $0x84] sm:$0xf]  ;;  %v3917_v40 = vld [vmem:[#allocation5 + $0x90] sm:$0xf0] }
  0x29   :  { %568 = vmatpush.bf16.msra.mxu1 %v3948_v22  ;;  %597 = vmatpush.bf16.msra.mxu2 %v3952_v26  ;;  %v4630_v41 = vld [vmem:[#allocation5 + $0x8c] sm:$0xf]  ;;  %v3925_v42 = vld [vmem:[#allocation5 + $0x98] sm:$0xf0]  ;;  %v3916_v43 = vor.u32 %v4631_v38, %v3915_v37  ;;  %v4603_v44 = vld [vmem:[%s6446_s0 + $0x10] sm:$0xff]  ;;  %v3920_v45 = vor.u32 %v4629_v39, %v3917_v40 }
  0x2a   :  { %4710 = vmatpush.bf16.msra.mxu3 %v3952_v26  ;;  %v3928_v46 = vor.u32 %v4630_v41, %v3925_v42  ;;  %v4604_v47 = vld [vmem:[%s6446_s0 + $0x18] sm:$0xff]  ;;  %v3899_v48 = vld [vmem:[#allocation5 + $0x60] sm:$0xf]  ;;  %v4627_v49 = vld [vmem:[#allocation5 + $0x6c] sm:$0xf0] }
  0x2b   :  { %327 = vmatpush.bf16.msra.mxu0 %v4609_v3  ;;  %v4625_v50 = vld [vmem:[#allocation5 + $0x64] sm:$0xf]  ;;  %v3900_v51 = vor.u32 %v4627_v49, %v3899_v48  ;;  %v3901_v52 = vld [vmem:[#allocation5 + $0x70] sm:$0xf0]  ;;  %v4626_v53 = vld [vmem:[#allocation5 + $0x6c] sm:$0xf] }
  0x2c   :  { %v3909_v54 = vld [vmem:[#allocation5 + $0x78] sm:$0xf0]  ;;  %v3904_v55 = vor.u32 %v4625_v50, %v3901_v52  ;;  %v3883_v57 = vld [vmem:[#allocation5 + $0x40] sm:$0xf]  ;;  %v4623_v58 = vld [vmem:[#allocation5 + $0x4c] sm:$0xf0] }
  0x2d   :  { %569 = vmatpush.bf16.msra.mxu1 %v3932_v34  ;;  %598 = vmatpush.bf16.msra.mxu2 %v3936_v35  ;;  %v3912_v56 = vor.u32 %v4626_v53, %v3909_v54  ;;  %v4621_v59 = vld [vmem:[#allocation5 + $0x44] sm:$0xf]  ;;  %v3884_v60 = vor.u32 %v4623_v58, %v3883_v57  ;;  %v3885_v61 = vld [vmem:[#allocation5 + $0x50] sm:$0xf0]  ;;  %v4622_v62 = vld [vmem:[#allocation5 + $0x4c] sm:$0xf] }
  0x2e   :  { %4711 = vmatpush.bf16.msra.mxu3 %v3936_v35  ;;  %v3893_v63 = vld [vmem:[#allocation5 + $0x58] sm:$0xf0]  ;;  %v3888_v0 = vor.u32 %v4621_v59, %v3885_v61  ;;  %v3867_v2 = vld [vmem:[#allocation5 + $0x20] sm:$0xf]  ;;  %v4619_v3 = vld [vmem:[#allocation5 + $0x2c] sm:$0xf0] }
  0x2f   :  { %328 = vmatpush.bf16.msra.mxu0 %v4608_v4  ;;  %v3896_v1 = vor.u32 %v4622_v62, %v3893_v63  ;;  %v4617_v4 = vld [vmem:[#allocation5 + $0x24] sm:$0xf]  ;;  %v3851_v11 = vld [vmem:[#allocation5] sm:$0xf]  ;;  %v4615_v12 = vld [vmem:[#allocation5 + $0xc] sm:$0xf0] }
  0x30   :  { %v4613_v13 = vld [vmem:[#allocation5 + $0x4] sm:$0xf]  ;;  %v3852_v14 = vor.u32 %v4615_v12, %v3851_v11  ;;  %v3853_v15 = vld [vmem:[#allocation5 + $0x10] sm:$0xf0]  ;;  %v4614_v16 = vld [vmem:[#allocation5 + $0xc] sm:$0xf] }
  0x31   :  { %570 = vmatpush.bf16.msra.mxu1 %v3916_v43  ;;  %599 = vmatpush.bf16.msra.mxu2 %v3920_v45  ;;  %v3861_v17 = vld [vmem:[#allocation5 + $0x18] sm:$0xf0]  ;;  %v4565_v20 = vld [vmem:[#allocation7 + $0xe4] sm:$0xf]  ;;  %v4093_v21 = vld [vmem:[#allocation7 + $0xf0] sm:$0xf0] }
  0x32   :  { %4712 = vmatpush.bf16.msra.mxu3 %v3920_v45  ;;  %v3864_v19 = vor.u32 %v4614_v16, %v3861_v17  ;;  %v5335_v22 = vor.u32 %v4565_v20, %v4093_v21  ;;  %v4561_v23 = vld [vmem:[#allocation7 + $0xc4] sm:$0xf]  ;;  %v4077_v24 = vld [vmem:[#allocation7 + $0xd0] sm:$0xf0]  ;;  %v4567_v37 = vld [vmem:[#allocation7 + $0xec] sm:$0xf0] }
  0x33   :  { %329 = vmatpush.bf16.msra.mxu0 %v4607_v5  ;;  %v3868_v5 = vor.u32 %v4619_v3, %v3867_v2  ;;  %v5338_v25 = vor.u32 %v4561_v23, %v4077_v24  ;;  %v4557_v26 = vld [vmem:[#allocation7 + $0xa4] sm:$0xf]  ;;  %v4045_v30 = vld [vmem:[#allocation7 + $0x90] sm:$0xf0]  ;;  %v5355_v41 = vld [vmem:[%s6448_s2] ss:$0 sm:$0xff] }
  0x34   :  { %v4553_v29 = vld [vmem:[#allocation7 + $0x84] sm:$0xf]  ;;  %v4029_v33 = vld [vmem:[#allocation7 + $0x70] sm:$0xf0]  ;;  %v4075_v43 = vld [vmem:[#allocation7 + $0xc0] sm:$0xf] }
  0x35   :  { %571 = vmatpush.bf16.msra.mxu1 %v3900_v51  ;;  %600 = vmatpush.bf16.msra.mxu2 %v3904_v55  ;;  %v5344_v31 = vor.u32 %v4553_v29, %v4045_v30  ;;  %v4549_v32 = vld [vmem:[#allocation7 + $0x64] sm:$0xf]  ;;  %v4013_v40 = vld [vmem:[#allocation7 + $0x50] sm:$0xf0]  ;;  %v4059_v52 = vld [vmem:[#allocation7 + $0xa0] sm:$0xf] }
  0x36   :  { %4713 = vmatpush.bf16.msra.mxu3 %v3904_v55  ;;  %v5347_v34 = vor.u32 %v4549_v32, %v4029_v33  ;;  %v4545_v39 = vld [vmem:[#allocation7 + $0x44] sm:$0xf]  ;;  %v4559_v53 = vld [vmem:[#allocation7 + $0xac] sm:$0xf0]  ;;  %v4043_v61 = vld [vmem:[#allocation7 + $0x80] sm:$0xf] }
  0x37   :  { %330 = vmatpush.bf16.msra.mxu0 %v4606_v6  ;;  %v3869_v6 = vld [vmem:[#allocation5 + $0x30] sm:$0xf0]  ;;  %v5357_v42 = vor.u32 %v4545_v39, %v4013_v40  ;;  %v5369_v54 = vor.u32 %v4559_v53, %v4059_v52  ;;  %v4537_v55 = vld [vmem:[#allocation7 + $0x4] sm:$0xf]  ;;  %v4555_v62 = vld [vmem:[#allocation7 + $0x8c] sm:$0xf0] }
  0x38   :  { %v3971_v63 = vld [vmem:[#allocation5 + $0xe8] sm:$0xf]  ;;  %v4636_v11 = vld [vmem:[#allocation5 + $0xb4] sm:$0xf0]  ;;  %v4011_v12 = vld [vmem:[#allocation7 + $0x40] sm:$0xf] }
  0x39   :  { %572 = vmatpush.bf16.msra.mxu1 %v3884_v60  ;;  %601 = vmatpush.bf16.msra.mxu2 %v3888_v0  ;;  %v4543_v20 = vld [vmem:[#allocation7 + $0x2c] sm:$0xf0]  ;;  %v3923_v21 = vld [vmem:[#allocation5 + $0x88] sm:$0xf]  ;;  %v4632_v23 = vld [vmem:[#allocation5 + $0x94] sm:$0xf0] }
  0x3a   :  { %4714 = vmatpush.bf16.msra.mxu3 %v3888_v0  ;;  %v4644_v0 = vld [vmem:[#allocation5 + $0xf4] sm:$0xf0]  ;;  %v3924_v29 = vor.u32 %v4632_v23, %v3923_v21  ;;  %v3979_v32 = vld [vmem:[#allocation7] sm:$0xf]  ;;  %v4539_v33 = vld [vmem:[#allocation7 + $0xc] sm:$0xf0] }
  0x3b   :  { %331 = vmatpush.bf16.msra.mxu0 %v4605_v7  ;;  %v4618_v7 = vld [vmem:[#allocation5 + $0x2c] sm:$0xf]  ;;  %v3972_v2 = vor.u32 %v4644_v0, %v3971_v63  ;;  %v4085_v52 = vld [vmem:[#allocation7 + $0xd8] sm:$0xf0]  ;;  %v3859_v63 = vld [vmem:[#allocation5 + $0x8] sm:$0xf] }
  0x3c   :  { %v4566_v39 = vld [vmem:[#allocation7 + $0xec] sm:$0xf]  ;;  %v4616_v0 = vld [vmem:[#allocation5 + $0x14] sm:$0xf0] }
  0x3d   :  { %573 = vmatpush.bf16.msra.mxu1 %v3868_v5  ;;  %v4551_v5 = vld [vmem:[#allocation7 + $0x6c] sm:$0xf0] }
  0x3e   :  { %332 = vmatmul.bf16.vlgmr.msra.gmra.mxu0 %v4601_v8  ;;  %v3877_v8 = vld [vmem:[#allocation5 + $0x38] sm:$0xf0] }
  0x3f   :  { %654 = vmatpush.bf16.msrb.mxu0 %v3976_v18  ;;  %v3880_v10 = vor.u32 %v4618_v7, %v3877_v8  ;;  %v3856_v18 = vor.u32 %v4613_v13, %v3853_v15  ;;  %v4640_v7 = vld [vmem:[#allocation5 + $0xd4] sm:$0xf0]  ;;  %v4547_v13 = vld [vmem:[#allocation7 + $0x4c] sm:$0xf0] }
  0x40   :  { %v5387_v15 = vor.u32 %v4547_v13, %v4011_v12  ;;  %v4550_v13 = vld [vmem:[#allocation7 + $0x6c] sm:$0xf] }
  0x41   :  { %574 = vmatpush.bf16.msra.mxu1 %v3852_v14 }
  0x43   :  { %655 = vmatpush.bf16.msrb.mxu0 %v3960_v27  ;;  %v4061_v27 = vld [vmem:[#allocation7 + $0xb0] sm:$0xf0] }
  0x44   :  { %v5341_v28 = vor.u32 %v4557_v26, %v4061_v27 }
  0x47   :  { %656 = vmatpush.bf16.msrb.mxu0 %v3944_v36  ;;  %v4091_v36 = vld [vmem:[#allocation7 + $0xe0] sm:$0xf] }
  0x48   :  { %v5350_v38 = vor.u32 %v4567_v37, %v4091_v36  ;;  %v4628_v36 = vld [vmem:[#allocation5 + $0x74] sm:$0xf0]  ;;  %v5400_v37 = vor.u32 %v4539_v33, %v3979_v32 }
  0x4a   :  { %879 = vmatpush.bf16.msrb.mxu1 %v5350_v38 }
  0x4b   :  { %657 = vmatpush.bf16.msrb.mxu0 %v3928_v46  ;;  %v4541_v46 = vld [vmem:[#allocation7 + $0x24] sm:$0xf] }
  0x4e   :  { %337 = vmatmul.bf16.gmra.mxu0 %v4602_v9  ;;  %v3872_v9 = vor.u32 %v4617_v4, %v3869_v6  ;;  %v4027_v4 = vld [vmem:[#allocation7 + $0x60] sm:$0xf]  ;;  %v3955_v6 = vld [vmem:[#allocation5 + $0xc8] sm:$0xf] }
  0x4f   :  { %658 = vmatpush.bf16.msrb.mxu0 %v3912_v56  ;;  %v3981_v56 = vld [vmem:[#allocation7 + $0x10] sm:$0xf0]  ;;  %v5384_v8 = vor.u32 %v4551_v5, %v4027_v4  ;;  %v4053_v4 = vld [vmem:[#allocation7 + $0x98] sm:$0xf0] }
  0x50   :  { %602 = vmatpush.bf16.msra.mxu2 %v3872_v9  ;;  %4715 = vmatpush.bf16.msra.mxu3 %v3872_v9  ;;  %v5371_v59 = vor.u32 %v4537_v55, %v3981_v56  ;;  %v3956_v9 = vor.u32 %v4640_v7, %v3955_v6  ;;  %v3875_v55 = vld [vmem:[#allocation5 + $0x28] sm:$0xf]  ;;  %v4620_v56 = vld [vmem:[#allocation5 + $0x34] sm:$0xf0]  ;;  %v3860_v7 = vor.u32 %v4616_v0, %v3859_v63 }
  0x51   :  { %v4035_v0 = vld [vmem:[#allocation7 + $0x68] sm:$0xf] }
  0x53   :  { %659 = vmatpush.bf16.msrb.mxu0 %v3896_v1  ;;  %v5377_v1 = vor.u32 %v4555_v62, %v4043_v61  ;;  %v3876_v61 = vor.u32 %v4620_v56, %v3875_v55  ;;  %v4067_v56 = vld [vmem:[#allocation7 + $0xa8] sm:$0xf] }
  0x54   :  { %603 = vmatpush.bf16.msra.mxu2 %v3856_v18  ;;  %4716 = vmatpush.bf16.msra.mxu3 %v3856_v18 }
  0x57   :  { %660 = vmatpush.bf16.msrb.mxu0 %v3880_v10  ;;  %v3939_v10 = vld [vmem:[#allocation5 + $0xa8] sm:$0xf] }
  0x58   :  { %892 = vmatpush.bf16.msrb.mxu2 %v5335_v22  ;;  %625 = vmatpush.bf16.msrb.mxu3 %v3972_v2  ;;  %v3940_v14 = vor.u32 %v4636_v11, %v3939_v10 }
  0x5b   :  { %661 = vmatpush.bf16.msrb.mxu0 %v3864_v19  ;;  %v3995_v19 = vld [vmem:[#allocation7 + $0x20] sm:$0xf] }
  0x5c   :  { %893 = vmatpush.bf16.msrb.mxu2 %v5338_v25  ;;  %626 = vmatpush.bf16.msrb.mxu3 %v3956_v9  ;;  %v5394_v24 = vor.u32 %v4543_v20, %v3995_v19  ;;  %v4546_v19 = vld [vmem:[#allocation7 + $0x4c] sm:$0xf]  ;;  %v5176_v20 = vmov 0  }
  0x5e   :  { %342 = vmatmul.bf16.gmra.mxu0 %v4603_v44  ;;  %v4563_v44 = vld [vmem:[#allocation7 + $0xcc] sm:$0xf0] }
  0x5f   :  { %v5360_v45 = vor.u32 %v4563_v44, %v4075_v43  ;;  %v4101_v43 = vld [vmem:[#allocation7 + $0xf8] sm:$0xf0] }
  0x60   :  { %894 = vmatpush.bf16.msrb.mxu2 %v5341_v28  ;;  %627 = vmatpush.bf16.msrb.mxu3 %v3940_v14  ;;  %v4037_v14 = vld [vmem:[#allocation7 + $0x78] sm:$0xf0] }
  0x61   :  { %880 = vmatpush.bf16.msrb.mxu1 %v5360_v45 }
  0x64   :  { %895 = vmatpush.bf16.msrb.mxu2 %v5344_v31  ;;  %628 = vmatpush.bf16.msrb.mxu3 %v3924_v29  ;;  %v4564_v29 = vld [vmem:[#allocation7 + $0xd4] sm:$0xf0] }
  0x65   :  { %881 = vmatpush.bf16.msrb.mxu1 %v5369_v54 }
  0x68   :  { %896 = vmatpush.bf16.msrb.mxu2 %v5347_v34 }
  0x69   :  { %882 = vmatpush.bf16.msrb.mxu1 %v5377_v1 }
  0x6c   :  { %897 = vmatpush.bf16.msrb.mxu2 %v5357_v42 }
  0x6d   :  { %883 = vmatpush.bf16.msrb.mxu1 %v5384_v8 }
  0x6e   :  { %347 = vmatmul.bf16.gmra.mxu0 %v4604_v47  ;;  %v3997_v47 = vld [vmem:[#allocation7 + $0x30] sm:$0xf0] }
  0x6f   :  { %v5364_v49 = vor.u32 %v4541_v46, %v3997_v47  ;;  %v5406_v46 = vor.u32 %v4566_v39, %v4101_v43  ;;  %v3891_v47 = vld [vmem:[#allocation5 + $0x48] sm:$0xf]  ;;  %v4538_v43 = vld [vmem:[#allocation7 + $0xc] sm:$0xf] }
  0x71   :  { %898 = vmatpush.bf16.msrb.mxu2 %v5364_v49  ;;  %884 = vmatpush.bf16.msrb.mxu1 %v5387_v15 }
  0x75   :  { %899 = vmatpush.bf16.msrb.mxu2 %v5371_v59  ;;  %885 = vmatpush.bf16.msrb.mxu1 %v5394_v24 }
  0x79   :  { %886 = vmatpush.bf16.msrb.mxu1 %v5400_v37 }
  0xbb   :  { %v333_v35 = vpop.f32.mrf.mxu0 }
  0xbc   :  { %v334_v48 = vadd.f32 %v5355_v41, %v333_v35  ;;  %v3907_v35 = vld [vmem:[#allocation5 + $0x68] sm:$0xf] }
  0xbd   :  { %v3908_v40 = vor.u32 %v4628_v36, %v3907_v35  ;;  %v4542_v35 = vld [vmem:[#allocation7 + $0x2c] sm:$0xf]  ;;  %v4005_v36 = vld [vmem:[#allocation7 + $0x38] sm:$0xf0] }
  0xbe   :  { %v353_v57 = vmax.f32 %v334_v48, 0.0  ;;  %v4624_v48 = vld [vmem:[#allocation5 + $0x54] sm:$0xf0]  ;;  %v5445_v39 = vor.u32 %v4542_v35, %v4005_v36 }
  0xbf   :  { %629 = vmatpush.bf16.msrb.mxu3 %v3908_v40 }
  0xc3   :  { %v335_v50 = vpop.f32.mrf.mxu0 }
  0xc4   :  { %v336_v51 = vadd.f32 %v5355_v41, %v335_v50  ;;  %v4562_v50 = vld [vmem:[#allocation7 + $0xcc] sm:$0xf] }
  0xc5   :  { %v5410_v53 = vor.u32 %v4562_v50, %v4085_v52 }
  0xc6   :  { %v354_v58 = vmax.f32 %v336_v51, 0.0  ;;  %v3892_v51 = vor.u32 %v4624_v48, %v3891_v47 }
  0xc8   :  { %v5374_v60 = vpack.c.bf16 %v354_v58, %v353_v57  ;;  %v4558_v57 = vld [vmem:[#allocation7 + $0xac] sm:$0xf]  ;;  %v4069_v58 = vld [vmem:[#allocation7 + $0xb8] sm:$0xf0]  ;;  %630 = vmatpush.bf16.msrb.mxu3 %v3892_v51 }
  0xc9   :  { %v5414_v62 = vor.u32 %v4558_v57, %v4069_v58  ;;  %v4051_v57 = vld [vmem:[#allocation7 + $0x88] sm:$0xf] }
  0xca   :  { %575 = vmatmul.bf16.vlgmr.msra.gmra.mxu1 %v5374_v60  ;;  %604 = vmatmul.bf16.vlgmr.msra.gmra.mxu2 %v5374_v60 }
  0xcb   :  { %662 = vmatmul.bf16.vlgmr.msrb.gmra.mxu0 %v5374_v60  ;;  %v338_v3 = vpop.f32.mrf.mxu0  ;;  %1005 = vmatpush.bf16.msra.mxu2 %v5350_v38 }
  0xcc   :  { %v339_v16 = vadd.f32 %v5355_v41, %v338_v3  ;;  %918 = vmatpush.bf16.msra.mxu1 %v5406_v46  ;;  %v4554_v3 = vld [vmem:[#allocation7 + $0x8c] sm:$0xf]  ;;  %631 = vmatpush.bf16.msrb.mxu3 %v3876_v61  ;;  %v4556_v61 = vld [vmem:[#allocation7 + $0x94] sm:$0xf0] }
  0xcd   :  { %v5420_v9 = vor.u32 %v4554_v3, %v4053_v4  ;;  %v5465_v63 = vor.u32 %v4556_v61, %v4051_v57  ;;  %v4019_v3 = vld [vmem:[#allocation7 + $0x48] sm:$0xf] }
  0xce   :  { %v355_v26 = vmax.f32 %v339_v16, 0.0  ;;  %v4099_v16 = vld [vmem:[#allocation7 + $0xe8] sm:$0xf] }
  0xcf   :  { %1006 = vmatpush.bf16.msra.mxu2 %v5360_v45 }
  0xd0   :  { %919 = vmatpush.bf16.msra.mxu1 %v5410_v53  ;;  %632 = vmatpush.bf16.msrb.mxu3 %v3860_v7  ;;  %v4544_v7 = vld [vmem:[#allocation7 + $0x34] sm:$0xf0] }
  0xd3   :  { %v340_v17 = vpop.f32.mrf.mxu0  ;;  %1007 = vmatpush.bf16.msra.mxu2 %v5369_v54 }
  0xd4   :  { %v341_v18 = vadd.f32 %v5355_v41, %v340_v17  ;;  %920 = vmatpush.bf16.msra.mxu1 %v5414_v62  ;;  %v4568_v17 = vld [vmem:[#allocation7 + $0xf4] sm:$0xf0] }
  0xd5   :  { %v5432_v23 = vor.u32 %v4568_v17, %v4099_v16 }
  0xd6   :  { %v356_v27 = vmax.f32 %v341_v18, 0.0  ;;  %v5428_v18 = vor.u32 %v4550_v13, %v4037_v14  ;;  %v4540_v13 = vld [vmem:[#allocation7 + $0x14] sm:$0xf0] }
  0xd7   :  { %1008 = vmatpush.bf16.msra.mxu2 %v5377_v1  ;;  %1031 = vmatpush.bf16.msra.mxu0 %v5432_v23 }
  0xd8   :  { %v5397_v30 = vpack.c.bf16 %v356_v27, %v355_v26  ;;  %921 = vmatpush.bf16.msra.mxu1 %v5420_v9  ;;  %v4021_v26 = vld [vmem:[#allocation7 + $0x58] sm:$0xf0]  ;;  %v4083_v27 = vld [vmem:[#allocation7 + $0xc8] sm:$0xf] }
  0xd9   :  { %v5437_v32 = vor.u32 %v4546_v19, %v4021_v26  ;;  %v5439_v33 = vor.u32 %v4564_v29, %v4083_v27 }
  0xda   :  { %580 = vmatmul.bf16.gmra.mxu1 %v5397_v30  ;;  %609 = vmatmul.bf16.gmra.mxu2 %v5397_v30 }
  0xdb   :  { %667 = vmatmul.bf16.gmra.mxu0 %v5397_v30  ;;  %v343_v44 = vpop.f32.mrf.mxu0  ;;  %1009 = vmatpush.bf16.msra.mxu2 %v5384_v8 }
  0xdc   :  { %v344_v2 = vadd.f32 %v5355_v41, %v343_v44  ;;  %922 = vmatpush.bf16.msra.mxu1 %v5428_v18  ;;  %v3989_v44 = vld [vmem:[#allocation7 + $0x18] sm:$0xf0]  ;;  %1032 = vmatpush.bf16.msra.mxu0 %v5439_v33 }
  0xdd   :  { %v5452_v50 = vor.u32 %v4538_v43, %v3989_v44 }
  0xde   :  { %v357_v10 = vmax.f32 %v344_v2, 0.0  ;;  %v4552_v2 = vld [vmem:[#allocation7 + $0x74] sm:$0xf0] }
  0xdf   :  { %1010 = vmatpush.bf16.msra.mxu2 %v5387_v15  ;;  %v5475_v4 = vor.u32 %v4552_v2, %v4035_v0 }
  0xe0   :  { %923 = vmatpush.bf16.msra.mxu1 %v5437_v32 }
  0xe3   :  { %v345_v5 = vpop.f32.mrf.mxu0  ;;  %1011 = vmatpush.bf16.msra.mxu2 %v5394_v24 }
  0xe4   :  { %v346_v6 = vadd.f32 %v5355_v41, %v345_v5  ;;  %924 = vmatpush.bf16.msra.mxu1 %v5445_v39  ;;  %v4548_v5 = vld [vmem:[#allocation7 + $0x54] sm:$0xf0] }
  0xe6   :  { %v358_v11 = vmax.f32 %v346_v6, 0.0  ;;  %v5479_v6 = vor.u32 %v4548_v5, %v4019_v3 }
  0xe7   :  { %1012 = vmatpush.bf16.msra.mxu2 %v5400_v37 }
  0xe8   :  { %v5422_v12 = vpack.c.bf16 %v358_v11, %v357_v10  ;;  %925 = vmatpush.bf16.msra.mxu1 %v5452_v50  ;;  %v3987_v10 = vld [vmem:[#allocation7 + $0x8] sm:$0xf] }
  0xe9   :  { %v5493_v14 = vor.u32 %v4540_v13, %v3987_v10 }
  0xea   :  { %585 = vmatmul.bf16.gmra.mxu1 %v5422_v12  ;;  %614 = vmatmul.bf16.vlgmr.msra.gmra.mxu3 %v5422_v12 }
  0xeb   :  { %672 = vmatmul.bf16.gmra.mxu0 %v5422_v12  ;;  %900 = vmatmul.bf16.vlgmr.msrb.gmra.mxu2 %v5176_v20  ;;  %v348_v21 = vpop.f32.mrf.mxu0 }
  0xec   :  { %1132 = vmatpush.bf16.msrb.mxu2 %v5350_v38  ;;  %905 = vmatpush.bf16.msra.mxu3 %v5432_v23  ;;  %v349_v40 = vadd.f32 %v5355_v41, %v348_v21  ;;  %v5539_v21 = vld [vmem:[%s6451_s5] sm:$0xf] }
  0xed   :  { %v5548_v27 = vperm.slane %v5539_v21, 3  ;;  %v5559_v43 = vperm.slane %v5539_v21, 1 }
  0xee   :  { %v359_v51 = vmax.f32 %v349_v40, 0.0 }
  0xef   :  { %6466 = vst [vmem:[#allocation20_spill] sm:$0xff] %v5548_v27 }
  0xf0   :  { %1133 = vmatpush.bf16.msrb.mxu2 %v5360_v45  ;;  %906 = vmatpush.bf16.msra.mxu3 %v5439_v33 }
  0xf3   :  { %v350_v47 = vpop.f32.mrf.mxu0 }
  0xf4   :  { %v351_v48 = vadd.f32 %v5355_v41, %v350_v47  ;;  %1134 = vmatpush.bf16.msrb.mxu2 %v5369_v54  ;;  %v4560_v41 = vld [vmem:[#allocation7 + $0xb4] sm:$0xf0] }
  0xf5   :  { %v5461_v58 = vor.u32 %v4560_v41, %v4067_v56 }
  0xf6   :  { %v360_v52 = vmax.f32 %v351_v48, 0.0 }
  0xf7   :  { %907 = vmatpush.bf16.msra.mxu3 %v5461_v58  ;;  %1033 = vmatpush.bf16.msra.mxu0 %v5461_v58 }
  0xf8   :  { %v5454_v55 = vpack.c.bf16 %v360_v52, %v359_v51  ;;  %1135 = vmatpush.bf16.msrb.mxu2 %v5377_v1 }
  0xfa   :  { %590 = vmatmul.bf16.gmra.mxu1 %v5454_v55  ;;  %619 = vmatmul.bf16.gmra.mxu3 %v5454_v55 }
  0xfb   :  { %677 = vmatmul.bf16.gmra.mxu0 %v5454_v55  ;;  %908 = vmatpush.bf16.msra.mxu3 %v5465_v63 }
  0xfc   :  { %1136 = vmatpush.bf16.msrb.mxu2 %v5384_v8  ;;  %1034 = vmatpush.bf16.msra.mxu0 %v5465_v63 }
  0xff   :  { %909 = vmatpush.bf16.msra.mxu3 %v5475_v4 }
 0x100   :  { %1137 = vmatpush.bf16.msrb.mxu2 %v5387_v15  ;;  %1035 = vmatpush.bf16.msra.mxu0 %v5475_v4 }
 0x103   :  { %910 = vmatpush.bf16.msra.mxu3 %v5479_v6 }
 0x104   :  { %1138 = vmatpush.bf16.msrb.mxu2 %v5394_v24  ;;  %1036 = vmatpush.bf16.msra.mxu0 %v5479_v6 }
 0x108   :  { %1139 = vmatpush.bf16.msrb.mxu2 %v5400_v37 }
 0x10a   :  { %633 = vmatmul.bf16.vlgmr.msrb.gmra.mxu3 %v5374_v60  ;;  %887 = vmatmul.bf16.vlgmr.msrb.gmra.mxu1 %v5176_v20  ;;  %v4003_v60 = vld [vmem:[#allocation7 + $0x28] sm:$0xf] }
 0x10b   :  { %1044 = vmatpush.bf16.msrb.mxu1 %v5406_v46  ;;  %v5489_v11 = vor.u32 %v4544_v7, %v4003_v60 }
 0x10d   :  { %911 = vmatpush.bf16.msra.mxu3 %v5489_v11  ;;  %1037 = vmatpush.bf16.msra.mxu0 %v5489_v11 }
 0x10f   :  { %1045 = vmatpush.bf16.msrb.mxu1 %v5410_v53 }
 0x111   :  { %912 = vmatpush.bf16.msra.mxu3 %v5493_v14  ;;  %1038 = vmatpush.bf16.msra.mxu0 %v5493_v14 }
 0x113   :  { %1046 = vmatpush.bf16.msrb.mxu1 %v5414_v62 }
 0x115   :  { %1018 = vmatpush.bf16.msrb.mxu3 %v5335_v22  ;;  %1158 = vmatpush.bf16.msrb.mxu0 %v5432_v23 }
 0x117   :  { %1047 = vmatpush.bf16.msrb.mxu1 %v5420_v9 }
 0x119   :  { %1019 = vmatpush.bf16.msrb.mxu3 %v5338_v25  ;;  %1159 = vmatpush.bf16.msrb.mxu0 %v5439_v33 }
 0x11a   :  { %638 = vmatmul.bf16.gmra.mxu3 %v5397_v30  ;;  %926 = vmatmul.bf16.vlgmr.msra.gmra.mxu1 %v5176_v20 }
 0x11b   :  { %1048 = vmatpush.bf16.msrb.mxu1 %v5428_v18 }
 0x11d   :  { %1160 = vmatpush.bf16.msrb.mxu0 %v5461_v58  ;;  %1020 = vmatpush.bf16.msrb.mxu3 %v5341_v28 }
 0x11f   :  { %1049 = vmatpush.bf16.msrb.mxu1 %v5437_v32 }
 0x121   :  { %1161 = vmatpush.bf16.msrb.mxu0 %v5465_v63  ;;  %1021 = vmatpush.bf16.msrb.mxu3 %v5344_v31 }
 0x123   :  { %1050 = vmatpush.bf16.msrb.mxu1 %v5445_v39 }
 0x125   :  { %1162 = vmatpush.bf16.msrb.mxu0 %v5475_v4  ;;  %1022 = vmatpush.bf16.msrb.mxu3 %v5347_v34 }
 0x127   :  { %1051 = vmatpush.bf16.msrb.mxu1 %v5452_v50 }
 0x129   :  { %1163 = vmatpush.bf16.msrb.mxu0 %v5479_v6  ;;  %1023 = vmatpush.bf16.msrb.mxu3 %v5357_v42 }
 0x12a   :  { %643 = vmatmul.bf16.gmra.mxu3 %v5422_v12 }
 0x12b   :  { %1171 = vmatpush.bf16.msra.mxu1 %v5406_v46 }
 0x12d   :  { %1164 = vmatpush.bf16.msrb.mxu0 %v5489_v11  ;;  %1024 = vmatpush.bf16.msrb.mxu3 %v5364_v49 }
 0x12f   :  { %1172 = vmatpush.bf16.msra.mxu1 %v5410_v53 }
 0x131   :  { %1165 = vmatpush.bf16.msrb.mxu0 %v5493_v14  ;;  %1025 = vmatpush.bf16.msrb.mxu3 %v5371_v59 }
 0x133   :  { %1173 = vmatpush.bf16.msra.mxu1 %v5414_v62 }
 0x137   :  { %1174 = vmatpush.bf16.msra.mxu1 %v5420_v9 }
 0x13a   :  { %648 = vmatmul.bf16.gmra.mxu3 %v5454_v55 }
 0x13b   :  { %1175 = vmatpush.bf16.msra.mxu1 %v5428_v18 }
 0x13f   :  { %1176 = vmatpush.bf16.msra.mxu1 %v5437_v32 }
 0x143   :  { %1177 = vmatpush.bf16.msra.mxu1 %v5445_v39 }
 0x147   :  { %1178 = vmatpush.bf16.msra.mxu1 %v5452_v50  ;;  %v576_v30 = vpop.f32.mrf.mxu1 }
 0x148   :  { %v5527_v12 = vpop.f32.mrf.mxu0 }
 0x14a   :  { %913 = vmatmul.bf16.vlgmr.msra.gmra.mxu3 %v5176_v20  ;;  %v5545_v20 = vperm.slane %v5539_v21, 0 }
 0x14b   :  { %1145 = vmatpush.bf16.msra.mxu3 %v5335_v22 }
 0x14d   :  { %v605_v16 = vpop.f32.mrf.mxu2 }
 0x14e   :  { %v606_v61 = vadd.f32 %v605_v16, %v5559_v43 }
 0x14f   :  { %v5531_v17 = vpop.f32.mrf.mxu1  ;;  %1146 = vmatpush.bf16.msra.mxu3 %v5338_v25 }
 0x150   :  { %v5534_v19 = vpop.f32.mrf.mxu0 }
 0x153   :  { %1147 = vmatpush.bf16.msra.mxu3 %v5341_v28 }
 0x155   :  { %v5542_v26 = vpop.f32.mrf.mxu2 }
 0x157   :  { %v581_v29 = vpop.f32.mrf.mxu1  ;;  %1148 = vmatpush.bf16.msra.mxu3 %v5344_v31 }
 0x158   :  { %v5552_v35 = vadd.f32 %v581_v29, %v5545_v20  ;;  %v668_v36 = vpop.f32.mrf.mxu0 }
 0x159   :  { %v5555_v40 = vadd.f32 %v668_v36, %v5548_v27 }
 0x15a   :  { %6467 = vst [vmem:[#allocation21_spill] sm:$0xff] %v5552_v35 }
 0x15b   :  { %6468 = vst [vmem:[#allocation22_spill] sm:$0xff] %v5555_v40  ;;  %1149 = vmatpush.bf16.msra.mxu3 %v5347_v34 }
 0x15d   :  { %v610_v44 = vpop.f32.mrf.mxu2 }
 0x15e   :  { %v5562_v47 = vadd.f32 %v610_v44, %v5559_v43 }
 0x15f   :  { %v5564_v48 = vpop.f32.mrf.mxu1  ;;  %1150 = vmatpush.bf16.msra.mxu3 %v5357_v42 }
 0x160   :  { %6469 = vst [vmem:[#allocation23_spill] sm:$0xff] %v5562_v47  ;;  %v5567_v51 = vpop.f32.mrf.mxu0 }
 0x161   :  { %6470 = vst [vmem:[#allocation24_spill] sm:$0xff] %v5564_v48 }
 0x162   :  { %6471 = vst [vmem:[#allocation25_spill] sm:$0xff] %v5567_v51 }
 0x163   :  { %1151 = vmatpush.bf16.msra.mxu3 %v5364_v49 }
 0x165   :  { %v5570_v52 = vpop.f32.mrf.mxu2 }
 0x166   :  { %6472 = vst [vmem:[#allocation26_spill] sm:$0xff] %v5570_v52 }
 0x167   :  { %v586_v55 = vpop.f32.mrf.mxu1  ;;  %1152 = vmatpush.bf16.msra.mxu3 %v5371_v59 }
 0x168   :  { %v5574_v56 = vadd.f32 %v586_v55, %v5545_v20  ;;  %v673_v41 = vpop.f32.mrf.mxu0 }
 0x169   :  { %v5577_v57 = vadd.f32 %v673_v41, %v5548_v27 }
 0x16a   :  { %6473 = vst [vmem:[#allocation27_spill] sm:$0xff] %v5574_v56 }
 0x16b   :  { %6474 = vst [vmem:[#allocation28_spill] sm:$0xff] %v5577_v57 }
 0x16d   :  { %v615_v0 = vpop.f32.mrf.mxu3 }
 0x16e   :  { %v5581_v2 = vadd.f32 %v615_v0, %v5559_v43  ;;  %v901_v3 = vpop.f32.mrf.mxu2 }
 0x16f   :  { %v932_v5 = vadd.f32 %v901_v3, %v606_v61  ;;  %v5583_v60 = vpop.f32.mrf.mxu1 }
 0x170   :  { %6475 = vst [vmem:[#allocation29_spill] sm:$0xff] %v5581_v2  ;;  %v5585_v7 = vpop.f32.mrf.mxu0 }
 0x171   :  { %6476 = vst [vmem:[#allocation30_spill] sm:$0xff] %v5583_v60  ;;  %v4106_v13 = vmul.f32 -1.442695, %v932_v5  ;;  %v577_v5 = vadd.f32 %v576_v30, %v5545_v20  ;;  %v664_v30 = vadd.f32 %v5527_v12, %v5548_v27 }
 0x172   :  { %6477 = vst [vmem:[#allocation31_spill] sm:$0xff] %v5585_v7 }
 0x173   :  { %4733 = vpow2.f32 %v4106_v13 }
 0x175   :  { %v5587_v10 = vpop.f32.mrf.mxu3 }
 0x176   :  { %6478 = vst [vmem:[#allocation32_spill] sm:$0xff] %v5587_v10  ;;  %v903_v29 = vpop.f32.mrf.mxu2 }
 0x177   :  { %v591_v36 = vpop.f32.mrf.mxu1 }
 0x178   :  { %v5590_v44 = vadd.f32 %v591_v36, %v5545_v20  ;;  %v678_v55 = vpop.f32.mrf.mxu0 }
 0x179   :  { %v5593_v16 = vadd.f32 %v678_v55, %v5548_v27  ;;  %v4734_v3 = vpop.eup %4733 }
 0x17a   :  { %6479 = vst [vmem:[#allocation33_spill] sm:$0xff] %v5590_v44  ;;  %v945_v7 = vadd.f32 1.0, %v4734_v3 }
 0x17b   :  { %6480 = vst [vmem:[#allocation34_spill] sm:$0xff] %v5593_v16 }
 0x17c   :  { %4735 = vrcp.f32 %v945_v7  ;;  %vm967_vm1 = vweird.f32 %v945_v7 }
 0x17d   :  { %v620_v41 = vpop.f32.mrf.mxu3 }
 0x17e   :  { %v5596_v61 = vadd.f32 %v620_v41, %v5559_v43 }
 0x17f   :  { %v5598_v0 = vpop.f32.mrf.mxu1 }
 0x180   :  { %6481 = vst [vmem:[#allocation35_spill] sm:$0xff] %v5596_v61 }
 0x181   :  { %6482 = vst [vmem:[#allocation36_spill] sm:$0xff] %v5598_v0 }
 0x182   :  { %v4736_v55 = vpop.eup %4735 }
 0x183   :  { %v963_v60 = vmul.f32 %v4736_v55, %v945_v7  ;;  %vm968_vm0 = vweird.f32 %v4736_v55 }
 0x184   :  { %vm969_vm2 = vmor %vm967_vm1, %vm968_vm0 }
 0x185   :  { %v5600_v10 = vpop.f32.mrf.mxu3  ;;  %v964_v61 = vsub.f32 1.0, %v963_v60  ;;  %v971_v60 = vand.u32 2147483647, %v945_v7 }
 0x186   :  { %6483 = vst [vmem:[#allocation37_spill] sm:$0xff] %v5600_v10 }
 0x187   :  { %v888_v29 = vpop.f32.mrf.mxu1  ;;  %v965_v2 = vmul.f32 %v4736_v55, %v964_v61  ;;  %vm972_vm5 = vcmp.eq.f32.partialorder %v971_v60, 8.507059e+37 }
 0x188   :  { %v931_v36 = vadd.f32 %v888_v29, %v577_v5 }
 0x189   :  { %v966_v29 = vadd.f32 %v4736_v55, %v965_v2 }
 0x18a   :  { %v4105_v44 = vmul.f32 -1.442695, %v931_v36  ;;  %v973_v36 = vand.u32 2147483648, %v945_v7 }
 0x18c   :  { %4737 = vpow2.f32 %v4105_v44  ;;  %v5608_v44 = vperm.slane %v5539_v21, 2  ;;  %v974_v21 = vor.u32 1.1754944e-38, %v973_v36 }
 0x18d   :  { %v634_v16 = vpop.f32.mrf.mxu3 }
 0x18f   :  { %v890_v13 = vpop.f32.mrf.mxu1 }
 0x192   :  { %v4738_v57 = vpop.eup %4737 }
 0x193   :  { %v944_v41 = vadd.f32 1.0, %v4738_v57 }
 0x195   :  { %4739 = vrcp.f32 %v944_v41  ;;  %v5603_v0 = vpop.f32.mrf.mxu3  ;;  %v958_v61 = vand.u32 2147483648, %v944_v41  ;;  %vm952_vm4 = vweird.f32 %v944_v41 }
 0x197   :  { %v927_v3 = vpop.f32.mrf.mxu1  ;;  %v959_v2 = vor.u32 1.1754944e-38, %v958_v61 }
 0x198   :  { %v934_v56 = vadd.f32 %v927_v3, %v664_v30  ;;  %v956_v3 = vand.u32 2147483647, %v944_v41  ;;  %v970_v30 = vsel %vm969_vm2, %v4736_v55, %v966_v29 }
 0x199   :  { %v975_v40 = vsel %vm972_vm5, %v974_v21, %v970_v30 }
 0x19a   :  { %4741 = vtanh.f32 %v934_v56  ;;  %vm957_vm7 = vcmp.eq.f32.partialorder %v956_v3, 8.507059e+37  ;;  %v993_v35 = vmul.f32 0.0, %v975_v40 }
 0x19b   :  { %v4740_v10 = vpop.eup %4739 }
 0x19c   :  { %v948_v5 = vmul.f32 %v4740_v10, %v944_v41  ;;  %vm953_vm3 = vweird.f32 %v4740_v10 }
 0x19d   :  { %v639_v13 = vpop.f32.mrf.mxu3  ;;  %vm954_vm6 = vmor %vm952_vm4, %vm953_vm3 }
 0x19e   :  { %v949_v57 = vsub.f32 1.0, %v948_v5  ;;  %v5611_v51 = vadd.f32 %v639_v13, %v5608_v44 }
 0x19f   :  { %v929_v12 = vpop.f32.mrf.mxu1 }
 0x1a0   :  { %v950_v52 = vmul.f32 %v4740_v10, %v949_v57  ;;  %v4742_v7 = vpop.eup %4741 }
 0x1a2   :  { %v951_v48 = vadd.f32 %v4740_v10, %v950_v52 }
 0x1a4   :  { %v955_v5 = vsel %vm954_vm6, %v4740_v10, %v951_v48  ;;  %v635_v10 = vadd.f32 %v634_v16, %v5608_v44 }
 0x1a5   :  { %v960_v13 = vsel %vm957_vm7, %v959_v2, %v955_v5  ;;  %v5613_v47 = vpop.f32.mrf.mxu3 }
 0x1a6   :  { %v994_v56 = vmul.f32 %v4742_v7, %v960_v13 }
 0x1a8   :  { %v5615_v12 = vadd.f32 %v994_v56, %v993_v35 }
 0x1ad   :  { %v644_v57 = vpop.f32.mrf.mxu3 }
 0x1ae   :  { %v5618_v55 = vadd.f32 %v644_v57, %v5608_v44 }
 0x1b0   :  { %6484 = vst [vmem:[#allocation38_spill] sm:$0xff] %v5618_v55 }
 0x1b5   :  { %v5620_v52 = vpop.f32.mrf.mxu3 }
 0x1b6   :  { %6485 = vst [vmem:[#allocation39_spill] sm:$0xff] %v5620_v52 }
 0x1bd   :  { %v649_v41 = vpop.f32.mrf.mxu3 }
 0x1be   :  { %v5623_v29 = vadd.f32 %v649_v41, %v5608_v44 }
 0x1c0   :  { %6486 = vst [vmem:[#allocation40_spill] sm:$0xff] %v5623_v29 }
 0x1c5   :  { %v5625_v48 = vpop.f32.mrf.mxu3 }
 0x1c6   :  { %6487 = vst [vmem:[#allocation41_spill] sm:$0xff] %v5625_v48 }
 0x1cd   :  { %v914_v36 = vpop.f32.mrf.mxu3 }
 0x1ce   :  { %v933_v60 = vadd.f32 %v914_v36, %v635_v10 }
 0x1d0   :  { %v4107_v40 = vmul.f32 -1.442695, %v933_v60 }
 0x1d2   :  { %4743 = vpow2.f32 %v4107_v40  ;;  %v5661_v40 = vpop.f32.mrf.mxu0 }
 0x1d3   :  { %6488 = vst [vmem:[#allocation42_spill] sm:$0xff] %v5661_v40 }
 0x1d5   :  { %v916_v35 = vpop.f32.mrf.mxu3 }
 0x1d6   :  { %v637_v35 = vadd.f32 %v5603_v0, %v5608_v44 }
 0x1d8   :  { %v4744_v61 = vpop.eup %4743 }
 0x1d9   :  { %v946_v3 = vadd.f32 1.0, %v4744_v61 }
 0x1db   :  { %4745 = vrcp.f32 %v946_v3  ;;  %v988_v5 = vand.u32 2147483648, %v946_v3  ;;  %v986_v13 = vand.u32 2147483647, %v946_v3  ;;  %vm982_vm9 = vweird.f32 %v946_v3 }
 0x1dc   :  { %4747 = vtanh.f32 %v5615_v12 }
 0x1dd   :  { %v989_v16 = vor.u32 1.1754944e-38, %v988_v5  ;;  %vm987_vm11 = vcmp.eq.f32.partialorder %v986_v13, 8.507059e+37  ;;  %v608_v5 = vadd.f32 %v5542_v26, %v5559_v43 }
 0x1e1   :  { %v4746_v30 = vpop.eup %4745 }
 0x1e2   :  { %v978_v21 = vmul.f32 %v4746_v30, %v946_v3  ;;  %vm983_vm8 = vweird.f32 %v4746_v30  ;;  %v4748_v41 = vpop.eup %4747 }
 0x1e3   :  { %vm984_vm10 = vmor %vm982_vm9, %vm983_vm8 }
 0x1e4   :  { %v979_v2 = vsub.f32 1.0, %v978_v21 }
 0x1e6   :  { %v980_v7 = vmul.f32 %v4746_v30, %v979_v2  ;;  %v579_v2 = vadd.f32 %v5531_v17, %v5545_v20 }
 0x1e8   :  { %v981_v56 = vadd.f32 %v4746_v30, %v980_v7 }
 0x1ea   :  { %v985_v57 = vsel %vm984_vm10, %v4746_v30, %v981_v56 }
 0x1eb   :  { %v990_v10 = vsel %vm987_vm11, %v989_v16, %v985_v57 }
 0x1ec   :  { %v997_v36 = vmul.f32 %v4748_v41, %v990_v10 }
 0x1ee   :  { %v998_v60 = vpack.c.bf16 %v997_v36, %v997_v36 }
 0x1f0   :  { %999 = vst [vmem:[#allocation3] sm:$0xf] %v998_v60  ;;  %1013 = vmatmul.bf16.vlgmr.msra.gmra.mxu2 %v998_v60  ;;  %1026 = vmatmul.bf16.vlgmr.msrb.gmra.mxu3 %v998_v60 }
 0x1f1   :  { %1039 = vmatmul.bf16.vlgmr.msra.gmra.mxu0 %v998_v60  ;;  %1052 = vmatmul.bf16.vlgmr.msrb.gmra.mxu1 %v998_v60 }
 0x1f2   :  { %1259 = vmatpush.bf16.msra.mxu2 %v5350_v38  ;;  %1272 = vmatpush.bf16.msrb.mxu3 %v5335_v22 }
 0x1f3   :  { %1285 = vmatpush.bf16.msra.mxu0 %v5432_v23  ;;  %1298 = vmatpush.bf16.msrb.mxu1 %v5406_v46 }
 0x1f6   :  { %1260 = vmatpush.bf16.msra.mxu2 %v5360_v45  ;;  %1273 = vmatpush.bf16.msrb.mxu3 %v5338_v25 }
 0x1f7   :  { %1286 = vmatpush.bf16.msra.mxu0 %v5439_v33  ;;  %1299 = vmatpush.bf16.msrb.mxu1 %v5410_v53 }
 0x1fa   :  { %1261 = vmatpush.bf16.msra.mxu2 %v5369_v54  ;;  %1274 = vmatpush.bf16.msrb.mxu3 %v5341_v28 }
 0x1fb   :  { %1287 = vmatpush.bf16.msra.mxu0 %v5461_v58  ;;  %1300 = vmatpush.bf16.msrb.mxu1 %v5414_v62 }
 0x1fe   :  { %1262 = vmatpush.bf16.msra.mxu2 %v5377_v1  ;;  %1275 = vmatpush.bf16.msrb.mxu3 %v5344_v31 }
 0x1ff   :  { %1288 = vmatpush.bf16.msra.mxu0 %v5465_v63  ;;  %1301 = vmatpush.bf16.msrb.mxu1 %v5420_v9 }
 0x202   :  { %1263 = vmatpush.bf16.msra.mxu2 %v5384_v8  ;;  %1276 = vmatpush.bf16.msrb.mxu3 %v5347_v34 }
 0x203   :  { %1289 = vmatpush.bf16.msra.mxu0 %v5475_v4  ;;  %1302 = vmatpush.bf16.msrb.mxu1 %v5428_v18 }
 0x206   :  { %1264 = vmatpush.bf16.msra.mxu2 %v5387_v15  ;;  %1277 = vmatpush.bf16.msrb.mxu3 %v5357_v42 }
 0x207   :  { %1290 = vmatpush.bf16.msra.mxu0 %v5479_v6  ;;  %1303 = vmatpush.bf16.msrb.mxu1 %v5437_v32 }
 0x20a   :  { %1265 = vmatpush.bf16.msra.mxu2 %v5394_v24  ;;  %1278 = vmatpush.bf16.msrb.mxu3 %v5364_v49 }
 0x20b   :  { %1291 = vmatpush.bf16.msra.mxu0 %v5489_v11  ;;  %1304 = vmatpush.bf16.msrb.mxu1 %v5445_v39 }
 0x20e   :  { %1266 = vmatpush.bf16.msra.mxu2 %v5400_v37  ;;  %1279 = vmatpush.bf16.msrb.mxu3 %v5371_v59 }
 0x20f   :  { %1292 = vmatpush.bf16.msra.mxu0 %v5493_v14  ;;  %1305 = vmatpush.bf16.msrb.mxu1 %v5452_v50 }
 0x26e   :  { %v1040_v61 = vpop.f32.mrf.mxu0  ;;  %v1053_v3 = vpop.f32.mrf.mxu1 }
 0x26f   :  { %v1059_v30 = vadd.f32 %v1040_v61, %v637_v35 }
 0x271   :  { %v4110_v21 = vmul.f32 -1.442695, %v1059_v30 }
 0x273   :  { %4749 = vpow2.f32 %v4110_v21  ;;  %v1014_v7 = vpop.f32.mrf.mxu2  ;;  %v1027_v13 = vpop.f32.mrf.mxu3  ;;  %v666_v21 = vadd.f32 %v5534_v19, %v5548_v27 }
 0x274   :  { %v1057_v56 = vadd.f32 %v1014_v7, %v579_v2  ;;  %v1058_v16 = vadd.f32 %v1027_v13, %v608_v5 }
 0x275   :  { %v1060_v7 = vadd.f32 %v1053_v3, %v666_v21 }
 0x276   :  { %v4108_v57 = vmul.f32 -1.442695, %v1057_v56  ;;  %v4109_v41 = vmul.f32 -1.442695, %v1058_v16  ;;  %v1042_v10 = vpop.f32.mrf.mxu0  ;;  %v1055_v36 = vpop.f32.mrf.mxu1 }
 0x278   :  { %4751 = vpow2.f32 %v4108_v57 }
 0x279   :  { %v4750_v0 = vpop.eup %4749  ;;  %4753 = vpow2.f32 %v4109_v41 }
 0x27a   :  { %v1072_v61 = vadd.f32 1.0, %v4750_v0 }
 0x27b   :  { %v1016_v60 = vpop.f32.mrf.mxu2  ;;  %v1029_v35 = vpop.f32.mrf.mxu3 }
 0x27c   :  { %4755 = vrcp.f32 %v1072_v61  ;;  %vm1108_vm5 = vweird.f32 %v1072_v61 }
 0x27e   :  { %v4752_v30 = vpop.eup %4751 }
 0x27f   :  { %v4754_v17 = vpop.eup %4753  ;;  %v1070_v40 = vadd.f32 1.0, %v4752_v30 }
 0x280   :  { %v1071_v26 = vadd.f32 1.0, %v4754_v17 }
 0x281   :  { %4757 = vrcp.f32 %v1070_v40  ;;  %v1084_v10 = vand.u32 2147483648, %v1070_v40  ;;  %v1082_v60 = vand.u32 2147483647, %v1070_v40  ;;  %vm1078_vm14 = vweird.f32 %v1070_v40 }
 0x282   :  { %4759 = vrcp.f32 %v1071_v26  ;;  %v4756_v2 = vpop.eup %4755  ;;  %v1099_v35 = vand.u32 2147483648, %v1071_v26  ;;  %v1097_v17 = vand.u32 2147483647, %v1071_v26  ;;  %vm1093_vm0 = vweird.f32 %v1071_v26 }
 0x283   :  { %v1104_v57 = vmul.f32 %v4756_v2, %v1072_v61  ;;  %4761 = vtanh.f32 %v1060_v7  ;;  %v1085_v3 = vor.u32 1.1754944e-38, %v1084_v10  ;;  %vm1083_vm1 = vcmp.eq.f32.partialorder %v1082_v60, 8.507059e+37 }
 0x284   :  { %v1100_v7 = vor.u32 1.1754944e-38, %v1099_v35  ;;  %vm1098_vm3 = vcmp.eq.f32.partialorder %v1097_v17, 8.507059e+37  ;;  %vm1109_vm4 = vweird.f32 %v4756_v2  ;;  %v1114_v10 = vand.u32 2147483648, %v1072_v61  ;;  %v6489_v35 = vld [vmem:[#allocation21_spill] sm:$0xff]  ;;  %v6490_v17 = vld [vmem:[#allocation23_spill] sm:$0xff] }
 0x285   :  { %v1105_v48 = vsub.f32 1.0, %v1104_v57  ;;  %vm1110_vm6 = vmor %vm1108_vm5, %vm1109_vm4 }
 0x287   :  { %v4758_v5 = vpop.eup %4757  ;;  %v1106_v52 = vmul.f32 %v4756_v2, %v1105_v48 }
 0x288   :  { %v4760_v13 = vpop.eup %4759  ;;  %v1074_v56 = vmul.f32 %v4758_v5, %v1070_v40  ;;  %vm1079_vm12 = vweird.f32 %v4758_v5 }
 0x289   :  { %v1089_v16 = vmul.f32 %v4760_v13, %v1071_v26  ;;  %vm1094_vm13 = vweird.f32 %v4760_v13  ;;  %vm1080_vm15 = vmor %vm1078_vm14, %vm1079_vm12  ;;  %v1107_v40 = vadd.f32 %v4756_v2, %v1106_v52  ;;  %v1112_v26 = vand.u32 2147483647, %v1072_v61 }
 0x28a   :  { %v1075_v41 = vsub.f32 1.0, %v1074_v56  ;;  %vm1095_vm2 = vmor %vm1093_vm0, %vm1094_vm13  ;;  %v4762_v56 = vpop.eup %4761 }
 0x28b   :  { %v1090_v36 = vsub.f32 1.0, %v1089_v16  ;;  %vm1113_vm7 = vcmp.eq.f32.partialorder %v1112_v26, 8.507059e+37 }
 0x28c   :  { %v1076_v0 = vmul.f32 %v4758_v5, %v1075_v41 }
 0x28d   :  { %v1091_v30 = vmul.f32 %v4760_v13, %v1090_v36 }
 0x28e   :  { %v1077_v19 = vadd.f32 %v4758_v5, %v1076_v0  ;;  %v1115_v0 = vor.u32 1.1754944e-38, %v1114_v10 }
 0x28f   :  { %v1092_v21 = vadd.f32 %v4760_v13, %v1091_v30 }
 0x290   :  { %v1081_v29 = vsel %vm1080_vm15, %v4758_v5, %v1077_v19  ;;  %v1111_v5 = vsel %vm1110_vm6, %v4756_v2, %v1107_v40 }
 0x291   :  { %v1086_v16 = vsel %vm1083_vm1, %v1085_v3, %v1081_v29  ;;  %v1096_v41 = vsel %vm1095_vm2, %v4760_v13, %v1092_v21  ;;  %v1116_v13 = vsel %vm1113_vm7, %v1115_v0, %v1111_v5 }
 0x292   :  { %v1120_v55 = vmul.f32 %v4762_v56, %v1086_v16  ;;  %v1101_v36 = vsel %vm1098_vm3, %v1100_v7, %v1096_v41 }
 0x293   :  { %v1119_v27 = vmul.f32 %v1101_v36, %v5615_v12 }
 0x295   :  { %v5672_v57 = vadd.f32 %v1120_v55, %v1119_v27 }
 0x297   :  { %4763 = vtanh.f32 %v5672_v57 }
 0x29d   :  { %v4764_v29 = vpop.eup %4763 }
 0x29e   :  { %v1123_v48 = vmul.f32 %v4764_v29, %v1116_v13  ;;  %v6491_v13 = vld [vmem:[#allocation22_spill] sm:$0xff] }
 0x2a0   :  { %v1124_v60 = vpack.c.bf16 %v1123_v48, %v1123_v48 }
 0x2a2   :  { %1126 = vst [vmem:[#allocation3 + $0x4] sm:$0xf] %v1124_v60  ;;  %1140 = vmatmul.bf16.vlgmr.msrb.gmra.mxu2 %v1124_v60  ;;  %1153 = vmatmul.bf16.vlgmr.msra.gmra.mxu3 %v1124_v60 }
 0x2a3   :  { %1166 = vmatmul.bf16.vlgmr.msrb.gmra.mxu0 %v1124_v60  ;;  %1179 = vmatmul.bf16.vlgmr.msra.gmra.mxu1 %v1124_v60 }
 0x2a4   :  { %1386 = vmatpush.bf16.msrb.mxu2 %v5350_v38  ;;  %1399 = vmatpush.bf16.msra.mxu3 %v5335_v22 }
 0x2a5   :  { %1412 = vmatpush.bf16.msrb.mxu0 %v5432_v23  ;;  %1425 = vmatpush.bf16.msra.mxu1 %v5406_v46 }
 0x2a8   :  { %1387 = vmatpush.bf16.msrb.mxu2 %v5360_v45  ;;  %1400 = vmatpush.bf16.msra.mxu3 %v5338_v25 }
 0x2a9   :  { %1413 = vmatpush.bf16.msrb.mxu0 %v5439_v33  ;;  %1426 = vmatpush.bf16.msra.mxu1 %v5410_v53 }
 0x2ac   :  { %1388 = vmatpush.bf16.msrb.mxu2 %v5369_v54  ;;  %1401 = vmatpush.bf16.msra.mxu3 %v5341_v28 }
 0x2ad   :  { %1414 = vmatpush.bf16.msrb.mxu0 %v5461_v58  ;;  %1427 = vmatpush.bf16.msra.mxu1 %v5414_v62 }
 0x2b0   :  { %1389 = vmatpush.bf16.msrb.mxu2 %v5377_v1  ;;  %1402 = vmatpush.bf16.msra.mxu3 %v5344_v31 }
 0x2b1   :  { %1415 = vmatpush.bf16.msrb.mxu0 %v5465_v63  ;;  %1428 = vmatpush.bf16.msra.mxu1 %v5420_v9 }
 0x2b4   :  { %1390 = vmatpush.bf16.msrb.mxu2 %v5384_v8  ;;  %1403 = vmatpush.bf16.msra.mxu3 %v5347_v34 }
 0x2b5   :  { %1416 = vmatpush.bf16.msrb.mxu0 %v5475_v4  ;;  %1429 = vmatpush.bf16.msra.mxu1 %v5428_v18 }
 0x2b8   :  { %1391 = vmatpush.bf16.msrb.mxu2 %v5387_v15  ;;  %1404 = vmatpush.bf16.msra.mxu3 %v5357_v42 }
 0x2b9   :  { %1417 = vmatpush.bf16.msrb.mxu0 %v5479_v6  ;;  %1430 = vmatpush.bf16.msra.mxu1 %v5437_v32 }
 0x2bc   :  { %1392 = vmatpush.bf16.msrb.mxu2 %v5394_v24  ;;  %1405 = vmatpush.bf16.msra.mxu3 %v5364_v49 }
 0x2bd   :  { %1418 = vmatpush.bf16.msrb.mxu0 %v5489_v11  ;;  %1431 = vmatpush.bf16.msra.mxu1 %v5445_v39 }
 0x2c0   :  { %1393 = vmatpush.bf16.msrb.mxu2 %v5400_v37  ;;  %1406 = vmatpush.bf16.msra.mxu3 %v5371_v59 }
 0x2c1   :  { %1419 = vmatpush.bf16.msrb.mxu0 %v5493_v14  ;;  %1432 = vmatpush.bf16.msra.mxu1 %v5452_v50 }
 0x320   :  { %v1167_v27 = vpop.f32.mrf.mxu0  ;;  %v1180_v12 = vpop.f32.mrf.mxu1 }
 0x321   :  { %v1186_v55 = vadd.f32 %v1167_v27, %v5611_v51  ;;  %v1187_v48 = vadd.f32 %v1180_v12, %v6491_v13 }
 0x323   :  { %v4113_v52 = vmul.f32 -1.442695, %v1186_v55 }
 0x325   :  { %4765 = vpow2.f32 %v4113_v52  ;;  %v1141_v61 = vpop.f32.mrf.mxu2  ;;  %v1154_v2 = vpop.f32.mrf.mxu3 }
 0x326   :  { %v1184_v30 = vadd.f32 %v1141_v61, %v6489_v35  ;;  %v1185_v19 = vadd.f32 %v1154_v2, %v6490_v17 }
 0x328   :  { %v4111_v3 = vmul.f32 -1.442695, %v1184_v30  ;;  %v4112_v21 = vmul.f32 -1.442695, %v1185_v19  ;;  %v1169_v7 = vpop.f32.mrf.mxu0  ;;  %v1182_v56 = vpop.f32.mrf.mxu1 }
 0x32a   :  { %4767 = vpow2.f32 %v4111_v3 }
 0x32b   :  { %v4766_v16 = vpop.eup %4765  ;;  %4769 = vpow2.f32 %v4112_v21 }
 0x32c   :  { %v1199_v40 = vadd.f32 1.0, %v4766_v16 }
 0x32d   :  { %v1143_v41 = vpop.f32.mrf.mxu2  ;;  %v1156_v36 = vpop.f32.mrf.mxu3 }
 0x32e   :  { %4771 = vrcp.f32 %v1199_v40  ;;  %vm1235_vm1 = vweird.f32 %v1199_v40 }
 0x330   :  { %v4768_v10 = vpop.eup %4767 }
 0x331   :  { %v4770_v51 = vpop.eup %4769  ;;  %v1197_v26 = vadd.f32 1.0, %v4768_v10 }
 0x332   :  { %v1198_v5 = vadd.f32 1.0, %v4770_v51 }
 0x333   :  { %4773 = vrcp.f32 %v1197_v26  ;;  %v1211_v2 = vand.u32 2147483648, %v1197_v26  ;;  %v1209_v17 = vand.u32 2147483647, %v1197_v26  ;;  %vm1205_vm10 = vweird.f32 %v1197_v26 }
 0x334   :  { %4775 = vrcp.f32 %v1198_v5  ;;  %v4772_v0 = vpop.eup %4771  ;;  %v1226_v19 = vand.u32 2147483648, %v1198_v5  ;;  %v1224_v21 = vand.u32 2147483647, %v1198_v5  ;;  %vm1220_vm12 = vweird.f32 %v1198_v5 }
 0x335   :  { %v1231_v52 = vmul.f32 %v4772_v0, %v1199_v40  ;;  %4777 = vtanh.f32 %v1187_v48  ;;  %v1212_v12 = vor.u32 1.1754944e-38, %v1211_v2  ;;  %vm1210_vm13 = vcmp.eq.f32.partialorder %v1209_v17, 8.507059e+37 }
 0x336   :  { %v1227_v36 = vor.u32 1.1754944e-38, %v1226_v19  ;;  %vm1225_vm15 = vcmp.eq.f32.partialorder %v1224_v21, 8.507059e+37  ;;  %vm1236_vm0 = vweird.f32 %v4772_v0  ;;  %v1241_v2 = vand.u32 2147483648, %v1199_v40 }
 0x337   :  { %v1232_v7 = vsub.f32 1.0, %v1231_v52  ;;  %vm1237_vm2 = vmor %vm1235_vm1, %vm1236_vm0 }
 0x339   :  { %v4774_v29 = vpop.eup %4773  ;;  %v1233_v48 = vmul.f32 %v4772_v0, %v1232_v7  ;;  %v6492_v7 = vld [vmem:[#allocation24_spill] sm:$0xff] }
 0x33a   :  { %v4776_v60 = vpop.eup %4775  ;;  %v1201_v27 = vmul.f32 %v4774_v29, %v1197_v26  ;;  %vm1206_vm8 = vweird.f32 %v4774_v29 }
 0x33b   :  { %v1216_v55 = vmul.f32 %v4776_v60, %v1198_v5  ;;  %vm1221_vm9 = vweird.f32 %v4776_v60  ;;  %vm1207_vm11 = vmor %vm1205_vm10, %vm1206_vm8  ;;  %v4778_v10 = vpop.eup %4777  ;;  %v1234_v26 = vadd.f32 %v4772_v0, %v1233_v48  ;;  %v1239_v5 = vand.u32 2147483647, %v1199_v40 }
 0x33c   :  { %v1202_v61 = vsub.f32 1.0, %v1201_v27  ;;  %vm1222_vm14 = vmor %vm1220_vm12, %vm1221_vm9 }
 0x33d   :  { %v1217_v35 = vsub.f32 1.0, %v1216_v55  ;;  %vm1240_vm3 = vcmp.eq.f32.partialorder %v1239_v5, 8.507059e+37 }
 0x33e   :  { %v1203_v30 = vmul.f32 %v4774_v29, %v1202_v61 }
 0x33f   :  { %v1218_v3 = vmul.f32 %v4776_v60, %v1217_v35  ;;  %v1242_v35 = vor.u32 1.1754944e-38, %v1241_v2 }
 0x340   :  { %v1204_v56 = vadd.f32 %v4774_v29, %v1203_v30 }
 0x341   :  { %v1219_v16 = vadd.f32 %v4776_v60, %v1218_v3 }
 0x342   :  { %v1208_v41 = vsel %vm1207_vm11, %v4774_v29, %v1204_v56  ;;  %v1238_v29 = vsel %vm1237_vm2, %v4772_v0, %v1234_v26  ;;  %v584_v56 = vadd.f32 %v6492_v7, %v5545_v20 }
 0x343   :  { %v1213_v51 = vsel %vm1210_vm13, %v1212_v12, %v1208_v41  ;;  %v1223_v13 = vsel %vm1222_vm14, %v4776_v60, %v1219_v16  ;;  %v1243_v30 = vsel %vm1240_vm3, %v1242_v35, %v1238_v29  ;;  %v6493_v12 = vld [vmem:[#allocation26_spill] sm:$0xff] }
 0x344   :  { %v1247_v27 = vmul.f32 %v4778_v10, %v1213_v51  ;;  %v1228_v55 = vsel %vm1225_vm15, %v1227_v36, %v1223_v13  ;;  %v613_v16 = vadd.f32 %v6493_v12, %v5559_v43 }
 0x345   :  { %v1246_v61 = vmul.f32 %v1228_v55, %v5672_v57  ;;  %v642_v57 = vadd.f32 %v5613_v47, %v5608_v44 }
 0x347   :  { %v5712_v52 = vadd.f32 %v1247_v27, %v1246_v61 }
 0x349   :  { %4779 = vtanh.f32 %v5712_v52 }
 0x34f   :  { %v4780_v60 = vpop.eup %4779 }
 0x350   :  { %v1250_v17 = vmul.f32 %v4780_v60, %v1243_v30  ;;  %v6494_v30 = vld [vmem:[#allocation20_spill] sm:$0xff] }
 0x352   :  { %v1251_v19 = vpack.c.bf16 %v1250_v17, %v1250_v17  ;;  %v6495_v17 = vld [vmem:[#allocation25_spill] sm:$0xff] }
 0x354   :  { %1253 = vst [vmem:[#allocation3 + $0x8] sm:$0xf] %v1251_v19  ;;  %1267 = vmatmul.bf16.vlgmr.msra.gmra.mxu2 %v1251_v19  ;;  %1280 = vmatmul.bf16.vlgmr.msrb.gmra.mxu3 %v1251_v19 }
 0x355   :  { %1293 = vmatmul.bf16.vlgmr.msra.gmra.mxu0 %v1251_v19  ;;  %1306 = vmatmul.bf16.vlgmr.msrb.gmra.mxu1 %v1251_v19  ;;  %v671_v19 = vadd.f32 %v6495_v17, %v6494_v30 }
 0x356   :  { %1513 = vmatpush.bf16.msra.mxu2 %v5350_v38  ;;  %1526 = vmatpush.bf16.msrb.mxu3 %v5335_v22 }
 0x357   :  { %1539 = vmatpush.bf16.msra.mxu0 %v5432_v23  ;;  %1552 = vmatpush.bf16.msrb.mxu1 %v5406_v46 }
 0x35a   :  { %1514 = vmatpush.bf16.msra.mxu2 %v5360_v45  ;;  %1527 = vmatpush.bf16.msrb.mxu3 %v5338_v25 }
 0x35b   :  { %1540 = vmatpush.bf16.msra.mxu0 %v5439_v33  ;;  %1553 = vmatpush.bf16.msrb.mxu1 %v5410_v53 }
 0x35e   :  { %1515 = vmatpush.bf16.msra.mxu2 %v5369_v54  ;;  %1528 = vmatpush.bf16.msrb.mxu3 %v5341_v28 }
 0x35f   :  { %1541 = vmatpush.bf16.msra.mxu0 %v5461_v58  ;;  %1554 = vmatpush.bf16.msrb.mxu1 %v5414_v62 }
 0x362   :  { %1516 = vmatpush.bf16.msra.mxu2 %v5377_v1  ;;  %1529 = vmatpush.bf16.msrb.mxu3 %v5344_v31 }
 0x363   :  { %1542 = vmatpush.bf16.msra.mxu0 %v5465_v63  ;;  %1555 = vmatpush.bf16.msrb.mxu1 %v5420_v9 }
 0x366   :  { %1517 = vmatpush.bf16.msra.mxu2 %v5384_v8  ;;  %1530 = vmatpush.bf16.msrb.mxu3 %v5347_v34 }
 0x367   :  { %1543 = vmatpush.bf16.msra.mxu0 %v5475_v4  ;;  %1556 = vmatpush.bf16.msrb.mxu1 %v5428_v18 }
 0x36a   :  { %1518 = vmatpush.bf16.msra.mxu2 %v5387_v15  ;;  %1531 = vmatpush.bf16.msrb.mxu3 %v5357_v42 }
 0x36b   :  { %1544 = vmatpush.bf16.msra.mxu0 %v5479_v6  ;;  %1557 = vmatpush.bf16.msrb.mxu1 %v5437_v32 }
 0x36e   :  { %1519 = vmatpush.bf16.msra.mxu2 %v5394_v24  ;;  %1532 = vmatpush.bf16.msrb.mxu3 %v5364_v49 }
 0x36f   :  { %1545 = vmatpush.bf16.msra.mxu0 %v5489_v11  ;;  %1558 = vmatpush.bf16.msrb.mxu1 %v5445_v39 }
 0x372   :  { %1520 = vmatpush.bf16.msra.mxu2 %v5400_v37  ;;  %1533 = vmatpush.bf16.msrb.mxu3 %v5371_v59 }
 0x373   :  { %1546 = vmatpush.bf16.msra.mxu0 %v5493_v14  ;;  %1559 = vmatpush.bf16.msrb.mxu1 %v5452_v50 }
 0x3d2   :  { %v1294_v40 = vpop.f32.mrf.mxu0  ;;  %v1307_v0 = vpop.f32.mrf.mxu1 }
 0x3d3   :  { %v1313_v3 = vadd.f32 %v1294_v40, %v642_v57 }
 0x3d5   :  { %v4116_v21 = vmul.f32 -1.442695, %v1313_v3  ;;  %v1314_v3 = vadd.f32 %v1307_v0, %v671_v19 }
 0x3d7   :  { %4781 = vpow2.f32 %v4116_v21  ;;  %v1268_v41 = vpop.f32.mrf.mxu2  ;;  %v1281_v36 = vpop.f32.mrf.mxu3 }
 0x3d8   :  { %v1311_v10 = vadd.f32 %v1268_v41, %v584_v56  ;;  %v1312_v51 = vadd.f32 %v1281_v36, %v613_v16 }
 0x3da   :  { %v4114_v13 = vmul.f32 -1.442695, %v1311_v10  ;;  %v4115_v48 = vmul.f32 -1.442695, %v1312_v51  ;;  %v1296_v27 = vpop.f32.mrf.mxu0  ;;  %v1309_v55 = vpop.f32.mrf.mxu1 }
 0x3dc   :  { %4783 = vpow2.f32 %v4114_v13 }
 0x3dd   :  { %v4782_v47 = vpop.eup %4781  ;;  %4785 = vpow2.f32 %v4115_v48 }
 0x3de   :  { %v1326_v2 = vadd.f32 1.0, %v4782_v47 }
 0x3df   :  { %v1270_v61 = vpop.f32.mrf.mxu2  ;;  %v1283_v26 = vpop.f32.mrf.mxu3 }
 0x3e0   :  { %4787 = vrcp.f32 %v1326_v2  ;;  %vm1362_vm13 = vweird.f32 %v1326_v2 }
 0x3e2   :  { %v4784_v5 = vpop.eup %4783 }
 0x3e3   :  { %v4786_v29 = vpop.eup %4785  ;;  %v1324_v35 = vadd.f32 1.0, %v4784_v5 }
 0x3e4   :  { %v1325_v60 = vadd.f32 1.0, %v4786_v29 }
 0x3e5   :  { %4789 = vrcp.f32 %v1324_v35  ;;  %v1338_v41 = vand.u32 2147483648, %v1324_v35  ;;  %v1336_v51 = vand.u32 2147483647, %v1324_v35  ;;  %vm1332_vm6 = vweird.f32 %v1324_v35 }
 0x3e6   :  { %4791 = vrcp.f32 %v1325_v60  ;;  %v4788_v57 = vpop.eup %4787  ;;  %v1353_v13 = vand.u32 2147483648, %v1325_v60  ;;  %v1351_v27 = vand.u32 2147483647, %v1325_v60  ;;  %vm1347_vm8 = vweird.f32 %v1325_v60 }
 0x3e7   :  { %v1358_v12 = vmul.f32 %v4788_v57, %v1326_v2  ;;  %4793 = vtanh.f32 %v1314_v3  ;;  %v1339_v0 = vor.u32 1.1754944e-38, %v1338_v41  ;;  %vm1337_vm9 = vcmp.eq.f32.partialorder %v1336_v51, 8.507059e+37 }
 0x3e8   :  { %v1354_v5 = vor.u32 1.1754944e-38, %v1353_v13  ;;  %vm1352_vm11 = vcmp.eq.f32.partialorder %v1351_v27, 8.507059e+37  ;;  %vm1363_vm12 = vweird.f32 %v4788_v57  ;;  %v1368_v41 = vand.u32 2147483648, %v1326_v2 }
 0x3e9   :  { %v1359_v55 = vsub.f32 1.0, %v1358_v12  ;;  %vm1364_vm14 = vmor %vm1362_vm13, %vm1363_vm12 }
 0x3eb   :  { %v4790_v40 = vpop.eup %4789  ;;  %v1360_v3 = vmul.f32 %v4788_v57, %v1359_v55 }
 0x3ec   :  { %v4792_v21 = vpop.eup %4791  ;;  %v1328_v7 = vmul.f32 %v4790_v40, %v1324_v35  ;;  %vm1333_vm4 = vweird.f32 %v4790_v40 }
 0x3ed   :  { %v1343_v56 = vmul.f32 %v4792_v21, %v1325_v60  ;;  %vm1348_vm5 = vweird.f32 %v4792_v21  ;;  %vm1334_vm7 = vmor %vm1332_vm6, %vm1333_vm4  ;;  %v4794_v29 = vpop.eup %4793  ;;  %v1361_v35 = vadd.f32 %v4788_v57, %v1360_v3  ;;  %v1366_v60 = vand.u32 2147483647, %v1326_v2 }
 0x3ee   :  { %v1329_v16 = vsub.f32 1.0, %v1328_v7  ;;  %vm1349_vm10 = vmor %vm1347_vm8, %vm1348_vm5 }
 0x3ef   :  { %v1344_v36 = vsub.f32 1.0, %v1343_v56  ;;  %vm1367_vm15 = vcmp.eq.f32.partialorder %v1366_v60, 8.507059e+37 }
 0x3f0   :  { %v1330_v10 = vmul.f32 %v4790_v40, %v1329_v16 }
 0x3f1   :  { %v1345_v48 = vmul.f32 %v4792_v21, %v1344_v36  ;;  %v1369_v36 = vor.u32 1.1754944e-38, %v1368_v41 }
 0x3f2   :  { %v1331_v47 = vadd.f32 %v4790_v40, %v1330_v10 }
 0x3f3   :  { %v1346_v61 = vadd.f32 %v4792_v21, %v1345_v48 }
 0x3f4   :  { %v1335_v26 = vsel %vm1334_vm7, %v4790_v40, %v1331_v47  ;;  %v1365_v40 = vsel %vm1364_vm14, %v4788_v57, %v1361_v35  ;;  %v6496_v57 = vld [vmem:[#allocation38_spill] sm:$0xff] }
 0x3f5   :  { %v1340_v17 = vsel %vm1337_vm9, %v1339_v0, %v1335_v26  ;;  %v1350_v19 = vsel %vm1349_vm10, %v4792_v21, %v1346_v61  ;;  %v1370_v10 = vsel %vm1367_vm15, %v1369_v36, %v1365_v40  ;;  %v6497_v0 = vld [vmem:[#allocation27_spill] sm:$0xff]  ;;  %v6498_v26 = vld [vmem:[#allocation29_spill] sm:$0xff] }
 0x3f6   :  { %v1374_v7 = vmul.f32 %v4794_v29, %v1340_v17  ;;  %v1355_v56 = vsel %vm1352_vm11, %v1354_v5, %v1350_v19 }
 0x3f7   :  { %v1373_v16 = vmul.f32 %v1355_v56, %v5712_v52 }
 0x3f9   :  { %v5756_v12 = vadd.f32 %v1374_v7, %v1373_v16 }
 0x3fb   :  { %4795 = vtanh.f32 %v5756_v12 }
 0x401   :  { %v4796_v21 = vpop.eup %4795 }
 0x402   :  { %v1377_v51 = vmul.f32 %v4796_v21, %v1370_v10 }
 0x404   :  { %v1378_v13 = vpack.c.bf16 %v1377_v51, %v1377_v51  ;;  %v6499_v51 = vld [vmem:[#allocation28_spill] sm:$0xff] }
 0x406   :  { %1380 = vst [vmem:[#allocation3 + $0xc] sm:$0xf] %v1378_v13  ;;  %1394 = vmatmul.bf16.vlgmr.msrb.gmra.mxu2 %v1378_v13  ;;  %1407 = vmatmul.bf16.vlgmr.msra.gmra.mxu3 %v1378_v13 }
 0x407   :  { %1420 = vmatmul.bf16.vlgmr.msrb.gmra.mxu0 %v1378_v13  ;;  %1433 = vmatmul.bf16.vlgmr.msra.gmra.mxu1 %v1378_v13 }
 0x408   :  { %1640 = vmatpush.bf16.msrb.mxu2 %v5350_v38  ;;  %1653 = vmatpush.bf16.msra.mxu3 %v5335_v22 }
 0x409   :  { %1666 = vmatpush.bf16.msrb.mxu0 %v5432_v23  ;;  %1679 = vmatpush.bf16.msra.mxu1 %v5406_v46 }
 0x40c   :  { %1641 = vmatpush.bf16.msrb.mxu2 %v5360_v45  ;;  %1654 = vmatpush.bf16.msra.mxu3 %v5338_v25 }
 0x40d   :  { %1667 = vmatpush.bf16.msrb.mxu0 %v5439_v33  ;;  %1680 = vmatpush.bf16.msra.mxu1 %v5410_v53 }
 0x410   :  { %1642 = vmatpush.bf16.msrb.mxu2 %v5369_v54  ;;  %1655 = vmatpush.bf16.msra.mxu3 %v5341_v28 }
 0x411   :  { %1668 = vmatpush.bf16.msrb.mxu0 %v5461_v58  ;;  %1681 = vmatpush.bf16.msra.mxu1 %v5414_v62 }
 0x414   :  { %1643 = vmatpush.bf16.msrb.mxu2 %v5377_v1  ;;  %1656 = vmatpush.bf16.msra.mxu3 %v5344_v31 }
 0x415   :  { %1669 = vmatpush.bf16.msrb.mxu0 %v5465_v63  ;;  %1682 = vmatpush.bf16.msra.mxu1 %v5420_v9 }
 0x418   :  { %1644 = vmatpush.bf16.msrb.mxu2 %v5384_v8  ;;  %1657 = vmatpush.bf16.msra.mxu3 %v5347_v34 }
 0x419   :  { %1670 = vmatpush.bf16.msrb.mxu0 %v5475_v4  ;;  %1683 = vmatpush.bf16.msra.mxu1 %v5428_v18 }
 0x41c   :  { %1645 = vmatpush.bf16.msrb.mxu2 %v5387_v15  ;;  %1658 = vmatpush.bf16.msra.mxu3 %v5357_v42 }
 0x41d   :  { %1671 = vmatpush.bf16.msrb.mxu0 %v5479_v6  ;;  %1684 = vmatpush.bf16.msra.mxu1 %v5437_v32 }
 0x420   :  { %1646 = vmatpush.bf16.msrb.mxu2 %v5394_v24  ;;  %1659 = vmatpush.bf16.msra.mxu3 %v5364_v49 }
 0x421   :  { %1672 = vmatpush.bf16.msrb.mxu0 %v5489_v11  ;;  %1685 = vmatpush.bf16.msra.mxu1 %v5445_v39 }
 0x424   :  { %1647 = vmatpush.bf16.msrb.mxu2 %v5400_v37  ;;  %1660 = vmatpush.bf16.msra.mxu3 %v5371_v59 }
 0x425   :  { %1673 = vmatpush.bf16.msrb.mxu0 %v5493_v14  ;;  %1686 = vmatpush.bf16.msra.mxu1 %v5452_v50 }
 0x484   :  { %v1421_v52 = vpop.f32.mrf.mxu0  ;;  %v1434_v2 = vpop.f32.mrf.mxu1 }
 0x485   :  { %v1440_v48 = vadd.f32 %v1421_v52, %v6496_v57  ;;  %v1441_v13 = vadd.f32 %v1434_v2, %v6499_v51 }
 0x487   :  { %v4119_v27 = vmul.f32 -1.442695, %v1440_v48 }
 0x489   :  { %4797 = vpow2.f32 %v4119_v27  ;;  %v1395_v55 = vpop.f32.mrf.mxu2  ;;  %v1408_v47 = vpop.f32.mrf.mxu3 }
 0x48a   :  { %v1438_v61 = vadd.f32 %v1395_v55, %v6497_v0  ;;  %v1439_v5 = vadd.f32 %v1408_v47, %v6498_v26 }
 0x48c   :  { %v4117_v29 = vmul.f32 -1.442695, %v1438_v61  ;;  %v4118_v17 = vmul.f32 -1.442695, %v1439_v5  ;;  %v1423_v19 = vpop.f32.mrf.mxu0  ;;  %v1436_v3 = vpop.f32.mrf.mxu1 }
 0x48e   :  { %4799 = vpow2.f32 %v4117_v29 }
 0x48f   :  { %v4798_v7 = vpop.eup %4797  ;;  %4801 = vpow2.f32 %v4118_v17 }
 0x490   :  { %v1453_v35 = vadd.f32 1.0, %v4798_v7 }
 0x491   :  { %v1397_v56 = vpop.f32.mrf.mxu2  ;;  %v1410_v16 = vpop.f32.mrf.mxu3 }
 0x492   :  { %4803 = vrcp.f32 %v1453_v35  ;;  %vm1489_vm9 = vweird.f32 %v1453_v35 }
 0x494   :  { %v4800_v41 = vpop.eup %4799 }
 0x495   :  { %v4802_v60 = vpop.eup %4801  ;;  %v1451_v40 = vadd.f32 1.0, %v4800_v41 }
 0x496   :  { %v1452_v36 = vadd.f32 1.0, %v4802_v60 }
 0x497   :  { %4805 = vrcp.f32 %v1451_v40  ;;  %v1465_v47 = vand.u32 2147483648, %v1451_v40  ;;  %v1463_v26 = vand.u32 2147483647, %v1451_v40  ;;  %vm1459_vm2 = vweird.f32 %v1451_v40 }
 0x498   :  { %4807 = vrcp.f32 %v1452_v36  ;;  %v4804_v21 = vpop.eup %4803  ;;  %v1480_v5 = vand.u32 2147483648, %v1452_v36  ;;  %v1478_v17 = vand.u32 2147483647, %v1452_v36  ;;  %vm1474_vm4 = vweird.f32 %v1452_v36 }
 0x499   :  { %v1485_v27 = vmul.f32 %v4804_v21, %v1453_v35  ;;  %4809 = vtanh.f32 %v1441_v13  ;;  %v1466_v2 = vor.u32 1.1754944e-38, %v1465_v47  ;;  %vm1464_vm5 = vcmp.eq.f32.partialorder %v1463_v26, 8.507059e+37 }
 0x49a   :  { %v1481_v16 = vor.u32 1.1754944e-38, %v1480_v5  ;;  %vm1479_vm7 = vcmp.eq.f32.partialorder %v1478_v17, 8.507059e+37  ;;  %vm1490_vm8 = vweird.f32 %v4804_v21  ;;  %v1495_v47 = vand.u32 2147483648, %v1453_v35 }
 0x49b   :  { %v1486_v19 = vsub.f32 1.0, %v1485_v27  ;;  %vm1491_vm10 = vmor %vm1489_vm9, %vm1490_vm8 }
 0x49d   :  { %v4806_v10 = vpop.eup %4805  ;;  %v1487_v13 = vmul.f32 %v4804_v21, %v1486_v19 }
 0x49e   :  { %v4808_v52 = vpop.eup %4807  ;;  %v1455_v57 = vmul.f32 %v4806_v10, %v1451_v40  ;;  %vm1460_vm0 = vweird.f32 %v4806_v10 }
 0x49f   :  { %v1470_v48 = vmul.f32 %v4808_v52, %v1452_v36  ;;  %vm1475_vm1 = vweird.f32 %v4808_v52  ;;  %vm1461_vm3 = vmor %vm1459_vm2, %vm1460_vm0  ;;  %v4810_v41 = vpop.eup %4809  ;;  %v1488_v40 = vadd.f32 %v4804_v21, %v1487_v13  ;;  %v1493_v36 = vand.u32 2147483647, %v1453_v35 }
 0x4a0   :  { %v1456_v55 = vsub.f32 1.0, %v1455_v57  ;;  %vm1476_vm6 = vmor %vm1474_vm4, %vm1475_vm1 }
 0x4a1   :  { %v1471_v0 = vsub.f32 1.0, %v1470_v48  ;;  %vm1494_vm11 = vcmp.eq.f32.partialorder %v1493_v36, 8.507059e+37 }
 0x4a2   :  { %v1457_v61 = vmul.f32 %v4806_v10, %v1456_v55 }
 0x4a3   :  { %v1472_v29 = vmul.f32 %v4808_v52, %v1471_v0  ;;  %v1496_v0 = vor.u32 1.1754944e-38, %v1495_v47 }
 0x4a4   :  { %v1458_v3 = vadd.f32 %v4806_v10, %v1457_v61 }
 0x4a5   :  { %v1473_v7 = vadd.f32 %v4808_v52, %v1472_v29 }
 0x4a6   :  { %v1462_v56 = vsel %vm1461_vm3, %v4806_v10, %v1458_v3  ;;  %v1492_v10 = vsel %vm1491_vm10, %v4804_v21, %v1488_v40 }
 0x4a7   :  { %v1467_v60 = vsel %vm1464_vm5, %v1466_v2, %v1462_v56  ;;  %v1477_v51 = vsel %vm1476_vm6, %v4808_v52, %v1473_v7  ;;  %v1497_v61 = vsel %vm1494_vm11, %v1496_v0, %v1492_v10 }
 0x4a8   :  { %v1501_v57 = vmul.f32 %v4810_v41, %v1467_v60  ;;  %v1482_v48 = vsel %vm1479_vm7, %v1481_v16, %v1477_v51 }
 0x4a9   :  { %v1500_v55 = vmul.f32 %v1482_v48, %v5756_v12 }
 0x4ab   :  { %v5796_v27 = vadd.f32 %v1501_v57, %v1500_v55 }
 0x4ad   :  { %4811 = vtanh.f32 %v5796_v27 }
 0x4b3   :  { %v4812_v52 = vpop.eup %4811 }
 0x4b4   :  { %v1504_v26 = vmul.f32 %v4812_v52, %v1497_v61 }
 0x4b6   :  { %v1505_v5 = vpack.c.bf16 %v1504_v26, %v1504_v26 }
 0x4b8   :  { %1507 = vst [vmem:[#allocation3 + $0x10] sm:$0xf] %v1505_v5  ;;  %1521 = vmatmul.bf16.vlgmr.msra.gmra.mxu2 %v1505_v5  ;;  %1534 = vmatmul.bf16.vlgmr.msrb.gmra.mxu3 %v1505_v5 }
 0x4b9   :  { %1547 = vmatmul.bf16.vlgmr.msra.gmra.mxu0 %v1505_v5  ;;  %1560 = vmatmul.bf16.vlgmr.msrb.gmra.mxu1 %v1505_v5 }
 0x4ba   :  { %1767 = vmatpush.bf16.msra.mxu2 %v5350_v38  ;;  %1780 = vmatpush.bf16.msrb.mxu3 %v5335_v22  ;;  %v6500_v22 = vld [vmem:[#allocation39_spill] sm:$0xff] }
 0x4bb   :  { %1793 = vmatpush.bf16.msra.mxu0 %v5432_v23  ;;  %1806 = vmatpush.bf16.msrb.mxu1 %v5406_v46 }
 0x4be   :  { %1768 = vmatpush.bf16.msra.mxu2 %v5360_v45  ;;  %1781 = vmatpush.bf16.msrb.mxu3 %v5338_v25  ;;  %v647_v25 = vadd.f32 %v6500_v22, %v5608_v44 }
 0x4bf   :  { %1794 = vmatpush.bf16.msra.mxu0 %v5439_v33  ;;  %1807 = vmatpush.bf16.msrb.mxu1 %v5410_v53 }
 0x4c2   :  { %1769 = vmatpush.bf16.msra.mxu2 %v5369_v54  ;;  %1782 = vmatpush.bf16.msrb.mxu3 %v5341_v28 }
 0x4c3   :  { %1795 = vmatpush.bf16.msra.mxu0 %v5461_v58  ;;  %1808 = vmatpush.bf16.msrb.mxu1 %v5414_v62  ;;  %v6503_v58 = vld [vmem:[#allocation31_spill] sm:$0xff] }
 0x4c6   :  { %1770 = vmatpush.bf16.msra.mxu2 %v5377_v1  ;;  %1783 = vmatpush.bf16.msrb.mxu3 %v5344_v31 }
 0x4c7   :  { %1796 = vmatpush.bf16.msra.mxu0 %v5465_v63  ;;  %1809 = vmatpush.bf16.msrb.mxu1 %v5420_v9  ;;  %v676_v63 = vadd.f32 %v6503_v58, %v6494_v30 }
 0x4ca   :  { %1771 = vmatpush.bf16.msra.mxu2 %v5384_v8  ;;  %1784 = vmatpush.bf16.msrb.mxu3 %v5347_v34 }
 0x4cb   :  { %1797 = vmatpush.bf16.msra.mxu0 %v5475_v4  ;;  %1810 = vmatpush.bf16.msrb.mxu1 %v5428_v18 }
 0x4ce   :  { %1772 = vmatpush.bf16.msra.mxu2 %v5387_v15  ;;  %1785 = vmatpush.bf16.msrb.mxu3 %v5357_v42  ;;  %v6501_v42 = vld [vmem:[#allocation30_spill] sm:$0xff] }
 0x4cf   :  { %1798 = vmatpush.bf16.msra.mxu0 %v5479_v6  ;;  %1811 = vmatpush.bf16.msrb.mxu1 %v5437_v32  ;;  %v589_v45 = vadd.f32 %v6501_v42, %v5545_v20 }
 0x4d2   :  { %1773 = vmatpush.bf16.msra.mxu2 %v5394_v24  ;;  %1786 = vmatpush.bf16.msrb.mxu3 %v5364_v49  ;;  %v6502_v49 = vld [vmem:[#allocation32_spill] sm:$0xff] }
 0x4d3   :  { %1799 = vmatpush.bf16.msra.mxu0 %v5489_v11  ;;  %1812 = vmatpush.bf16.msrb.mxu1 %v5445_v39  ;;  %v618_v54 = vadd.f32 %v6502_v49, %v5559_v43  ;;  %v6504_v49 = vld [vmem:[#allocation40_spill] sm:$0xff] }
 0x4d6   :  { %1774 = vmatpush.bf16.msra.mxu2 %v5400_v37  ;;  %1787 = vmatpush.bf16.msrb.mxu3 %v5371_v59 }
 0x4d7   :  { %1800 = vmatpush.bf16.msra.mxu0 %v5493_v14  ;;  %1813 = vmatpush.bf16.msrb.mxu1 %v5452_v50 }
 0x536   :  { %v1548_v28 = vpop.f32.mrf.mxu0  ;;  %v1561_v31 = vpop.f32.mrf.mxu1 }
 0x537   :  { %v1567_v34 = vadd.f32 %v1548_v28, %v647_v25  ;;  %v1568_v11 = vadd.f32 %v1561_v31, %v676_v63  ;;  %v4653_v63 = vld [vmem:[#allocation9 + $0x20] sm:$0xff] }
 0x539   :  { %v4122_v38 = vmul.f32 -1.442695, %v1567_v34 }
 0x53b   :  { %4813 = vpow2.f32 %v4122_v38  ;;  %v1522_v1 = vpop.f32.mrf.mxu2  ;;  %v1535_v59 = vpop.f32.mrf.mxu3 }
 0x53c   :  { %v1565_v8 = vadd.f32 %v1522_v1, %v589_v45  ;;  %v1566_v15 = vadd.f32 %v1535_v59, %v618_v54  ;;  %v4656_v59 = vld [vmem:[#allocation9 + $0x38] sm:$0xff] }
 0x53e   :  { %v4120_v24 = vmul.f32 -1.442695, %v1565_v8  ;;  %v4121_v37 = vmul.f32 -1.442695, %v1566_v15  ;;  %v1550_v46 = vpop.f32.mrf.mxu0  ;;  %v1563_v53 = vpop.f32.mrf.mxu1 }
 0x53f   :  { %v6506_v53 = vld [vmem:[#allocation35_spill] sm:$0xff] }
 0x540   :  { %4815 = vpow2.f32 %v4120_v24  ;;  %v4655_v24 = vld [vmem:[#allocation9 + $0x30] sm:$0xff] }
 0x541   :  { %v4814_v62 = vpop.eup %4813  ;;  %4817 = vpow2.f32 %v4121_v37  ;;  %v6505_v37 = vld [vmem:[#allocation33_spill] sm:$0xff] }
 0x542   :  { %v1580_v23 = vadd.f32 1.0, %v4814_v62 }
 0x543   :  { %v1524_v9 = vpop.f32.mrf.mxu2  ;;  %v1537_v18 = vpop.f32.mrf.mxu3 }
 0x544   :  { %4819 = vrcp.f32 %v1580_v23  ;;  %v1622_v5 = vand.u32 2147483648, %v1580_v23  ;;  %vm1616_vm5 = vweird.f32 %v1580_v23  ;;  %v1620_v22 = vand.u32 2147483647, %v1580_v23 }
 0x546   :  { %v4816_v32 = vpop.eup %4815  ;;  %v1623_v28 = vor.u32 1.1754944e-38, %v1622_v5  ;;  %vm1621_vm7 = vcmp.eq.f32.partialorder %v1620_v22, 8.507059e+37 }
 0x547   :  { %v4818_v33 = vpop.eup %4817  ;;  %v1578_v39 = vadd.f32 1.0, %v4816_v32 }
 0x548   :  { %v1579_v50 = vadd.f32 1.0, %v4818_v33  ;;  %v4654_v33 = vld [vmem:[#allocation9 + $0x28] sm:$0xff] }
 0x549   :  { %4821 = vrcp.f32 %v1578_v39  ;;  %v1592_v17 = vand.u32 2147483648, %v1578_v39  ;;  %v1590_v2 = vand.u32 2147483647, %v1578_v39  ;;  %vm1586_vm14 = vweird.f32 %v1578_v39 }
 0x54a   :  { %4823 = vrcp.f32 %v1579_v50  ;;  %v4820_v4 = vpop.eup %4819  ;;  %v1607_v7 = vand.u32 2147483648, %v1579_v50  ;;  %v1605_v16 = vand.u32 2147483647, %v1579_v50  ;;  %vm1601_vm0 = vweird.f32 %v1579_v50 }
 0x54b   :  { %v1612_v21 = vmul.f32 %v4820_v4, %v1580_v23  ;;  %4825 = vtanh.f32 %v1568_v11  ;;  %v1593_v51 = vor.u32 1.1754944e-38, %v1592_v17  ;;  %vm1591_vm1 = vcmp.eq.f32.partialorder %v1590_v2, 8.507059e+37 }
 0x54c   :  { %v1608_v48 = vor.u32 1.1754944e-38, %v1607_v7  ;;  %vm1606_vm3 = vcmp.eq.f32.partialorder %v1605_v16, 8.507059e+37  ;;  %vm1617_vm4 = vweird.f32 %v4820_v4 }
 0x54d   :  { %v1613_v41 = vsub.f32 1.0, %v1612_v21  ;;  %vm1618_vm6 = vmor %vm1616_vm5, %vm1617_vm4  ;;  %v4651_v21 = vld [vmem:[#allocation9 + $0x10] sm:$0xff] }
 0x54f   :  { %v4822_v6 = vpop.eup %4821  ;;  %v1614_v36 = vmul.f32 %v4820_v4, %v1613_v41 }
 0x550   :  { %v4824_v14 = vpop.eup %4823  ;;  %v1582_v12 = vmul.f32 %v4822_v6, %v1578_v39  ;;  %vm1587_vm12 = vweird.f32 %v4822_v6 }
 0x551   :  { %v1597_v35 = vmul.f32 %v4824_v14, %v1579_v50  ;;  %vm1602_vm13 = vweird.f32 %v4824_v14  ;;  %vm1588_vm15 = vmor %vm1586_vm14, %vm1587_vm12  ;;  %v4826_v55 = vpop.eup %4825  ;;  %v1615_v26 = vadd.f32 %v4820_v4, %v1614_v36 }
 0x552   :  { %v1583_v29 = vsub.f32 1.0, %v1582_v12  ;;  %vm1603_vm2 = vmor %vm1601_vm0, %vm1602_vm13 }
 0x553   :  { %v1598_v19 = vsub.f32 1.0, %v1597_v35  ;;  %v1619_v25 = vsel %vm1618_vm6, %v4820_v4, %v1615_v26  ;;  %v4652_v35 = vld [vmem:[#allocation9 + $0x18] sm:$0xff] }
 0x554   :  { %v1584_v3 = vmul.f32 %v4822_v6, %v1583_v29  ;;  %v1624_v34 = vsel %vm1621_vm7, %v1623_v28, %v1619_v25 }
 0x555   :  { %v1599_v56 = vmul.f32 %v4824_v14, %v1598_v19  ;;  %v6507_v19 = vld [vmem:[#allocation34_spill] sm:$0xff] }
 0x556   :  { %v1585_v60 = vadd.f32 %v4822_v6, %v1584_v3 }
 0x557   :  { %v1600_v13 = vadd.f32 %v4824_v14, %v1599_v56  ;;  %v4650_v56 = vld [vmem:[#allocation9 + $0x8] sm:$0xff] }
 0x558   :  { %v1589_v57 = vsel %vm1588_vm15, %v4822_v6, %v1585_v60 }
 0x559   :  { %v1594_v40 = vsel %vm1591_vm1, %v1593_v51, %v1589_v57  ;;  %v1604_v47 = vsel %vm1603_vm2, %v4824_v14, %v1600_v13 }
 0x55a   :  { %v1628_v10 = vmul.f32 %v4826_v55, %v1594_v40  ;;  %v1609_v0 = vsel %vm1606_vm3, %v1608_v48, %v1604_v47  ;;  %v4649_v40 = vld [vmem:[#allocation9] sm:$0xff] }
 0x55b   :  { %v1627_v52 = vmul.f32 %v1609_v0, %v5796_v27 }
 0x55d   :  { %v5840_v61 = vadd.f32 %v1628_v10, %v1627_v52 }
 0x55f   :  { %4827 = vtanh.f32 %v5840_v61 }
 0x565   :  { %v4828_v31 = vpop.eup %4827 }
 0x566   :  { %v1631_v38 = vmul.f32 %v4828_v31, %v1624_v34 }
 0x568   :  { %v1632_v42 = vpack.c.bf16 %v1631_v38, %v1631_v38 }
 0x56a   :  { %1634 = vst [vmem:[#allocation3 + $0x14] sm:$0xf] %v1632_v42  ;;  %1648 = vmatmul.bf16.vlgmr.msrb.gmra.mxu2 %v1632_v42  ;;  %1661 = vmatmul.bf16.vlgmr.msra.gmra.mxu3 %v1632_v42 }
 0x56b   :  { %1674 = vmatmul.bf16.vlgmr.msrb.gmra.mxu0 %v1632_v42  ;;  %1687 = vmatmul.bf16.vlgmr.msra.gmra.mxu1 %v1632_v42 }
 0x56c   :  { %1989 = vmatpush.bf16.msrb.mxu2 %v4656_v59 }
 0x570   :  { %1990 = vmatpush.bf16.msrb.mxu2 %v4655_v24 }
 0x574   :  { %1991 = vmatpush.bf16.msrb.mxu2 %v4654_v33  ;;  %v4660_v33 = vld [vmem:[#allocation10 + $0x18] sm:$0xff] }
 0x578   :  { %1992 = vmatpush.bf16.msrb.mxu2 %v4653_v63 }
 0x57c   :  { %1993 = vmatpush.bf16.msrb.mxu2 %v4652_v35  ;;  %v6509_v35 = vld [vmem:[#allocation36_spill] sm:$0xff] }
 0x580   :  { %1994 = vmatpush.bf16.msrb.mxu2 %v4651_v21  ;;  %v594_v21 = vadd.f32 %v6509_v35, %v5545_v20  ;;  %v4325_v35 = vld [vmem:[#allocation12 + $0xf0] sm:$0xf0] }
 0x584   :  { %1995 = vmatpush.bf16.msrb.mxu2 %v4650_v56 }
 0x588   :  { %1996 = vmatpush.bf16.msrb.mxu2 %v4649_v40 }
 0x5e8   :  { %v1675_v27 = vpop.f32.mrf.mxu0  ;;  %v1688_v45 = vpop.f32.mrf.mxu1 }
 0x5e9   :  { %v1694_v54 = vadd.f32 %v1675_v27, %v6504_v49  ;;  %v1695_v3 = vadd.f32 %v1688_v45, %v6507_v19 }
 0x5eb   :  { %v4125_v1 = vmul.f32 -1.442695, %v1694_v54 }
 0x5ed   :  { %4829 = vpow2.f32 %v4125_v1  ;;  %v1649_v8 = vpop.f32.mrf.mxu2  ;;  %v1662_v15 = vpop.f32.mrf.mxu3 }
 0x5ee   :  { %v1692_v46 = vadd.f32 %v1649_v8, %v6505_v37  ;;  %v1693_v62 = vadd.f32 %v1662_v15, %v6506_v53  ;;  %v4646_v53 = vld [vmem:[#allocation3 + $0x8] sm:$0xff] }
 0x5f0   :  { %v4123_v9 = vmul.f32 -1.442695, %v1692_v46  ;;  %v4124_v18 = vmul.f32 -1.442695, %v1693_v62  ;;  %v1677_v23 = vpop.f32.mrf.mxu0  ;;  %v1690_v32 = vpop.f32.mrf.mxu1  ;;  %v4645_v46 = vld [vmem:[#allocation3] sm:$0xff]  ;;  %v4647_v62 = vld [vmem:[#allocation3 + $0x10] sm:$0xff] }
 0x5f1   :  { %v4662_v23 = vld [vmem:[#allocation10 + $0x28] sm:$0xff]  ;;  %v4661_v32 = vld [vmem:[#allocation10 + $0x20] sm:$0xff] }
 0x5f2   :  { %4831 = vpow2.f32 %v4123_v9  ;;  %v4664_v9 = vld [vmem:[#allocation10 + $0x38] sm:$0xff] }
 0x5f3   :  { %v4830_v39 = vpop.eup %4829  ;;  %4833 = vpow2.f32 %v4124_v18  ;;  %2098 = vmatpush.bf16.msra.mxu3 %v4664_v9  ;;  %v4663_v18 = vld [vmem:[#allocation10 + $0x30] sm:$0xff] }
 0x5f4   :  { %v5846_v4 = vadd.f32 1.0, %v4830_v39  ;;  %v4659_v39 = vld [vmem:[#allocation10 + $0x10] sm:$0xff] }
 0x5f5   :  { %v1651_v50 = vpop.f32.mrf.mxu2  ;;  %v1664_v58 = vpop.f32.mrf.mxu3 }
 0x5f6   :  { %4835 = vrcp.f32 %v5846_v4  ;;  %v1749_v54 = vand.u32 2147483648, %v5846_v4  ;;  %vm1743_vm1 = vweird.f32 %v5846_v4  ;;  %v1747_v1 = vand.u32 2147483647, %v5846_v4  ;;  %v4658_v50 = vld [vmem:[#allocation10 + $0x8] sm:$0xff] }
 0x5f7   :  { %2099 = vmatpush.bf16.msra.mxu3 %v4663_v18  ;;  %v6508_v58 = vld [vmem:[#allocation41_spill] sm:$0xff] }
 0x5f8   :  { %v4832_v6 = vpop.eup %4831  ;;  %v1750_v8 = vor.u32 1.1754944e-38, %v1749_v54  ;;  %vm1748_vm3 = vcmp.eq.f32.partialorder %v1747_v1, 8.507059e+37  ;;  %v652_v63 = vadd.f32 %v6508_v58, %v5608_v44 }
 0x5f9   :  { %v4834_v11 = vpop.eup %4833  ;;  %v1705_v14 = vadd.f32 1.0, %v4832_v6 }
 0x5fa   :  { %v1706_v12 = vadd.f32 1.0, %v4834_v11  ;;  %v4657_v11 = vld [vmem:[#allocation10] sm:$0xff] }
 0x5fb   :  { %4837 = vrcp.f32 %v1705_v14  ;;  %v1719_v51 = vand.u32 2147483648, %v1705_v14  ;;  %v1717_v48 = vand.u32 2147483647, %v1705_v14  ;;  %vm1713_vm10 = vweird.f32 %v1705_v14  ;;  %2100 = vmatpush.bf16.msra.mxu3 %v4662_v23 }
 0x5fc   :  { %4839 = vrcp.f32 %v1706_v12  ;;  %v4836_v29 = vpop.eup %4835  ;;  %v1734_v55 = vand.u32 2147483648, %v1706_v12  ;;  %v1732_v36 = vand.u32 2147483647, %v1706_v12  ;;  %vm1728_vm12 = vweird.f32 %v1706_v12 }
 0x5fd   :  { %v1739_v41 = vmul.f32 %v4836_v29, %v5846_v4  ;;  %4841 = vtanh.f32 %v1695_v3  ;;  %v1720_v52 = vor.u32 1.1754944e-38, %v1719_v51  ;;  %vm1718_vm13 = vcmp.eq.f32.partialorder %v1717_v48, 8.507059e+37 }
 0x5fe   :  { %v1735_v22 = vor.u32 1.1754944e-38, %v1734_v55  ;;  %vm1733_vm15 = vcmp.eq.f32.partialorder %v1732_v36, 8.507059e+37  ;;  %vm1744_vm0 = vweird.f32 %v4836_v29 }
 0x5ff   :  { %v1740_v10 = vsub.f32 1.0, %v1739_v41  ;;  %vm1745_vm2 = vmor %vm1743_vm1, %vm1744_vm0  ;;  %2101 = vmatpush.bf16.msra.mxu3 %v4661_v32 }
 0x601   :  { %v4838_v17 = vpop.eup %4837  ;;  %v1741_v34 = vmul.f32 %v4836_v29, %v1740_v10 }
 0x602   :  { %v4840_v2 = vpop.eup %4839  ;;  %v1709_v7 = vmul.f32 %v4838_v17, %v1705_v14  ;;  %vm1714_vm8 = vweird.f32 %v4838_v17 }
 0x603   :  { %v1724_v16 = vmul.f32 %v4840_v2, %v1706_v12  ;;  %vm1729_vm9 = vweird.f32 %v4840_v2  ;;  %vm1715_vm11 = vmor %vm1713_vm10, %vm1714_vm8  ;;  %v4842_v25 = vpop.eup %4841  ;;  %v1742_v49 = vadd.f32 %v4836_v29, %v1741_v34  ;;  %2102 = vmatpush.bf16.msra.mxu3 %v4660_v33 }
 0x604   :  { %v1710_v60 = vsub.f32 1.0, %v1709_v7  ;;  %vm1730_vm14 = vmor %vm1728_vm12, %vm1729_vm9 }
 0x605   :  { %v1725_v13 = vsub.f32 1.0, %v1724_v16  ;;  %v1746_v59 = vsel %vm1745_vm2, %v4836_v29, %v1742_v49  ;;  %v6510_v29 = vld [vmem:[#allocation37_spill] sm:$0xff] }
 0x606   :  { %v1711_v57 = vmul.f32 %v4838_v17, %v1710_v60  ;;  %v1751_v24 = vsel %vm1748_vm3, %v1750_v8, %v1746_v59 }
 0x607   :  { %v1726_v47 = vmul.f32 %v4840_v2, %v1725_v13  ;;  %2103 = vmatpush.bf16.msra.mxu3 %v4659_v39 }
 0x608   :  { %v1712_v0 = vadd.f32 %v4838_v17, %v1711_v57 }
 0x609   :  { %v1727_v26 = vadd.f32 %v4840_v2, %v1726_v47  ;;  %v6511_v47 = vld [vmem:[#allocation42_spill] sm:$0xff] }
 0x60a   :  { %v1716_v5 = vsel %vm1715_vm11, %v4838_v17, %v1712_v0  ;;  %v623_v17 = vadd.f32 %v6510_v29, %v5559_v43  ;;  %v681_v36 = vadd.f32 %v6511_v47, %v6494_v30  ;;  %v5874_v0 = vld [vmem:[%s6453_s7] ss:$0 sm:$0xff]  ;;  %v4696_v29 = vld [vmem:[#allocation12 + $0xf4] sm:$0xf0]  ;;  %v4299_v47 = vld [vmem:[#allocation12 + $0xa8] sm:$0xf] }
 0x60b   :  { %v1721_v28 = vsel %vm1718_vm13, %v1720_v52, %v1716_v5  ;;  %v1731_v31 = vsel %vm1730_vm14, %v4840_v2, %v1727_v26  ;;  %2104 = vmatpush.bf16.msra.mxu3 %v4658_v50 }
 0x60c   :  { %v1755_v38 = vmul.f32 %v4842_v25, %v1721_v28  ;;  %v1736_v42 = vsel %vm1733_vm15, %v1735_v22, %v1731_v31 }
 0x60d   :  { %v1754_v27 = vmul.f32 %v1736_v42, %v5840_v61 }
 0x60f   :  { %v5852_v45 = vadd.f32 %v1755_v38, %v1754_v27  ;;  %2105 = vmatpush.bf16.msra.mxu3 %v4657_v11 }
 0x611   :  { %4843 = vtanh.f32 %v5852_v45 }
 0x617   :  { %v4844_v15 = vpop.eup %4843 }
 0x618   :  { %v1758_v37 = vmul.f32 %v4844_v15, %v1751_v24 }
 0x61a   :  { %v1759_v61 = vpack.c.bf16 %v1758_v37, %v1758_v37 }
 0x61c   :  { %1761 = vst [vmem:[#allocation3 + $0x18] sm:$0xf] %v1759_v61  ;;  %1775 = vmatmul.bf16.vlgmr.msra.gmra.mxu2 %v1759_v61  ;;  %1788 = vmatmul.bf16.vlgmr.msrb.gmra.mxu3 %v1759_v61 }
 0x61d   :  { %1801 = vmatmul.bf16.vlgmr.msra.gmra.mxu0 %v1759_v61  ;;  %1814 = vmatmul.bf16.vlgmr.msrb.gmra.mxu1 %v1759_v61 }
 0x62c   :  { %1997 = vmatmul.bf16.vlgmr.msrb.gmra.mxu2 %v4645_v46 }
 0x63c   :  { %2002 = vmatmul.bf16.gmra.mxu2 %v4646_v53 }
 0x64c   :  { %2007 = vmatmul.bf16.gmra.mxu2 %v4647_v62 }
 0x69a   :  { %v1802_v4 = vpop.f32.mrf.mxu0  ;;  %v1815_v6 = vpop.f32.mrf.mxu1 }
 0x69b   :  { %v1821_v14 = vadd.f32 %v1802_v4, %v652_v63  ;;  %v1822_v26 = vadd.f32 %v1815_v6, %v681_v36  ;;  %v4323_v63 = vld [vmem:[#allocation12 + $0xe0] sm:$0xf]  ;;  %v4695_v4 = vld [vmem:[#allocation12 + $0xec] sm:$0xf0]  ;;  %v4693_v6 = vld [vmem:[#allocation12 + $0xe4] sm:$0xf] }
 0x69c   :  { %v4211_v36 = vld [vmem:[#allocation12] sm:$0xf] }
 0x69d   :  { %v4128_v12 = vmul.f32 -1.442695, %v1821_v14 }
 0x69f   :  { %4845 = vpow2.f32 %v4128_v12  ;;  %v1776_v19 = vpop.f32.mrf.mxu2  ;;  %v1789_v3 = vpop.f32.mrf.mxu3  ;;  %v4324_v12 = vor.u32 %v4695_v4, %v4323_v63  ;;  %v4259_v63 = vld [vmem:[#allocation12 + $0x60] sm:$0xf]  ;;  %v4679_v4 = vld [vmem:[#allocation12 + $0x6c] sm:$0xf0] }
 0x6a0   :  { %v1819_v2 = vadd.f32 %v1776_v19, %v594_v21  ;;  %v1820_v7 = vadd.f32 %v1789_v3, %v623_v17  ;;  %v4331_v21 = vld [vmem:[#allocation12 + $0xe8] sm:$0xf]  ;;  %v4328_v17 = vor.u32 %v4693_v6, %v4325_v35  ;;  %v4307_v3 = vld [vmem:[#allocation12 + $0xc0] sm:$0xf]  ;;  %v4677_v6 = vld [vmem:[#allocation12 + $0x64] sm:$0xf] }
 0x6a1   :  { %v4332_v19 = vor.u32 %v4696_v29, %v4331_v21  ;;  %2341 = vmatpush.bf16.msrb.mxu0 %v4324_v12  ;;  %v4267_v12 = vld [vmem:[#allocation12 + $0x68] sm:$0xf]  ;;  %v4680_v35 = vld [vmem:[#allocation12 + $0x74] sm:$0xf0] }
 0x6a2   :  { %v4126_v56 = vmul.f32 -1.442695, %v1819_v2  ;;  %v4127_v16 = vmul.f32 -1.442695, %v1820_v7  ;;  %v1804_v44 = vpop.f32.mrf.mxu0  ;;  %v1817_v41 = vpop.f32.mrf.mxu1  ;;  %v4691_v2 = vld [vmem:[#allocation12 + $0xcc] sm:$0xf0]  ;;  %2370 = vmatpush.bf16.msra.mxu1 %v4328_v17  ;;  %v4268_v29 = vor.u32 %v4680_v35, %v4267_v12 }
 0x6a3   :  { %v4689_v7 = vld [vmem:[#allocation12 + $0xc4] sm:$0xf]  ;;  %v4308_v44 = vor.u32 %v4691_v2, %v4307_v3  ;;  %v4309_v41 = vld [vmem:[#allocation12 + $0xd0] sm:$0xf0]  ;;  %2399 = vmatpush.bf16.msra.mxu2 %v4332_v19  ;;  %v4243_v17 = vld [vmem:[#allocation12 + $0x40] sm:$0xf] }
 0x6a4   :  { %4847 = vpow2.f32 %v4126_v56  ;;  %v4675_v19 = vld [vmem:[#allocation12 + $0x4c] sm:$0xf0]  ;;  %v4673_v3 = vld [vmem:[#allocation12 + $0x44] sm:$0xf]  ;;  %v4666_v12 = vld [vmem:[#allocation12 + $0xc] sm:$0xf] }
 0x6a5   :  { %v4846_v60 = vpop.eup %4845  ;;  %4849 = vpow2.f32 %v4127_v16  ;;  %2342 = vmatpush.bf16.msrb.mxu0 %v4308_v44  ;;  %v4244_v2 = vor.u32 %v4675_v19, %v4243_v17  ;;  %v4676_v44 = vld [vmem:[#allocation12 + $0x54] sm:$0xf0]  ;;  %v4221_v35 = vld [vmem:[#allocation12 + $0x18] sm:$0xf0] }
 0x6a6   :  { %v5864_v57 = vadd.f32 1.0, %v4846_v60  ;;  %v4692_v60 = vld [vmem:[#allocation12 + $0xd4] sm:$0xf0] }
 0x6a7   :  { %v1778_v51 = vpop.f32.mrf.mxu2  ;;  %v1791_v13 = vpop.f32.mrf.mxu3 }
 0x6a8   :  { %4851 = vrcp.f32 %v5864_v57  ;;  %v1876_v51 = vand.u32 2147483648, %v5864_v57  ;;  %v4312_v13 = vor.u32 %v4689_v7, %v4309_v41  ;;  %vm1870_vm13 = vweird.f32 %v5864_v57  ;;  %v4245_v7 = vld [vmem:[#allocation12 + $0x50] sm:$0xf0] }
 0x6a9   :  { %v4248_v41 = vor.u32 %v4673_v3, %v4245_v7 }
 0x6aa   :  { %v4848_v20 = vpop.eup %4847  ;;  %2371 = vmatpush.bf16.msra.mxu1 %v4312_v13  ;;  %v4669_v13 = vld [vmem:[#allocation12 + $0x24] sm:$0xf] }
 0x6ab   :  { %v4850_v48 = vpop.eup %4849  ;;  %v1832_v55 = vadd.f32 1.0, %v4848_v20 }
 0x6ac   :  { %v1833_v43 = vadd.f32 1.0, %v4850_v48  ;;  %v4291_v48 = vld [vmem:[#allocation12 + $0xa0] sm:$0xf] }
 0x6ad   :  { %4853 = vrcp.f32 %v1832_v55  ;;  %v1844_v30 = vand.u32 2147483647, %v1832_v55  ;;  %v1846_v38 = vand.u32 2147483648, %v1832_v55  ;;  %vm1840_vm6 = vweird.f32 %v1832_v55 }
 0x6ae   :  { %4855 = vrcp.f32 %v1833_v43  ;;  %v5869_v10 = vpop.eup %4851  ;;  %v1861_v54 = vand.u32 2147483648, %v1833_v43  ;;  %v1859_v15 = vand.u32 2147483647, %v1833_v43  ;;  %vm1855_vm8 = vweird.f32 %v1833_v43 }
 0x6af   :  { %v1998_v40 = vpop.f32.mrf.mxu2  ;;  %v1866_v25 = vmul.f32 %v5869_v10, %v5864_v57  ;;  %4857 = vtanh.f32 %v1822_v26  ;;  %v1847_v46 = vor.u32 1.1754944e-38, %v1846_v38  ;;  %vm1845_vm9 = vcmp.eq.f32.partialorder %v1844_v30, 8.507059e+37  ;;  %v4688_v26 = vld [vmem:[#allocation12 + $0xb4] sm:$0xf0]  ;;  %v4683_v30 = vld [vmem:[#allocation12 + $0x8c] sm:$0xf0] }
 0x6b0   :  { %v1999_v34 = vadd.f32 %v5874_v0, %v1998_v40  ;;  %v1862_v9 = vor.u32 1.1754944e-38, %v1861_v54  ;;  %vm1860_vm11 = vcmp.eq.f32.partialorder %v1859_v15, 8.507059e+37  ;;  %vm1871_vm12 = vweird.f32 %v5869_v10  ;;  %v4293_v40 = vld [vmem:[#allocation12 + $0xb0] sm:$0xf0]  ;;  %v4283_v54 = vld [vmem:[#allocation12 + $0x88] sm:$0xf] }
 0x6b1   :  { %v1867_v59 = vsub.f32 1.0, %v1866_v25  ;;  %vm5891_vm14 = vmor %vm1870_vm13, %vm1871_vm12  ;;  %v1877_v38 = vor.u32 1.1754944e-38, %v1876_v51  ;;  %v4671_v51 = vld [vmem:[#allocation12 + $0x2c] sm:$0xf0] }
 0x6b2   :  { %v2018_v37 = vmax.f32 %v1999_v34, 0.0  ;;  %v4275_v34 = vld [vmem:[#allocation12 + $0x80] sm:$0xf] }
 0x6b3   :  { %v4854_v52 = vpop.eup %4853  ;;  %v1868_v32 = vmul.f32 %v5869_v10, %v1867_v59 }
 0x6b4   :  { %v4856_v5 = vpop.eup %4855  ;;  %v1836_v22 = vmul.f32 %v4854_v52, %v1832_v55  ;;  %vm1841_vm4 = vweird.f32 %v4854_v52  ;;  %v4687_v55 = vld [vmem:[#allocation12 + $0xac] sm:$0xf0] }
 0x6b5   :  { %v1851_v28 = vmul.f32 %v4856_v5, %v1833_v43  ;;  %vm1856_vm5 = vweird.f32 %v4856_v5  ;;  %vm1842_vm7 = vmor %vm1840_vm6, %vm1841_vm4  ;;  %v4858_v23 = vpop.eup %4857  ;;  %v1869_v56 = vadd.f32 %v5869_v10, %v1868_v32  ;;  %v4685_v43 = vld [vmem:[#allocation12 + $0xa4] sm:$0xf] }
 0x6b6   :  { %v1837_v31 = vsub.f32 1.0, %v1836_v22  ;;  %vm1857_vm10 = vmor %vm1855_vm8, %vm1856_vm5  ;;  %v4292_v22 = vor.u32 %v4687_v55, %v4291_v48  ;;  %v4229_v48 = vld [vmem:[#allocation12 + $0x30] sm:$0xf0]  ;;  %v4235_v55 = vld [vmem:[#allocation12 + $0x28] sm:$0xf] }
 0x6b7   :  { %v1852_v42 = vsub.f32 1.0, %v1851_v28  ;;  %v2000_v27 = vpop.f32.mrf.mxu2  ;;  %v4296_v28 = vor.u32 %v4685_v43, %v4293_v40  ;;  %v4672_v43 = vld [vmem:[#allocation12 + $0x34] sm:$0xf0]  ;;  %v4232_v40 = vor.u32 %v4669_v13, %v4229_v48 }
 0x6b8   :  { %v1838_v49 = vmul.f32 %v4854_v52, %v1837_v31  ;;  %v2001_v1 = vadd.f32 %v5874_v0, %v2000_v27  ;;  %v4300_v31 = vor.u32 %v4688_v26, %v4299_v47  ;;  %v4681_v27 = vld [vmem:[#allocation12 + $0x84] sm:$0xf]  ;;  %2343 = vmatpush.bf16.msrb.mxu0 %v4292_v22  ;;  %v4236_v47 = vor.u32 %v4672_v43, %v4235_v55  ;;  %v4213_v22 = vld [vmem:[#allocation12 + $0x10] sm:$0xf0] }
 0x6b9   :  { %v1853_v8 = vmul.f32 %v4856_v5, %v1852_v42  ;;  %2372 = vmatpush.bf16.msra.mxu1 %v4296_v28  ;;  %v4665_v26 = vld [vmem:[#allocation12 + $0x4] sm:$0xf]  ;;  %v4668_v28 = vld [vmem:[#allocation12 + $0x14] sm:$0xf0] }
 0x6ba   :  { %v1839_v24 = vadd.f32 %v4854_v52, %v1838_v49  ;;  %v2019_v61 = vmax.f32 %v2001_v1, 0.0  ;;  %v4277_v49 = vld [vmem:[#allocation12 + $0x90] sm:$0xf0]  ;;  %v4684_v1 = vld [vmem:[#allocation12 + $0x94] sm:$0xf0] }
 0x6bb   :  { %v1854_v53 = vadd.f32 %v4856_v5, %v1853_v8  ;;  %v4276_v8 = vor.u32 %v4683_v30, %v4275_v34  ;;  %v4694_v30 = vld [vmem:[#allocation12 + $0xec] sm:$0xf] }
 0x6bc   :  { %v1843_v62 = vsel %vm1842_vm7, %v4854_v52, %v1839_v24  ;;  %v2026_v18 = vpack.c.bf16 %v2019_v61, %v2018_v37  ;;  %v1874_v52 = vand.u32 2147483647, %v5864_v57  ;;  %v4280_v61 = vor.u32 %v4681_v27, %v4277_v49  ;;  %v4690_v27 = vld [vmem:[#allocation12 + $0xcc] sm:$0xf]  ;;  %v4317_v49 = vld [vmem:[#allocation12 + $0xd8] sm:$0xf0] }
 0x6bd   :  { %v1848_v33 = vsel %vm1845_vm9, %v1847_v46, %v1843_v62  ;;  %v1858_v39 = vsel %vm1857_vm10, %v4856_v5, %v1854_v53  ;;  %v1873_v5 = vsel %vm5891_vm14, %v5869_v10, %v1869_v56  ;;  %v4284_v46 = vor.u32 %v4684_v1, %v4283_v54  ;;  %2344 = vmatpush.bf16.msrb.mxu0 %v4276_v8  ;;  %v4251_v56 = vld [vmem:[#allocation12 + $0x48] sm:$0xf]  ;;  %v4686_v54 = vld [vmem:[#allocation12 + $0xac] sm:$0xf]  ;;  %v4301_v1 = vld [vmem:[#allocation12 + $0xb8] sm:$0xf0] }
 0x6be   :  { %v1882_v50 = vmul.f32 %v4858_v23, %v1848_v33  ;;  %v1863_v58 = vsel %vm1860_vm11, %v1862_v9, %v1858_v39  ;;  %2106 = vmatmul.bf16.vlgmr.msra.gmra.mxu3 %v2026_v18  ;;  %vm1875_vm15 = vcmp.eq.f32.partialorder %v1874_v52, 8.507059e+37  ;;  %2373 = vmatpush.bf16.msra.mxu1 %v4280_v61  ;;  %v4667_v52 = vld [vmem:[#allocation12 + $0xc] sm:$0xf0]  ;;  %v4682_v8 = vld [vmem:[#allocation12 + $0x8c] sm:$0xf] }
 0x6bf   :  { %v1881_v11 = vmul.f32 %v1863_v58, %v5852_v45  ;;  %v2003_v14 = vpop.f32.mrf.mxu2  ;;  %v4315_v45 = vld [vmem:[#allocation12 + $0xc8] sm:$0xf]  ;;  %v1878_v59 = vsel %vm1875_vm15, %v1877_v38, %v1873_v5  ;;  %v4212_v5 = vor.u32 %v4667_v52, %v4211_v36  ;;  %v4333_v38 = vld [vmem:[#allocation12 + $0xf8] sm:$0xf0]  ;;  %v4678_v61 = vld [vmem:[#allocation12 + $0x6c] sm:$0xf] }
 0x6c0   :  { %v4316_v20 = vor.u32 %v4692_v60, %v4315_v45  ;;  %v2004_v25 = vadd.f32 %v5874_v0, %v2003_v14  ;;  %v4261_v14 = vld [vmem:[#allocation12 + $0x70] sm:$0xf0]  ;;  %v4252_v45 = vor.u32 %v4676_v44, %v4251_v56  ;;  %v4227_v60 = vld [vmem:[#allocation12 + $0x20] sm:$0xf] }
 0x6c1   :  { %v5884_v16 = vadd.f32 %v1882_v50, %v1881_v11  ;;  %v4260_v11 = vor.u32 %v4679_v4, %v4259_v63  ;;  %v4264_v21 = vor.u32 %v4677_v6, %v4261_v14  ;;  %v4670_v4 = vld [vmem:[#allocation12 + $0x2c] sm:$0xf]  ;;  %v4237_v6 = vld [vmem:[#allocation12 + $0x38] sm:$0xf0]  ;;  %v4451_v52 = vld [vmem:[#allocation13 + $0xe0] sm:$0xf] }
 0x6c2   :  { %2400 = vmatpush.bf16.msra.mxu2 %v4316_v20  ;;  %v2020_v24 = vmax.f32 %v2004_v25, 0.0  ;;  %v4228_v20 = vor.u32 %v4671_v51, %v4227_v60  ;;  %v4219_v25 = vld [vmem:[#allocation12 + $0x8] sm:$0xf] }
 0x6c3   :  { %4859 = vtanh.f32 %v5884_v16  ;;  %2345 = vmatpush.bf16.msrb.mxu0 %v4260_v11  ;;  %2374 = vmatpush.bf16.msra.mxu1 %v4264_v21  ;;  %v4220_v34 = vor.u32 %v4668_v28, %v4219_v25  ;;  %v4240_v11 = vor.u32 %v4670_v4, %v4237_v6  ;;  %v4224_v21 = vor.u32 %v4666_v12, %v4221_v35  ;;  %v4435_v28 = vld [vmem:[#allocation13 + $0xc0] sm:$0xf]  ;;  %v4373_v4 = vld [vmem:[#allocation13 + $0x50] sm:$0xf0]  ;;  %v4573_v12 = vld [vmem:[#allocation13 + $0x24] sm:$0xf] }
 0x6c6   :  { %2401 = vmatpush.bf16.msra.mxu2 %v4300_v31  ;;  %v4216_v31 = vor.u32 %v4665_v26, %v4213_v22  ;;  %v4599_v26 = vld [vmem:[#allocation13 + $0xec] sm:$0xf0]  ;;  %v4453_v22 = vld [vmem:[#allocation13 + $0xf0] sm:$0xf0] }
 0x6c7   :  { %v2005_v42 = vpop.f32.mrf.mxu2  ;;  %2346 = vmatpush.bf16.msrb.mxu0 %v4244_v2  ;;  %2375 = vmatpush.bf16.msra.mxu1 %v4248_v41 }
 0x6c8   :  { %v2006_v57 = vadd.f32 %v5874_v0, %v2005_v42  ;;  %v4336_v42 = vor.u32 %v4694_v30, %v4333_v38  ;;  %v4593_v30 = vld [vmem:[#allocation13 + $0xc4] sm:$0xf]  ;;  %v4437_v38 = vld [vmem:[#allocation13 + $0xd0] sm:$0xf0] }
 0x6c9   :  { %v4860_v10 = vpop.eup %4859 }
 0x6ca   :  { %v1885_v15 = vmul.f32 %v4860_v10, %v1878_v59  ;;  %v2021_v37 = vmax.f32 %v2006_v57, 0.0  ;;  %2402 = vmatpush.bf16.msra.mxu2 %v4284_v46  ;;  %2428 = vmatpush.bf16.msrb.mxu3 %v4336_v42  ;;  %v4320_v57 = vor.u32 %v4690_v27, %v4317_v49  ;;  %v4304_v10 = vor.u32 %v4686_v54, %v4301_v1  ;;  %v4269_v46 = vld [vmem:[#allocation12 + $0x78] sm:$0xf0]  ;;  %v4419_v27 = vld [vmem:[#allocation13 + $0xa0] sm:$0xf] }
 0x6cb   :  { %2347 = vmatpush.bf16.msrb.mxu0 %v4228_v20  ;;  %2376 = vmatpush.bf16.msra.mxu1 %v4232_v40  ;;  %v5929_v42 = vor.u32 %v4593_v30, %v4437_v38  ;;  %v4591_v49 = vld [vmem:[#allocation13 + $0xac] sm:$0xf0]  ;;  %v4589_v54 = vld [vmem:[#allocation13 + $0xa4] sm:$0xf]  ;;  %v4421_v1 = vld [vmem:[#allocation13 + $0xb0] sm:$0xf0] }
 0x6cc   :  { %v5901_v53 = vpack.c.bf16 %v1885_v15, %v1885_v15  ;;  %v2027_v62 = vpack.c.bf16 %v2021_v37, %v2020_v24  ;;  %v4285_v15 = vld [vmem:[#allocation12 + $0x98] sm:$0xf0]  ;;  %v5909_v24 = vld [vmem:[%s6455_s9] ss:$0 sm:$0xff]  ;;  %v4588_v30 = vld [vmem:[#allocation13 + $0x94] sm:$0xf0] }
 0x6cd   :  { %v4288_v37 = vor.u32 %v4682_v8, %v4285_v15  ;;  %v4587_v8 = vld [vmem:[#allocation13 + $0x8c] sm:$0xf0]  ;;  %v4586_v38 = vld [vmem:[#allocation13 + $0x8c] sm:$0xf] }
 0x6ce   :  { %1888 = vst [vmem:[#allocation3 + $0x1c] sm:$0xf] %v5901_v53  ;;  %2111 = vmatmul.bf16.gmra.mxu3 %v2027_v62  ;;  %2403 = vmatpush.bf16.msra.mxu2 %v4268_v29 }
 0x6cf   :  { %v2008_v9 = vpop.f32.mrf.mxu2  ;;  %2348 = vmatpush.bf16.msrb.mxu0 %v4212_v5  ;;  %2377 = vmatpush.bf16.msra.mxu1 %v4216_v31  ;;  %v5919_v5 = vor.u32 %v4599_v26, %v4451_v52  ;;  %v4595_v31 = vld [vmem:[#allocation13 + $0xcc] sm:$0xf0]  ;;  %v4592_v52 = vld [vmem:[#allocation13 + $0xb4] sm:$0xf0]  ;;  %v4590_v26 = vld [vmem:[#allocation13 + $0xac] sm:$0xf] }
 0x6d0   :  { %v2009_v23 = vadd.f32 %v5874_v0, %v2008_v9  ;;  %2429 = vmatpush.bf16.msrb.mxu3 %v4320_v57  ;;  %v4272_v9 = vor.u32 %v4678_v61, %v4269_v46  ;;  %v5935_v57 = vor.u32 %v4591_v49, %v4419_v27  ;;  %v4405_v61 = vld [vmem:[#allocation13 + $0x90] sm:$0xf0]  ;;  %v4413_v49 = vld [vmem:[#allocation13 + $0x98] sm:$0xf0] }
 0x6d2   :  { %v2022_v39 = vmax.f32 %v2009_v23, 0.0  ;;  %2404 = vmatpush.bf16.msra.mxu2 %v4252_v45 }
 0x6d3   :  { %2653 = vmatpush.bf16.msra.mxu0 %v5919_v5 }
 0x6d4   :  { %2430 = vmatpush.bf16.msrb.mxu3 %v4304_v10  ;;  %v5937_v10 = vor.u32 %v4589_v54, %v4421_v1  ;;  %v6007_v54 = vor.u32 %v4586_v38, %v4413_v49  ;;  %v4395_v1 = vld [vmem:[#allocation13 + $0x68] sm:$0xf] }
 0x6d5   :  { %v4648_v18 = vld [vmem:[#allocation3 + $0x18] sm:$0xff] }
 0x6d6   :  { %2012 = vmatmul.bf16.gmra.mxu2 %v4648_v18 }
 0x6d7   :  { %v2010_v32 = vpop.f32.mrf.mxu2  ;;  %2405 = vmatpush.bf16.msra.mxu2 %v4236_v47 }
 0x6d8   :  { %v2011_v33 = vadd.f32 %v5874_v0, %v2010_v32  ;;  %2431 = vmatpush.bf16.msrb.mxu3 %v4288_v37  ;;  %v4674_v32 = vld [vmem:[#allocation12 + $0x4c] sm:$0xf]  ;;  %v4585_v37 = vld [vmem:[#allocation13 + $0x84] sm:$0xf] }
 0x6d9   :  { %v5945_v46 = vor.u32 %v4585_v37, %v4405_v61  ;;  %v4397_v61 = vld [vmem:[#allocation13 + $0x78] sm:$0xf0] }
 0x6da   :  { %v2023_v50 = vmax.f32 %v2011_v33, 0.0  ;;  %v4253_v33 = vld [vmem:[#allocation12 + $0x58] sm:$0xf0] }
 0x6db   :  { %2406 = vmatpush.bf16.msra.mxu2 %v4220_v34  ;;  %v5927_v34 = vor.u32 %v4595_v31, %v4435_v28  ;;  %v4411_v31 = vld [vmem:[#allocation13 + $0x88] sm:$0xf] }
 0x6dc   :  { %v2028_v58 = vpack.c.bf16 %v2023_v50, %v2022_v39  ;;  %2432 = vmatpush.bf16.msrb.mxu3 %v4272_v9  ;;  %v4583_v9 = vld [vmem:[#allocation13 + $0x6c] sm:$0xf0]  ;;  %v6005_v27 = vor.u32 %v4588_v30, %v4411_v31 }
 0x6dd   :  { %2654 = vmatpush.bf16.msra.mxu0 %v5927_v34 }
 0x6de   :  { %2116 = vmatmul.bf16.gmra.mxu3 %v2028_v58  ;;  %v4256_v58 = vor.u32 %v4674_v32, %v4253_v33  ;;  %v4389_v32 = vld [vmem:[#allocation13 + $0x70] sm:$0xf0] }
 0x6df   :  { %2778 = vmatpush.bf16.msrb.mxu2 %v5919_v5 }
 0x6e0   :  { %2433 = vmatpush.bf16.msrb.mxu3 %v4256_v58  ;;  %v4577_v58 = vld [vmem:[#allocation13 + $0x44] sm:$0xf] }
 0x6e1   :  { %2655 = vmatpush.bf16.msra.mxu0 %v5935_v57  ;;  %v5961_v6 = vor.u32 %v4577_v58, %v4373_v4  ;;  %v4381_v58 = vld [vmem:[#allocation13 + $0x58] sm:$0xf0] }
 0x6e3   :  { %2779 = vmatpush.bf16.msrb.mxu2 %v5927_v34 }
 0x6e4   :  { %2434 = vmatpush.bf16.msrb.mxu3 %v4240_v11  ;;  %v4355_v11 = vld [vmem:[#allocation13 + $0x20] sm:$0xf] }
 0x6e7   :  { %2780 = vmatpush.bf16.msrb.mxu2 %v5935_v57 }
 0x6e8   :  { %2435 = vmatpush.bf16.msrb.mxu3 %v4224_v21  ;;  %v4357_v21 = vld [vmem:[#allocation13 + $0x30] sm:$0xf0] }
 0x741   :  { %v2107_v59 = vpop.f32.mrf.mxu3 }
 0x742   :  { %v2108_v62 = vadd.f32 %v5909_v24, %v2107_v59  ;;  %v4403_v59 = vld [vmem:[#allocation13 + $0x80] sm:$0xf] }
 0x743   :  { %v5943_v15 = vor.u32 %v4587_v8, %v4403_v59  ;;  %v4584_v59 = vld [vmem:[#allocation13 + $0x74] sm:$0xf0]  ;;  %v4582_v8 = vld [vmem:[#allocation13 + $0x6c] sm:$0xf] }
 0x744   :  { %v2127_v39 = vmax.f32 %v2108_v62, 0.0  ;;  %v4387_v62 = vld [vmem:[#allocation13 + $0x60] sm:$0xf]  ;;  %v6013_v37 = vor.u32 %v4584_v59, %v4395_v1 }
 0x745   :  { %2656 = vmatpush.bf16.msra.mxu0 %v5943_v15  ;;  %2781 = vmatpush.bf16.msrb.mxu2 %v5943_v15 }
 0x749   :  { %v2109_v18 = vpop.f32.mrf.mxu3 }
 0x74a   :  { %v2110_v23 = vadd.f32 %v5909_v24, %v2109_v18  ;;  %v4581_v18 = vld [vmem:[#allocation13 + $0x64] sm:$0xf] }
 0x74b   :  { %v5953_v33 = vor.u32 %v4581_v18, %v4389_v32  ;;  %v4379_v18 = vld [vmem:[#allocation13 + $0x48] sm:$0xf]  ;;  %v4580_v32 = vld [vmem:[#allocation13 + $0x54] sm:$0xf0] }
 0x74c   :  { %v2128_v50 = vmax.f32 %v2110_v23, 0.0  ;;  %v5951_v23 = vor.u32 %v4583_v9, %v4387_v62  ;;  %v6017_v9 = vor.u32 %v4582_v8, %v4397_v61 }
 0x74e   :  { %v2135_v63 = vpack.c.bf16 %v2128_v50, %v2127_v39  ;;  %2657 = vmatpush.bf16.msra.mxu0 %v5951_v23  ;;  %2782 = vmatpush.bf16.msrb.mxu2 %v5951_v23  ;;  %v4371_v39 = vld [vmem:[#allocation13 + $0x40] sm:$0xf]  ;;  %v4579_v50 = vld [vmem:[#allocation13 + $0x4c] sm:$0xf0] }
 0x750   :  { %2349 = vmatmul.bf16.vlgmr.msrb.gmra.mxu0 %v2135_v63  ;;  %2378 = vmatmul.bf16.vlgmr.msra.gmra.mxu1 %v2135_v63 }
 0x751   :  { %2407 = vmatmul.bf16.vlgmr.msra.gmra.mxu2 %v2135_v63  ;;  %v2112_v14 = vpop.f32.mrf.mxu3 }
 0x752   :  { %v2113_v29 = vadd.f32 %v5909_v24, %v2112_v14  ;;  %v4575_v14 = vld [vmem:[#allocation13 + $0x2c] sm:$0xf0] }
 0x753   :  { %v5967_v35 = vor.u32 %v4575_v14, %v4355_v11  ;;  %v4363_v11 = vld [vmem:[#allocation13 + $0x28] sm:$0xf]  ;;  %v4576_v14 = vld [vmem:[#allocation13 + $0x34] sm:$0xf0] }
 0x754   :  { %v2129_v2 = vmax.f32 %v2113_v29, 0.0  ;;  %v5969_v29 = vor.u32 %v4573_v12, %v4357_v21  ;;  %v4574_v12 = vld [vmem:[#allocation13 + $0x2c] sm:$0xf] }
 0x759   :  { %v2114_v17 = vpop.f32.mrf.mxu3  ;;  %v2013_v3 = vpop.f32.mrf.mxu2 }
 0x75a   :  { %v2115_v19 = vadd.f32 %v5909_v24, %v2114_v17  ;;  %v2014_v44 = vadd.f32 %v5874_v0, %v2013_v3  ;;  %v4339_v17 = vld [vmem:[#allocation13] sm:$0xf]  ;;  %v4569_v3 = vld [vmem:[#allocation13 + $0x4] sm:$0xf] }
 0x75c   :  { %v2130_v7 = vmax.f32 %v2115_v19, 0.0  ;;  %v2024_v51 = vmax.f32 %v2014_v44, 0.0  ;;  %v4571_v19 = vld [vmem:[#allocation13 + $0xc] sm:$0xf0]  ;;  %v4600_v44 = vld [vmem:[#allocation13 + $0xf4] sm:$0xf0] }
 0x75e   :  { %v2136_v56 = vpack.c.bf16 %v2130_v7, %v2129_v2  ;;  %v5975_v2 = vor.u32 %v4571_v19, %v4339_v17  ;;  %v4341_v7 = vld [vmem:[#allocation13 + $0x10] sm:$0xf0]  ;;  %v6030_v17 = vor.u32 %v4576_v14, %v4363_v11  ;;  %v4365_v19 = vld [vmem:[#allocation13 + $0x38] sm:$0xf0] }
 0x760   :  { %2354 = vmatmul.bf16.gmra.mxu0 %v2136_v56  ;;  %2383 = vmatmul.bf16.gmra.mxu1 %v2136_v56 }
 0x761   :  { %2412 = vmatmul.bf16.gmra.mxu2 %v2136_v56  ;;  %v2117_v41 = vpop.f32.mrf.mxu3  ;;  %v2015_v45 = vpop.f32.mrf.mxu2 }
 0x762   :  { %v2016_v60 = vadd.f32 %v5874_v0, %v2015_v45  ;;  %v2118_v48 = vadd.f32 %v5909_v24, %v2117_v41  ;;  %v4597_v0 = vld [vmem:[#allocation13 + $0xe4] sm:$0xf]  ;;  %v5977_v41 = vor.u32 %v4569_v3, %v4341_v7  ;;  %v6034_v7 = vor.u32 %v4574_v12, %v4365_v19 }
 0x763   :  { %v5923_v25 = vor.u32 %v4597_v0, %v4453_v22  ;;  %v4429_v22 = vld [vmem:[#allocation13 + $0xb8] sm:$0xf0] }
 0x764   :  { %v2025_v13 = vmax.f32 %v2016_v60, 0.0  ;;  %v2131_v40 = vmax.f32 %v2118_v48, 0.0  ;;  %v4598_v60 = vld [vmem:[#allocation13 + $0xec] sm:$0xf]  ;;  %v4596_v48 = vld [vmem:[#allocation13 + $0xd4] sm:$0xf0]  ;;  %v6001_v28 = vor.u32 %v4590_v26, %v4429_v22 }
 0x765   :  { %2666 = vmatpush.bf16.msrb.mxu1 %v5923_v25  ;;  %2791 = vmatpush.bf16.msra.mxu3 %v5923_v25 }
 0x766   :  { %v2029_v20 = vpack.c.bf16 %v2025_v13, %v2024_v51  ;;  %v4461_v51 = vld [vmem:[#allocation13 + $0xf8] sm:$0xf0] }
 0x767   :  { %v5982_v13 = vor.u32 %v4598_v60, %v4461_v51  ;;  %v4572_v60 = vld [vmem:[#allocation13 + $0x14] sm:$0xf0]  ;;  %v4570_v51 = vld [vmem:[#allocation13 + $0xc] sm:$0xf] }
 0x768   :  { %2121 = vmatmul.bf16.gmra.mxu3 %v2029_v20  ;;  %v4443_v20 = vld [vmem:[#allocation13 + $0xc8] sm:$0xf] }
 0x769   :  { %v2119_v55 = vpop.f32.mrf.mxu3  ;;  %2667 = vmatpush.bf16.msrb.mxu1 %v5929_v42  ;;  %2792 = vmatpush.bf16.msra.mxu3 %v5929_v42 }
 0x76a   :  { %v2120_v43 = vadd.f32 %v5909_v24, %v2119_v55  ;;  %v4594_v55 = vld [vmem:[#allocation13 + $0xcc] sm:$0xf] }
 0x76c   :  { %v2132_v47 = vmax.f32 %v2120_v43, 0.0  ;;  %v5988_v43 = vor.u32 %v4596_v48, %v4443_v20  ;;  %v4349_v48 = vld [vmem:[#allocation13 + $0x18] sm:$0xf0] }
 0x76d   :  { %2668 = vmatpush.bf16.msrb.mxu1 %v5937_v10  ;;  %2793 = vmatpush.bf16.msra.mxu3 %v5937_v10 }
 0x76e   :  { %v2137_v36 = vpack.c.bf16 %v2132_v47, %v2131_v40  ;;  %v4445_v40 = vld [vmem:[#allocation13 + $0xd8] sm:$0xf0] }
 0x76f   :  { %v5991_v47 = vor.u32 %v4594_v55, %v4445_v40 }
 0x770   :  { %2359 = vmatmul.bf16.gmra.mxu0 %v2137_v36  ;;  %2388 = vmatmul.bf16.gmra.mxu1 %v2137_v36 }
 0x771   :  { %2417 = vmatmul.bf16.gmra.mxu2 %v2137_v36  ;;  %2669 = vmatpush.bf16.msrb.mxu1 %v5945_v46 }
 0x772   :  { %2794 = vmatpush.bf16.msra.mxu3 %v5945_v46 }
 0x775   :  { %2670 = vmatpush.bf16.msrb.mxu1 %v5953_v33 }
 0x776   :  { %2795 = vmatpush.bf16.msra.mxu3 %v5953_v33 }
 0x778   :  { %2436 = vmatmul.bf16.vlgmr.msrb.gmra.mxu3 %v2135_v63  ;;  %v5959_v63 = vor.u32 %v4579_v50, %v4371_v39  ;;  %v4578_v39 = vld [vmem:[#allocation13 + $0x4c] sm:$0xf]  ;;  %v6021_v50 = vor.u32 %v4580_v32, %v4379_v18  ;;  %v2171_v32 = vld [vmem:[%s6458_s12] sm:$0xf] }
 0x779   :  { %2671 = vmatpush.bf16.msrb.mxu1 %v5961_v6  ;;  %v6023_v4 = vor.u32 %v4578_v39, %v4381_v58  ;;  %v6116_v11 = vperm.slane %v2171_v32, 0  ;;  %v6118_v14 = vperm.slane %v2171_v32, 1 }
 0x77a   :  { %2658 = vmatpush.bf16.msra.mxu0 %v5959_v63  ;;  %2783 = vmatpush.bf16.msrb.mxu2 %v5959_v63 }
 0x77b   :  { %2796 = vmatpush.bf16.msra.mxu3 %v5961_v6 }
 0x77d   :  { %2672 = vmatpush.bf16.msrb.mxu1 %v5969_v29 }
 0x77e   :  { %2659 = vmatpush.bf16.msra.mxu0 %v5967_v35  ;;  %2784 = vmatpush.bf16.msrb.mxu2 %v5967_v35 }
 0x77f   :  { %2797 = vmatpush.bf16.msra.mxu3 %v5969_v29 }
 0x781   :  { %2673 = vmatpush.bf16.msrb.mxu1 %v5977_v41 }
 0x782   :  { %2660 = vmatpush.bf16.msra.mxu0 %v5975_v2  ;;  %2785 = vmatpush.bf16.msrb.mxu2 %v5975_v2 }
 0x783   :  { %2798 = vmatpush.bf16.msra.mxu3 %v5977_v41 }
 0x785   :  { %2692 = vmatpush.bf16.msra.mxu1 %v5982_v13 }
 0x786   :  { %2904 = vmatpush.bf16.msra.mxu2 %v5919_v5 }
 0x787   :  { %2917 = vmatpush.bf16.msrb.mxu3 %v5923_v25 }
 0x788   :  { %2441 = vmatmul.bf16.gmra.mxu3 %v2136_v56  ;;  %v4459_v56 = vld [vmem:[#allocation13 + $0xe8] sm:$0xf] }
 0x789   :  { %v5979_v45 = vor.u32 %v4600_v44, %v4459_v56  ;;  %2693 = vmatpush.bf16.msra.mxu1 %v5991_v47  ;;  %v4347_v44 = vld [vmem:[#allocation13 + $0x8] sm:$0xf] }
 0x78a   :  { %2905 = vmatpush.bf16.msra.mxu2 %v5927_v34  ;;  %v6039_v20 = vor.u32 %v4572_v60, %v4347_v44 }
 0x78b   :  { %2679 = vmatpush.bf16.msrb.mxu0 %v5979_v45  ;;  %2918 = vmatpush.bf16.msrb.mxu3 %v5929_v42 }
 0x78d   :  { %2694 = vmatpush.bf16.msra.mxu1 %v6001_v28 }
 0x78e   :  { %2906 = vmatpush.bf16.msra.mxu2 %v5935_v57 }
 0x78f   :  { %2680 = vmatpush.bf16.msrb.mxu0 %v5988_v43  ;;  %2919 = vmatpush.bf16.msrb.mxu3 %v5937_v10 }
 0x791   :  { %2695 = vmatpush.bf16.msra.mxu1 %v6007_v54 }
 0x792   :  { %2907 = vmatpush.bf16.msra.mxu2 %v5943_v15 }
 0x793   :  { %2920 = vmatpush.bf16.msrb.mxu3 %v5945_v46 }
 0x795   :  { %2696 = vmatpush.bf16.msra.mxu1 %v6017_v9 }
 0x796   :  { %2908 = vmatpush.bf16.msra.mxu2 %v5951_v23 }
 0x797   :  { %2921 = vmatpush.bf16.msrb.mxu3 %v5953_v33 }
 0x798   :  { %2446 = vmatmul.bf16.gmra.mxu3 %v2137_v36  ;;  %v4427_v36 = vld [vmem:[#allocation13 + $0xa8] sm:$0xf] }
 0x799   :  { %v5997_v0 = vor.u32 %v4592_v52, %v4427_v36  ;;  %2697 = vmatpush.bf16.msra.mxu1 %v6023_v4  ;;  %v6041_v36 = vor.u32 %v4570_v51, %v4349_v48 }
 0x79a   :  { %2909 = vmatpush.bf16.msra.mxu2 %v5959_v63 }
 0x79b   :  { %2681 = vmatpush.bf16.msrb.mxu0 %v5997_v0  ;;  %2922 = vmatpush.bf16.msrb.mxu3 %v5961_v6 }
 0x79d   :  { %2698 = vmatpush.bf16.msra.mxu1 %v6034_v7 }
 0x79e   :  { %2910 = vmatpush.bf16.msra.mxu2 %v5967_v35 }
 0x79f   :  { %2682 = vmatpush.bf16.msrb.mxu0 %v6005_v27  ;;  %2923 = vmatpush.bf16.msrb.mxu3 %v5969_v29 }
 0x7a1   :  { %2699 = vmatpush.bf16.msra.mxu1 %v6041_v36 }
 0x7a2   :  { %2911 = vmatpush.bf16.msra.mxu2 %v5975_v2 }
 0x7a3   :  { %2683 = vmatpush.bf16.msrb.mxu0 %v6013_v37  ;;  %2924 = vmatpush.bf16.msrb.mxu3 %v5977_v41 }
 0x7a7   :  { %2684 = vmatpush.bf16.msrb.mxu0 %v6021_v50 }
 0x7ab   :  { %2685 = vmatpush.bf16.msrb.mxu0 %v6030_v17 }
 0x7af   :  { %2686 = vmatpush.bf16.msrb.mxu0 %v6039_v20 }
 0x7eb   :  { %v2122_v62 = vpop.f32.mrf.mxu3 }
 0x7ec   :  { %v2123_v21 = vadd.f32 %v5909_v24, %v2122_v62 }
 0x7ee   :  { %v2133_v55 = vmax.f32 %v2123_v21, 0.0 }
 0x7f3   :  { %v2124_v3 = vpop.f32.mrf.mxu3 }
 0x7f4   :  { %v2125_v56 = vadd.f32 %v5909_v24, %v2124_v3  ;;  %v2379_v24 = vpop.f32.mrf.mxu1 }
 0x7f5   :  { %v2380_v21 = vadd.f32 %v2379_v24, %v6118_v14  ;;  %v6125_v24 = vperm.slane %v2171_v32, 3 }
 0x7f6   :  { %v2134_v40 = vmax.f32 %v2125_v56, 0.0 }
 0x7f7   :  { %6525 = vst [vmem:[#allocation39_spill] sm:$0xff] %v6125_v24 }
 0x7f8   :  { %v2138_v52 = vpack.c.bf16 %v2134_v40, %v2133_v55 }
 0x7fa   :  { %2364 = vmatmul.bf16.gmra.mxu0 %v2138_v52  ;;  %2393 = vmatmul.bf16.gmra.mxu1 %v2138_v52 }
 0x7fb   :  { %2422 = vmatmul.bf16.gmra.mxu2 %v2138_v52  ;;  %2451 = vmatmul.bf16.gmra.mxu3 %v2138_v52  ;;  %v6122_v52 = vperm.slane %v2171_v32, 2 }
 0x7fc   :  { %v6087_v22 = vpop.f32.mrf.mxu1 }
 0x804   :  { %v6091_v30 = vpop.f32.mrf.mxu1 }
 0x805   :  { %6514 = vst [vmem:[#allocation21_spill] sm:$0xff] %v6091_v30 }
 0x80a   :  { %2661 = vmatmul.bf16.vlgmr.msra.gmra.mxu0 %v5901_v53  ;;  %2674 = vmatmul.bf16.vlgmr.msrb.gmra.mxu1 %v5901_v53 }
 0x80b   :  { %2804 = vmatpush.bf16.msra.mxu0 %v5979_v45  ;;  %2817 = vmatpush.bf16.msrb.mxu1 %v5982_v13 }
 0x80c   :  { %v6095_v49 = vpop.f32.mrf.mxu1 }
 0x80d   :  { %6516 = vst [vmem:[#allocation22_spill] sm:$0xff] %v6095_v49 }
 0x80f   :  { %2805 = vmatpush.bf16.msra.mxu0 %v5988_v43  ;;  %2818 = vmatpush.bf16.msrb.mxu1 %v5991_v47 }
 0x813   :  { %2806 = vmatpush.bf16.msra.mxu0 %v5997_v0  ;;  %2819 = vmatpush.bf16.msrb.mxu1 %v6001_v28 }
 0x814   :  { %v6099_v59 = vpop.f32.mrf.mxu1 }
 0x815   :  { %6518 = vst [vmem:[#allocation26_spill] sm:$0xff] %v6099_v59 }
 0x817   :  { %2807 = vmatpush.bf16.msra.mxu0 %v6005_v27  ;;  %2820 = vmatpush.bf16.msrb.mxu1 %v6007_v54 }
 0x81a   :  { %2687 = vmatmul.bf16.vlgmr.msrb.gmra.mxu0 %v5901_v53  ;;  %2700 = vmatmul.bf16.vlgmr.msra.gmra.mxu1 %v5901_v53  ;;  %v2350_v53 = vpop.f32.mrf.mxu0 }
 0x81b   :  { %2808 = vmatpush.bf16.msra.mxu0 %v6013_v37  ;;  %2821 = vmatpush.bf16.msrb.mxu1 %v6017_v9  ;;  %v2351_v12 = vadd.f32 %v2350_v53, %v6116_v11 }
 0x81c   :  { %v6103_v61 = vpop.f32.mrf.mxu1 }
 0x81d   :  { %6520 = vst [vmem:[#allocation25_spill] sm:$0xff] %v6103_v61 }
 0x81f   :  { %2809 = vmatpush.bf16.msra.mxu0 %v6021_v50  ;;  %2822 = vmatpush.bf16.msrb.mxu1 %v6023_v4 }
 0x822   :  { %v6085_v26 = vpop.f32.mrf.mxu0 }
 0x823   :  { %2810 = vmatpush.bf16.msra.mxu0 %v6030_v17  ;;  %2823 = vmatpush.bf16.msrb.mxu1 %v6034_v7 }
 0x827   :  { %2811 = vmatpush.bf16.msra.mxu0 %v6039_v20  ;;  %2824 = vmatpush.bf16.msrb.mxu1 %v6041_v36 }
 0x82a   :  { %v6089_v31 = vpop.f32.mrf.mxu0 }
 0x82b   :  { %2930 = vmatpush.bf16.msrb.mxu0 %v5979_v45  ;;  %2943 = vmatpush.bf16.msra.mxu1 %v5982_v13 }
 0x82f   :  { %2931 = vmatpush.bf16.msrb.mxu0 %v5988_v43  ;;  %2944 = vmatpush.bf16.msra.mxu1 %v5991_v47 }
 0x832   :  { %v6093_v38 = vpop.f32.mrf.mxu0 }
 0x833   :  { %2932 = vmatpush.bf16.msrb.mxu0 %v5997_v0  ;;  %2945 = vmatpush.bf16.msra.mxu1 %v6001_v28  ;;  %6515 = vst [vmem:[#allocation23_spill] sm:$0xff] %v6093_v38 }
 0x837   :  { %2933 = vmatpush.bf16.msrb.mxu0 %v6005_v27  ;;  %2946 = vmatpush.bf16.msra.mxu1 %v6007_v54 }
 0x83a   :  { %v6097_v1 = vpop.f32.mrf.mxu0 }
 0x83b   :  { %2934 = vmatpush.bf16.msrb.mxu0 %v6013_v37  ;;  %2947 = vmatpush.bf16.msra.mxu1 %v6017_v9  ;;  %6517 = vst [vmem:[#allocation24_spill] sm:$0xff] %v6097_v1 }
 0x83f   :  { %2935 = vmatpush.bf16.msrb.mxu0 %v6021_v50  ;;  %2948 = vmatpush.bf16.msra.mxu1 %v6023_v4 }
 0x842   :  { %v6101_v8 = vpop.f32.mrf.mxu0 }
 0x843   :  { %2936 = vmatpush.bf16.msrb.mxu0 %v6030_v17  ;;  %2949 = vmatpush.bf16.msra.mxu1 %v6034_v7  ;;  %6519 = vst [vmem:[#allocation20_spill] sm:$0xff] %v6101_v8 }
 0x847   :  { %2937 = vmatpush.bf16.msrb.mxu0 %v6039_v20  ;;  %2950 = vmatpush.bf16.msra.mxu1 %v6041_v36 }
 0x877   :  { %v6105_v62 = vpop.f32.mrf.mxu0  ;;  %v6107_v18 = vpop.f32.mrf.mxu1 }
 0x878   :  { %6521 = vst [vmem:[#allocation38_spill] sm:$0xff] %v6105_v62 }
 0x879   :  { %6522 = vst [vmem:[#allocation27_spill] sm:$0xff] %v6107_v18 }
 0x87f   :  { %v6112_v39 = vpop.f32.mrf.mxu0  ;;  %v6114_v58 = vpop.f32.mrf.mxu1 }
 0x880   :  { %6523 = vst [vmem:[#allocation29_spill] sm:$0xff] %v6112_v39  ;;  %v2408_v39 = vpop.f32.mrf.mxu2 }
 0x881   :  { %6524 = vst [vmem:[#allocation28_spill] sm:$0xff] %v6114_v58  ;;  %v2409_v53 = vadd.f32 %v2408_v39, %v6122_v52 }
 0x887   :  { %v2662_v19 = vpop.f32.mrf.mxu0  ;;  %v2675_v3 = vpop.f32.mrf.mxu1 }
 0x888   :  { %v2705_v56 = vadd.f32 %v2662_v19, %v2351_v12  ;;  %v2706_v44 = vadd.f32 %v2675_v3, %v2380_v21  ;;  %v2437_v12 = vpop.f32.mrf.mxu3 }
 0x88a   :  { %v4465_v60 = vmul.f32 -1.442695, %v2705_v56  ;;  %v4466_v51 = vmul.f32 -1.442695, %v2706_v44  ;;  %v2438_v56 = vadd.f32 %v2437_v12, %v6125_v24 }
 0x88c   :  { %4861 = vpow2.f32 %v4465_v60 }
 0x88d   :  { %4863 = vpow2.f32 %v4466_v51 }
 0x88f   :  { %v2664_v48 = vpop.f32.mrf.mxu0  ;;  %v2677_v55 = vpop.f32.mrf.mxu1 }
 0x892   :  { %v4862_v40 = vpop.eup %4861 }
 0x893   :  { %v4864_v58 = vpop.eup %4863  ;;  %v2718_v18 = vadd.f32 1.0, %v4862_v40 }
 0x894   :  { %v2719_v62 = vadd.f32 1.0, %v4864_v58 }
 0x895   :  { %4865 = vrcp.f32 %v2718_v18  ;;  %v2732_v59 = vand.u32 2147483648, %v2718_v18  ;;  %vm2726_vm2 = vweird.f32 %v2718_v18 }
 0x896   :  { %4867 = vrcp.f32 %v2719_v62  ;;  %v2747_v49 = vand.u32 2147483648, %v2719_v62  ;;  %vm2741_vm4 = vweird.f32 %v2719_v62 }
 0x897   :  { %v2688_v21 = vpop.f32.mrf.mxu0  ;;  %v2701_v19 = vpop.f32.mrf.mxu1 }
 0x898   :  { %v2707_v3 = vadd.f32 %v2688_v21, %v2409_v53  ;;  %v2708_v55 = vadd.f32 %v2701_v19, %v2438_v56  ;;  %v2730_v53 = vand.u32 2147483647, %v2718_v18 }
 0x89a   :  { %v4467_v44 = vmul.f32 -1.442695, %v2707_v3  ;;  %v2745_v3 = vand.u32 2147483647, %v2719_v62  ;;  %vm2731_vm6 = vcmp.eq.f32.partialorder %v2730_v53, 8.507059e+37 }
 0x89b   :  { %v4866_v60 = vpop.eup %4865 }
 0x89c   :  { %v4868_v51 = vpop.eup %4867  ;;  %v2722_v48 = vmul.f32 %v4866_v60, %v2718_v18  ;;  %4869 = vpow2.f32 %v4467_v44  ;;  %vm2727_vm0 = vweird.f32 %v4866_v60  ;;  %v2733_v44 = vor.u32 1.1754944e-38, %v2732_v59 }
 0x89d   :  { %v2737_v40 = vmul.f32 %v4868_v51, %v2719_v62  ;;  %4871 = vtanh.f32 %v2708_v55  ;;  %vm2742_vm1 = vweird.f32 %v4868_v51  ;;  %vm2728_vm3 = vmor %vm2726_vm2, %vm2727_vm0  ;;  %vm2746_vm7 = vcmp.eq.f32.partialorder %v2745_v3, 8.507059e+37 }
 0x89e   :  { %v2723_v58 = vsub.f32 1.0, %v2722_v48  ;;  %vm2743_vm5 = vmor %vm2741_vm4, %vm2742_vm1 }
 0x89f   :  { %v2738_v61 = vsub.f32 1.0, %v2737_v40  ;;  %v2690_v8 = vpop.f32.mrf.mxu0  ;;  %v2703_v39 = vpop.f32.mrf.mxu1 }
 0x8a0   :  { %v2724_v32 = vmul.f32 %v4866_v60, %v2723_v58  ;;  %v2748_v8 = vor.u32 1.1754944e-38, %v2747_v49 }
 0x8a1   :  { %v2739_v1 = vmul.f32 %v4868_v51, %v2738_v61 }
 0x8a2   :  { %v4870_v21 = vpop.eup %4869  ;;  %v2725_v12 = vadd.f32 %v4866_v60, %v2724_v32 }
 0x8a3   :  { %v2720_v38 = vadd.f32 1.0, %v4870_v21  ;;  %v2740_v19 = vadd.f32 %v4868_v51, %v2739_v1  ;;  %v4872_v48 = vpop.eup %4871 }
 0x8a4   :  { %v2729_v56 = vsel %vm2728_vm3, %v4866_v60, %v2725_v12 }
 0x8a5   :  { %4873 = vrcp.f32 %v2720_v38  ;;  %v2734_v55 = vsel %vm2731_vm6, %v2733_v44, %v2729_v56  ;;  %v2744_v61 = vsel %vm2743_vm5, %v4868_v51, %v2740_v19  ;;  %v2762_v62 = vand.u32 2147483648, %v2720_v38  ;;  %v2439_v56 = vpop.f32.mrf.mxu3 }
 0x8a6   :  { %v2749_v40 = vsel %vm2746_vm7, %v2748_v8, %v2744_v61  ;;  %v2768_v58 = vmul.f32 %v4872_v48, %v2734_v55  ;;  %v2760_v49 = vand.u32 2147483647, %v2720_v38  ;;  %vm2756_vm9 = vweird.f32 %v2720_v38 }
 0x8a7   :  { %v2767_v39 = vmul.f32 %v2749_v40, %v5884_v16  ;;  %v2763_v51 = vor.u32 1.1754944e-38, %v2762_v62 }
 0x8a8   :  { %vm2761_vm11 = vcmp.eq.f32.partialorder %v2760_v49, 8.507059e+37 }
 0x8a9   :  { %v6129_v18 = vadd.f32 %v2768_v58, %v2767_v39 }
 0x8ab   :  { %v4874_v32 = vpop.eup %4873  ;;  %4875 = vtanh.f32 %v6129_v18 }
 0x8ac   :  { %v2752_v21 = vmul.f32 %v4874_v32, %v2720_v38  ;;  %vm2757_vm8 = vweird.f32 %v4874_v32  ;;  %v2410_v38 = vpop.f32.mrf.mxu2 }
 0x8ad   :  { %vm2758_vm10 = vmor %vm2756_vm9, %vm2757_vm8  ;;  %v6166_v8 = vpop.f32.mrf.mxu3 }
 0x8ae   :  { %v2753_v1 = vsub.f32 1.0, %v2752_v21  ;;  %6526 = vst [vmem:[#allocation30_spill] sm:$0xff] %v6166_v8 }
 0x8b0   :  { %v2754_v59 = vmul.f32 %v4874_v32, %v2753_v1 }
 0x8b1   :  { %v4876_v12 = vpop.eup %4875 }
 0x8b2   :  { %v2755_v60 = vadd.f32 %v4874_v32, %v2754_v59  ;;  %v2411_v59 = vadd.f32 %v2410_v38, %v6122_v52 }
 0x8b4   :  { %v2759_v53 = vsel %vm2758_vm10, %v4874_v32, %v2755_v60  ;;  %v6164_v44 = vpop.f32.mrf.mxu2 }
 0x8b5   :  { %v2764_v3 = vsel %vm2761_vm11, %v2763_v51, %v2759_v53  ;;  %v6170_v55 = vpop.f32.mrf.mxu3 }
 0x8b6   :  { %v2771_v16 = vmul.f32 %v4876_v12, %v2764_v3  ;;  %6528 = vst [vmem:[#allocation31_spill] sm:$0xff] %v6170_v55  ;;  %v2353_v12 = vadd.f32 %v6085_v26, %v6116_v11  ;;  %v2382_v3 = vadd.f32 %v6087_v22, %v6118_v14 }
 0x8b8   :  { %v2772_v19 = vpack.c.bf16 %v2771_v16, %v2771_v16 }
 0x8ba   :  { %2773 = vst [vmem:[#allocation4] sm:$0xf] %v2772_v19  ;;  %2786 = vmatmul.bf16.vlgmr.msrb.gmra.mxu2 %v2772_v19  ;;  %2799 = vmatmul.bf16.vlgmr.msra.gmra.mxu3 %v2772_v19 }
 0x8bb   :  { %2812 = vmatmul.bf16.vlgmr.msra.gmra.mxu0 %v2772_v19  ;;  %2825 = vmatmul.bf16.vlgmr.msrb.gmra.mxu1 %v2772_v19 }
 0x8bc   :  { %3030 = vmatpush.bf16.msrb.mxu2 %v5919_v5  ;;  %3043 = vmatpush.bf16.msra.mxu3 %v5923_v25  ;;  %v6168_v48 = vpop.f32.mrf.mxu2 }
 0x8bd   :  { %3056 = vmatpush.bf16.msra.mxu0 %v5979_v45  ;;  %3069 = vmatpush.bf16.msrb.mxu1 %v5982_v13  ;;  %6527 = vst [vmem:[#allocation32_spill] sm:$0xff] %v6168_v48  ;;  %v6174_v40 = vpop.f32.mrf.mxu3 }
 0x8be   :  { %6530 = vst [vmem:[#allocation33_spill] sm:$0xff] %v6174_v40 }
 0x8c0   :  { %3031 = vmatpush.bf16.msrb.mxu2 %v5927_v34  ;;  %3044 = vmatpush.bf16.msra.mxu3 %v5929_v42 }
 0x8c1   :  { %3057 = vmatpush.bf16.msra.mxu0 %v5988_v43  ;;  %3070 = vmatpush.bf16.msrb.mxu1 %v5991_v47 }
 0x8c4   :  { %3032 = vmatpush.bf16.msrb.mxu2 %v5935_v57  ;;  %3045 = vmatpush.bf16.msra.mxu3 %v5937_v10  ;;  %v6172_v61 = vpop.f32.mrf.mxu2 }
 0x8c5   :  { %3058 = vmatpush.bf16.msra.mxu0 %v5997_v0  ;;  %3071 = vmatpush.bf16.msrb.mxu1 %v6001_v28  ;;  %6529 = vst [vmem:[#allocation40_spill] sm:$0xff] %v6172_v61  ;;  %v6178_v39 = vpop.f32.mrf.mxu3 }
 0x8c6   :  { %6532 = vst [vmem:[#allocation34_spill] sm:$0xff] %v6178_v39 }
 0x8c8   :  { %3033 = vmatpush.bf16.msrb.mxu2 %v5943_v15  ;;  %3046 = vmatpush.bf16.msra.mxu3 %v5945_v46 }
 0x8c9   :  { %3059 = vmatpush.bf16.msra.mxu0 %v6005_v27  ;;  %3072 = vmatpush.bf16.msrb.mxu1 %v6007_v54 }
 0x8cc   :  { %3034 = vmatpush.bf16.msrb.mxu2 %v5951_v23  ;;  %3047 = vmatpush.bf16.msra.mxu3 %v5953_v33  ;;  %v6176_v58 = vpop.f32.mrf.mxu2 }
 0x8cd   :  { %3060 = vmatpush.bf16.msra.mxu0 %v6013_v37  ;;  %3073 = vmatpush.bf16.msrb.mxu1 %v6017_v9  ;;  %6531 = vst [vmem:[#allocation35_spill] sm:$0xff] %v6176_v58  ;;  %v6182_v21 = vpop.f32.mrf.mxu3 }
 0x8ce   :  { %6534 = vst [vmem:[#allocation36_spill] sm:$0xff] %v6182_v21 }
 0x8d0   :  { %3035 = vmatpush.bf16.msrb.mxu2 %v5959_v63  ;;  %3048 = vmatpush.bf16.msra.mxu3 %v5961_v6 }
 0x8d1   :  { %3061 = vmatpush.bf16.msra.mxu0 %v6021_v50  ;;  %3074 = vmatpush.bf16.msrb.mxu1 %v6023_v4 }
 0x8d4   :  { %3036 = vmatpush.bf16.msrb.mxu2 %v5967_v35  ;;  %3049 = vmatpush.bf16.msra.mxu3 %v5969_v29  ;;  %v6180_v32 = vpop.f32.mrf.mxu2 }
 0x8d5   :  { %3062 = vmatpush.bf16.msra.mxu0 %v6030_v17  ;;  %3075 = vmatpush.bf16.msrb.mxu1 %v6034_v7  ;;  %6533 = vst [vmem:[#allocation41_spill] sm:$0xff] %v6180_v32  ;;  %v6186_v62 = vpop.f32.mrf.mxu3 }
 0x8d6   :  { %6536 = vst [vmem:[#allocation42_spill] sm:$0xff] %v6186_v62 }
 0x8d8   :  { %3037 = vmatpush.bf16.msrb.mxu2 %v5975_v2  ;;  %3050 = vmatpush.bf16.msra.mxu3 %v5977_v41 }
 0x8d9   :  { %3063 = vmatpush.bf16.msra.mxu0 %v6039_v20  ;;  %3076 = vmatpush.bf16.msrb.mxu1 %v6041_v36 }
 0x8dc   :  { %v6184_v1 = vpop.f32.mrf.mxu2 }
 0x8dd   :  { %6535 = vst [vmem:[#allocation37_spill] sm:$0xff] %v6184_v1 }
 0x938   :  { %v2813_v49 = vpop.f32.mrf.mxu0  ;;  %v2826_v60 = vpop.f32.mrf.mxu1 }
 0x939   :  { %v2832_v51 = vadd.f32 %v2813_v49, %v2411_v59 }
 0x93b   :  { %v4470_v53 = vmul.f32 -1.442695, %v2832_v51 }
 0x93d   :  { %4877 = vpow2.f32 %v4470_v53  ;;  %v2787_v16 = vpop.f32.mrf.mxu2  ;;  %v2800_v19 = vpop.f32.mrf.mxu3  ;;  %v2440_v53 = vadd.f32 %v2439_v56, %v6125_v24 }
 0x93e   :  { %v2830_v21 = vadd.f32 %v2787_v16, %v2353_v12  ;;  %v2831_v32 = vadd.f32 %v2800_v19, %v2382_v3 }
 0x940   :  { %v4468_v1 = vmul.f32 -1.442695, %v2830_v21  ;;  %v4469_v39 = vmul.f32 -1.442695, %v2831_v32  ;;  %v2815_v62 = vpop.f32.mrf.mxu0  ;;  %v2828_v58 = vpop.f32.mrf.mxu1  ;;  %v2833_v32 = vadd.f32 %v2826_v60, %v2440_v53 }
 0x942   :  { %4879 = vpow2.f32 %v4468_v1 }
 0x943   :  { %v4878_v38 = vpop.eup %4877  ;;  %4881 = vpow2.f32 %v4469_v39 }
 0x944   :  { %v2845_v51 = vadd.f32 1.0, %v4878_v38 }
 0x945   :  { %v2789_v59 = vpop.f32.mrf.mxu2  ;;  %v2802_v49 = vpop.f32.mrf.mxu3 }
 0x946   :  { %4883 = vrcp.f32 %v2845_v51  ;;  %vm2881_vm5 = vweird.f32 %v2845_v51 }
 0x948   :  { %v4880_v40 = vpop.eup %4879 }
 0x949   :  { %v4882_v26 = vpop.eup %4881  ;;  %v2843_v61 = vadd.f32 1.0, %v4880_v40 }
 0x94a   :  { %v2844_v22 = vadd.f32 1.0, %v4882_v26 }
 0x94b   :  { %4885 = vrcp.f32 %v2843_v61  ;;  %v2857_v16 = vand.u32 2147483648, %v2843_v61  ;;  %v2855_v40 = vand.u32 2147483647, %v2843_v61  ;;  %vm2851_vm14 = vweird.f32 %v2843_v61 }
 0x94c   :  { %4887 = vrcp.f32 %v2844_v22  ;;  %v4884_v12 = vpop.eup %4883  ;;  %v2872_v59 = vand.u32 2147483648, %v2844_v22  ;;  %v2870_v26 = vand.u32 2147483647, %v2844_v22  ;;  %vm2866_vm0 = vweird.f32 %v2844_v22 }
 0x94d   :  { %v2877_v3 = vmul.f32 %v4884_v12, %v2845_v51  ;;  %4889 = vtanh.f32 %v2833_v32  ;;  %v2858_v60 = vor.u32 1.1754944e-38, %v2857_v16  ;;  %vm2856_vm1 = vcmp.eq.f32.partialorder %v2855_v40, 8.507059e+37 }
 0x94e   :  { %v2873_v32 = vor.u32 1.1754944e-38, %v2872_v59  ;;  %vm2871_vm3 = vcmp.eq.f32.partialorder %v2870_v26, 8.507059e+37  ;;  %vm2882_vm4 = vweird.f32 %v4884_v12  ;;  %v2887_v16 = vand.u32 2147483648, %v2845_v51  ;;  %v6537_v59 = vld [vmem:[#allocation21_spill] sm:$0xff] }
 0x94f   :  { %v2878_v55 = vsub.f32 1.0, %v2877_v3  ;;  %vm2883_vm6 = vmor %vm2881_vm5, %vm2882_vm4 }
 0x951   :  { %v4886_v21 = vpop.eup %4885  ;;  %v2879_v8 = vmul.f32 %v4884_v12, %v2878_v55 }
 0x952   :  { %v4888_v62 = vpop.eup %4887  ;;  %v2847_v58 = vmul.f32 %v4886_v21, %v2843_v61  ;;  %vm2852_vm12 = vweird.f32 %v4886_v21 }
 0x953   :  { %v2862_v1 = vmul.f32 %v4888_v62, %v2844_v22  ;;  %vm2867_vm13 = vweird.f32 %v4888_v62  ;;  %vm2853_vm15 = vmor %vm2851_vm14, %vm2852_vm12  ;;  %v2880_v61 = vadd.f32 %v4884_v12, %v2879_v8  ;;  %v2885_v22 = vand.u32 2147483647, %v2845_v51 }
 0x954   :  { %v2848_v39 = vsub.f32 1.0, %v2847_v58  ;;  %vm2868_vm2 = vmor %vm2866_vm0, %vm2867_vm13  ;;  %v4890_v58 = vpop.eup %4889 }
 0x955   :  { %v2863_v19 = vsub.f32 1.0, %v2862_v1  ;;  %vm2886_vm7 = vcmp.eq.f32.partialorder %v2885_v22, 8.507059e+37 }
 0x956   :  { %v2849_v38 = vmul.f32 %v4886_v21, %v2848_v39 }
 0x957   :  { %v2864_v49 = vmul.f32 %v4888_v62, %v2863_v19 }
 0x958   :  { %v2850_v56 = vadd.f32 %v4886_v21, %v2849_v38  ;;  %v2888_v38 = vor.u32 1.1754944e-38, %v2887_v16 }
 0x959   :  { %v2865_v53 = vadd.f32 %v4888_v62, %v2864_v49  ;;  %v2385_v49 = vadd.f32 %v6537_v59, %v6118_v14 }
 0x95a   :  { %v2854_v48 = vsel %vm2853_vm15, %v4886_v21, %v2850_v56  ;;  %v2884_v21 = vsel %vm2883_vm6, %v4884_v12, %v2880_v61  ;;  %v2356_v12 = vadd.f32 %v6089_v31, %v6116_v11 }
 0x95b   :  { %v2859_v1 = vsel %vm2856_vm1, %v2858_v60, %v2854_v48  ;;  %v2869_v39 = vsel %vm2868_vm2, %v4888_v62, %v2865_v53  ;;  %v2889_v62 = vsel %vm2886_vm7, %v2888_v38, %v2884_v21 }
 0x95c   :  { %v2893_v24 = vmul.f32 %v4890_v58, %v2859_v1  ;;  %v2874_v19 = vsel %vm2871_vm3, %v2873_v32, %v2869_v39 }
 0x95d   :  { %v2892_v30 = vmul.f32 %v2874_v19, %v6129_v18 }
 0x95f   :  { %v6195_v3 = vadd.f32 %v2893_v24, %v2892_v30  ;;  %v2414_v30 = vadd.f32 %v6164_v44, %v6122_v52 }
 0x961   :  { %4891 = vtanh.f32 %v6195_v3 }
 0x967   :  { %v4892_v48 = vpop.eup %4891 }
 0x968   :  { %v2896_v55 = vmul.f32 %v4892_v48, %v2889_v62  ;;  %v6538_v48 = vld [vmem:[#allocation39_spill] sm:$0xff]  ;;  %v6539_v62 = vld [vmem:[#allocation30_spill] sm:$0xff] }
 0x96a   :  { %v2897_v40 = vpack.c.bf16 %v2896_v55, %v2896_v55  ;;  %v2443_v55 = vadd.f32 %v6539_v62, %v6538_v48 }
 0x96c   :  { %2899 = vst [vmem:[#allocation4 + $0x4] sm:$0xf] %v2897_v40  ;;  %2912 = vmatmul.bf16.vlgmr.msra.gmra.mxu2 %v2897_v40  ;;  %2925 = vmatmul.bf16.vlgmr.msrb.gmra.mxu3 %v2897_v40 }
 0x96d   :  { %2938 = vmatmul.bf16.vlgmr.msrb.gmra.mxu0 %v2897_v40  ;;  %2951 = vmatmul.bf16.vlgmr.msra.gmra.mxu1 %v2897_v40 }
 0x96e   :  { %3156 = vmatpush.bf16.msra.mxu2 %v5919_v5  ;;  %3169 = vmatpush.bf16.msrb.mxu3 %v5923_v25 }
 0x96f   :  { %3182 = vmatpush.bf16.msrb.mxu0 %v5979_v45  ;;  %3195 = vmatpush.bf16.msra.mxu1 %v5982_v13 }
 0x972   :  { %3157 = vmatpush.bf16.msra.mxu2 %v5927_v34  ;;  %3170 = vmatpush.bf16.msrb.mxu3 %v5929_v42 }
 0x973   :  { %3183 = vmatpush.bf16.msrb.mxu0 %v5988_v43  ;;  %3196 = vmatpush.bf16.msra.mxu1 %v5991_v47 }
 0x976   :  { %3158 = vmatpush.bf16.msra.mxu2 %v5935_v57  ;;  %3171 = vmatpush.bf16.msrb.mxu3 %v5937_v10 }
 0x977   :  { %3184 = vmatpush.bf16.msrb.mxu0 %v5997_v0  ;;  %3197 = vmatpush.bf16.msra.mxu1 %v6001_v28 }
 0x97a   :  { %3159 = vmatpush.bf16.msra.mxu2 %v5943_v15  ;;  %3172 = vmatpush.bf16.msrb.mxu3 %v5945_v46 }
 0x97b   :  { %3185 = vmatpush.bf16.msrb.mxu0 %v6005_v27  ;;  %3198 = vmatpush.bf16.msra.mxu1 %v6007_v54 }
 0x97e   :  { %3160 = vmatpush.bf16.msra.mxu2 %v5951_v23  ;;  %3173 = vmatpush.bf16.msrb.mxu3 %v5953_v33 }
 0x97f   :  { %3186 = vmatpush.bf16.msrb.mxu0 %v6013_v37  ;;  %3199 = vmatpush.bf16.msra.mxu1 %v6017_v9 }
 0x982   :  { %3161 = vmatpush.bf16.msra.mxu2 %v5959_v63  ;;  %3174 = vmatpush.bf16.msrb.mxu3 %v5961_v6 }
 0x983   :  { %3187 = vmatpush.bf16.msrb.mxu0 %v6021_v50  ;;  %3200 = vmatpush.bf16.msra.mxu1 %v6023_v4 }
 0x986   :  { %3162 = vmatpush.bf16.msra.mxu2 %v5967_v35  ;;  %3175 = vmatpush.bf16.msrb.mxu3 %v5969_v29 }
 0x987   :  { %3188 = vmatpush.bf16.msrb.mxu0 %v6030_v17  ;;  %3201 = vmatpush.bf16.msra.mxu1 %v6034_v7 }
 0x98a   :  { %3163 = vmatpush.bf16.msra.mxu2 %v5975_v2  ;;  %3176 = vmatpush.bf16.msrb.mxu3 %v5977_v41 }
 0x98b   :  { %3189 = vmatpush.bf16.msrb.mxu0 %v6039_v20  ;;  %3202 = vmatpush.bf16.msra.mxu1 %v6041_v36 }
 0x9ea   :  { %v2939_v24 = vpop.f32.mrf.mxu0  ;;  %v2952_v18 = vpop.f32.mrf.mxu1 }
 0x9eb   :  { %v2958_v8 = vadd.f32 %v2939_v24, %v2414_v30  ;;  %v2959_v24 = vadd.f32 %v2952_v18, %v2443_v55 }
 0x9ed   :  { %v4473_v51 = vmul.f32 -1.442695, %v2958_v8 }
 0x9ef   :  { %4893 = vpow2.f32 %v4473_v51  ;;  %v2913_v26 = vpop.f32.mrf.mxu2  ;;  %v2926_v56 = vpop.f32.mrf.mxu3 }
 0x9f0   :  { %v2956_v60 = vadd.f32 %v2913_v26, %v2356_v12  ;;  %v2957_v53 = vadd.f32 %v2926_v56, %v2385_v49 }
 0x9f2   :  { %v4471_v32 = vmul.f32 -1.442695, %v2956_v60  ;;  %v4472_v58 = vmul.f32 -1.442695, %v2957_v53  ;;  %v2941_v1 = vpop.f32.mrf.mxu0  ;;  %v2954_v39 = vpop.f32.mrf.mxu1 }
 0x9f4   :  { %4895 = vpow2.f32 %v4471_v32 }
 0x9f5   :  { %v4894_v44 = vpop.eup %4893  ;;  %4897 = vpow2.f32 %v4472_v58 }
 0x9f6   :  { %v2971_v16 = vadd.f32 1.0, %v4894_v44 }
 0x9f7   :  { %v2915_v19 = vpop.f32.mrf.mxu2  ;;  %v2928_v61 = vpop.f32.mrf.mxu3 }
 0x9f8   :  { %4899 = vrcp.f32 %v2971_v16  ;;  %vm3007_vm1 = vweird.f32 %v2971_v16 }
 0x9fa   :  { %v4896_v22 = vpop.eup %4895 }
 0x9fb   :  { %v4898_v31 = vpop.eup %4897  ;;  %v2969_v21 = vadd.f32 1.0, %v4896_v22 }
 0x9fc   :  { %v2970_v38 = vadd.f32 1.0, %v4898_v31 }
 0x9fd   :  { %4901 = vrcp.f32 %v2969_v21  ;;  %v2983_v26 = vand.u32 2147483648, %v2969_v21  ;;  %v2981_v53 = vand.u32 2147483647, %v2969_v21  ;;  %vm2977_vm10 = vweird.f32 %v2969_v21 }
 0x9fe   :  { %4903 = vrcp.f32 %v2970_v38  ;;  %v4900_v40 = vpop.eup %4899  ;;  %v2998_v32 = vand.u32 2147483648, %v2970_v38  ;;  %v2996_v1 = vand.u32 2147483647, %v2970_v38  ;;  %vm2992_vm12 = vweird.f32 %v2970_v38 }
 0x9ff   :  { %v3003_v59 = vmul.f32 %v4900_v40, %v2971_v16  ;;  %4905 = vtanh.f32 %v2959_v24  ;;  %v2984_v18 = vor.u32 1.1754944e-38, %v2983_v26  ;;  %vm2982_vm13 = vcmp.eq.f32.partialorder %v2981_v53, 8.507059e+37 }
 0xa00   :  { %v2999_v22 = vor.u32 1.1754944e-38, %v2998_v32  ;;  %vm2997_vm15 = vcmp.eq.f32.partialorder %v2996_v1, 8.507059e+37  ;;  %vm3008_vm0 = vweird.f32 %v4900_v40  ;;  %v3013_v26 = vand.u32 2147483648, %v2971_v16 }
 0xa01   :  { %v3004_v39 = vsub.f32 1.0, %v3003_v59  ;;  %vm3009_vm2 = vmor %vm3007_vm1, %vm3008_vm0 }
 0xa03   :  { %v4902_v30 = vpop.eup %4901  ;;  %v3005_v24 = vmul.f32 %v4900_v40, %v3004_v39 }
 0xa04   :  { %v4904_v8 = vpop.eup %4903  ;;  %v2973_v51 = vmul.f32 %v4902_v30, %v2969_v21  ;;  %vm2978_vm8 = vweird.f32 %v4902_v30 }
 0xa05   :  { %v2988_v12 = vmul.f32 %v4904_v8, %v2970_v38  ;;  %vm2993_vm9 = vweird.f32 %v4904_v8  ;;  %vm2979_vm11 = vmor %vm2977_vm10, %vm2978_vm8  ;;  %v4906_v31 = vpop.eup %4905  ;;  %v3006_v21 = vadd.f32 %v4900_v40, %v3005_v24  ;;  %v3011_v38 = vand.u32 2147483647, %v2971_v16 }
 0xa06   :  { %v2974_v49 = vsub.f32 1.0, %v2973_v51  ;;  %vm2994_vm14 = vmor %vm2992_vm12, %vm2993_vm9 }
 0xa07   :  { %v2989_v56 = vsub.f32 1.0, %v2988_v12  ;;  %vm3012_vm3 = vcmp.eq.f32.partialorder %v3011_v38, 8.507059e+37 }
 0xa08   :  { %v2975_v60 = vmul.f32 %v4902_v30, %v2974_v49 }
 0xa09   :  { %v2990_v58 = vmul.f32 %v4904_v8, %v2989_v56  ;;  %v3014_v56 = vor.u32 1.1754944e-38, %v3013_v26 }
 0xa0a   :  { %v2976_v44 = vadd.f32 %v4902_v30, %v2975_v60 }
 0xa0b   :  { %v2991_v19 = vadd.f32 %v4904_v8, %v2990_v58 }
 0xa0c   :  { %v2980_v61 = vsel %vm2979_vm11, %v4902_v30, %v2976_v44  ;;  %v3010_v30 = vsel %vm3009_vm2, %v4900_v40, %v3006_v21  ;;  %v6541_v44 = vld [vmem:[#allocation23_spill] sm:$0xff] }
 0xa0d   :  { %v2985_v62 = vsel %vm2982_vm13, %v2984_v18, %v2980_v61  ;;  %v2995_v55 = vsel %vm2994_vm14, %v4904_v8, %v2991_v19  ;;  %v3015_v60 = vsel %vm3012_vm3, %v3014_v56, %v3010_v30  ;;  %v2358_v18 = vadd.f32 %v6541_v44, %v6116_v11  ;;  %v6542_v19 = vld [vmem:[#allocation22_spill] sm:$0xff] }
 0xa0e   :  { %v3019_v51 = vmul.f32 %v4906_v31, %v2985_v62  ;;  %v3000_v12 = vsel %vm2997_vm15, %v2999_v22, %v2995_v55  ;;  %v2387_v61 = vadd.f32 %v6542_v19, %v6118_v14 }
 0xa0f   :  { %v3018_v49 = vmul.f32 %v3000_v12, %v6195_v3  ;;  %v6540_v3 = vld [vmem:[#allocation32_spill] sm:$0xff] }
 0xa10   :  { %v2416_v16 = vadd.f32 %v6540_v3, %v6122_v52 }
 0xa11   :  { %v6239_v59 = vadd.f32 %v3019_v51, %v3018_v49 }
 0xa13   :  { %4907 = vtanh.f32 %v6239_v59 }
 0xa19   :  { %v4908_v8 = vpop.eup %4907 }
 0xa1a   :  { %v3022_v53 = vmul.f32 %v4908_v8, %v3015_v60 }
 0xa1c   :  { %v3023_v32 = vpack.c.bf16 %v3022_v53, %v3022_v53 }
 0xa1e   :  { %3025 = vst [vmem:[#allocation4 + $0x8] sm:$0xf] %v3023_v32  ;;  %3038 = vmatmul.bf16.vlgmr.msrb.gmra.mxu2 %v3023_v32  ;;  %3051 = vmatmul.bf16.vlgmr.msra.gmra.mxu3 %v3023_v32 }
 0xa1f   :  { %3064 = vmatmul.bf16.vlgmr.msra.gmra.mxu0 %v3023_v32  ;;  %3077 = vmatmul.bf16.vlgmr.msrb.gmra.mxu1 %v3023_v32  ;;  %v6543_v32 = vld [vmem:[#allocation31_spill] sm:$0xff] }
 0xa20   :  { %3282 = vmatpush.bf16.msrb.mxu2 %v5919_v5  ;;  %3295 = vmatpush.bf16.msra.mxu3 %v5923_v25  ;;  %v2445_v3 = vadd.f32 %v6543_v32, %v6538_v48 }
 0xa21   :  { %3308 = vmatpush.bf16.msra.mxu0 %v5979_v45  ;;  %3321 = vmatpush.bf16.msrb.mxu1 %v5982_v13 }
 0xa24   :  { %3283 = vmatpush.bf16.msrb.mxu2 %v5927_v34  ;;  %3296 = vmatpush.bf16.msra.mxu3 %v5929_v42 }
 0xa25   :  { %3309 = vmatpush.bf16.msra.mxu0 %v5988_v43  ;;  %3322 = vmatpush.bf16.msrb.mxu1 %v5991_v47 }
 0xa28   :  { %3284 = vmatpush.bf16.msrb.mxu2 %v5935_v57  ;;  %3297 = vmatpush.bf16.msra.mxu3 %v5937_v10 }
 0xa29   :  { %3310 = vmatpush.bf16.msra.mxu0 %v5997_v0  ;;  %3323 = vmatpush.bf16.msrb.mxu1 %v6001_v28 }
 0xa2c   :  { %3285 = vmatpush.bf16.msrb.mxu2 %v5943_v15  ;;  %3298 = vmatpush.bf16.msra.mxu3 %v5945_v46 }
 0xa2d   :  { %3311 = vmatpush.bf16.msra.mxu0 %v6005_v27  ;;  %3324 = vmatpush.bf16.msrb.mxu1 %v6007_v54 }
 0xa30   :  { %3286 = vmatpush.bf16.msrb.mxu2 %v5951_v23  ;;  %3299 = vmatpush.bf16.msra.mxu3 %v5953_v33 }
 0xa31   :  { %3312 = vmatpush.bf16.msra.mxu0 %v6013_v37  ;;  %3325 = vmatpush.bf16.msrb.mxu1 %v6017_v9 }
 0xa34   :  { %3287 = vmatpush.bf16.msrb.mxu2 %v5959_v63  ;;  %3300 = vmatpush.bf16.msra.mxu3 %v5961_v6 }
 0xa35   :  { %3313 = vmatpush.bf16.msra.mxu0 %v6021_v50  ;;  %3326 = vmatpush.bf16.msrb.mxu1 %v6023_v4 }
 0xa38   :  { %3288 = vmatpush.bf16.msrb.mxu2 %v5967_v35  ;;  %3301 = vmatpush.bf16.msra.mxu3 %v5969_v29 }
 0xa39   :  { %3314 = vmatpush.bf16.msra.mxu0 %v6030_v17  ;;  %3327 = vmatpush.bf16.msrb.mxu1 %v6034_v7 }
 0xa3c   :  { %3289 = vmatpush.bf16.msrb.mxu2 %v5975_v2  ;;  %3302 = vmatpush.bf16.msra.mxu3 %v5977_v41 }
 0xa3d   :  { %3315 = vmatpush.bf16.msra.mxu0 %v6039_v20  ;;  %3328 = vmatpush.bf16.msrb.mxu1 %v6041_v36 }
 0xa9c   :  { %v3065_v40 = vpop.f32.mrf.mxu0  ;;  %v3078_v58 = vpop.f32.mrf.mxu1 }
 0xa9d   :  { %v3084_v1 = vadd.f32 %v3065_v40, %v2416_v16 }
 0xa9f   :  { %v4476_v39 = vmul.f32 -1.442695, %v3084_v1  ;;  %v3085_v1 = vadd.f32 %v3078_v58, %v2445_v3 }
 0xaa1   :  { %4909 = vpow2.f32 %v4476_v39  ;;  %v3039_v22 = vpop.f32.mrf.mxu2  ;;  %v3052_v31 = vpop.f32.mrf.mxu3 }
 0xaa2   :  { %v3082_v62 = vadd.f32 %v3039_v22, %v2358_v18  ;;  %v3083_v55 = vadd.f32 %v3052_v31, %v2387_v61 }
 0xaa4   :  { %v4474_v24 = vmul.f32 -1.442695, %v3082_v62  ;;  %v4475_v51 = vmul.f32 -1.442695, %v3083_v55  ;;  %v3067_v12 = vpop.f32.mrf.mxu0  ;;  %v3080_v49 = vpop.f32.mrf.mxu1 }
 0xaa6   :  { %4911 = vpow2.f32 %v4474_v24 }
 0xaa7   :  { %v4910_v21 = vpop.eup %4909  ;;  %4913 = vpow2.f32 %v4475_v51 }
 0xaa8   :  { %v3097_v30 = vadd.f32 1.0, %v4910_v21 }
 0xaa9   :  { %v3041_v26 = vpop.f32.mrf.mxu2  ;;  %v3054_v38 = vpop.f32.mrf.mxu3 }
 0xaaa   :  { %4915 = vrcp.f32 %v3097_v30  ;;  %vm3133_vm13 = vweird.f32 %v3097_v30 }
 0xaac   :  { %v4912_v56 = vpop.eup %4911 }
 0xaad   :  { %v4914_v8 = vpop.eup %4913  ;;  %v3095_v60 = vadd.f32 1.0, %v4912_v56 }
 0xaae   :  { %v3096_v53 = vadd.f32 1.0, %v4914_v8 }
 0xaaf   :  { %4917 = vrcp.f32 %v3095_v60  ;;  %v3109_v22 = vand.u32 2147483648, %v3095_v60  ;;  %v3107_v55 = vand.u32 2147483647, %v3095_v60  ;;  %vm3103_vm6 = vweird.f32 %v3095_v60 }
 0xab0   :  { %4919 = vrcp.f32 %v3096_v53  ;;  %v4916_v16 = vpop.eup %4915  ;;  %v3124_v24 = vand.u32 2147483648, %v3096_v53  ;;  %v3122_v12 = vand.u32 2147483647, %v3096_v53  ;;  %vm3118_vm8 = vweird.f32 %v3096_v53 }
 0xab1   :  { %v3129_v19 = vmul.f32 %v4916_v16, %v3097_v30  ;;  %4921 = vtanh.f32 %v3085_v1  ;;  %v3110_v58 = vor.u32 1.1754944e-38, %v3109_v22  ;;  %vm3108_vm9 = vcmp.eq.f32.partialorder %v3107_v55, 8.507059e+37 }
 0xab2   :  { %v3125_v56 = vor.u32 1.1754944e-38, %v3124_v24  ;;  %vm3123_vm11 = vcmp.eq.f32.partialorder %v3122_v12, 8.507059e+37  ;;  %vm3134_vm12 = vweird.f32 %v4916_v16  ;;  %v3139_v22 = vand.u32 2147483648, %v3097_v30 }
 0xab3   :  { %v3130_v49 = vsub.f32 1.0, %v3129_v19  ;;  %vm3135_vm14 = vmor %vm3133_vm13, %vm3134_vm12 }
 0xab5   :  { %v4918_v40 = vpop.eup %4917  ;;  %v3131_v1 = vmul.f32 %v4916_v16, %v3130_v49 }
 0xab6   :  { %v4920_v39 = vpop.eup %4919  ;;  %v3099_v44 = vmul.f32 %v4918_v40, %v3095_v60  ;;  %vm3104_vm4 = vweird.f32 %v4918_v40 }
 0xab7   :  { %v3114_v18 = vmul.f32 %v4920_v39, %v3096_v53  ;;  %vm3119_vm5 = vweird.f32 %v4920_v39  ;;  %vm3105_vm7 = vmor %vm3103_vm6, %vm3104_vm4  ;;  %v4922_v8 = vpop.eup %4921  ;;  %v3132_v60 = vadd.f32 %v4916_v16, %v3131_v1  ;;  %v3137_v53 = vand.u32 2147483647, %v3097_v30 }
 0xab8   :  { %v3100_v61 = vsub.f32 1.0, %v3099_v44  ;;  %vm3120_vm10 = vmor %vm3118_vm8, %vm3119_vm5 }
 0xab9   :  { %v3115_v31 = vsub.f32 1.0, %v3114_v18  ;;  %vm3138_vm15 = vcmp.eq.f32.partialorder %v3137_v53, 8.507059e+37 }
 0xaba   :  { %v3101_v62 = vmul.f32 %v4918_v40, %v3100_v61 }
 0xabb   :  { %v3116_v51 = vmul.f32 %v4920_v39, %v3115_v31  ;;  %v3140_v31 = vor.u32 1.1754944e-38, %v3139_v22 }
 0xabc   :  { %v3102_v21 = vadd.f32 %v4918_v40, %v3101_v62 }
 0xabd   :  { %v3117_v26 = vadd.f32 %v4920_v39, %v3116_v51 }
 0xabe   :  { %v3106_v38 = vsel %vm3105_vm7, %v4918_v40, %v3102_v21  ;;  %v3136_v40 = vsel %vm3135_vm14, %v4916_v16, %v3132_v60  ;;  %v6545_v21 = vld [vmem:[#allocation24_spill] sm:$0xff] }
 0xabf   :  { %v3111_v32 = vsel %vm3108_vm9, %v3110_v58, %v3106_v38  ;;  %v3121_v3 = vsel %vm3120_vm10, %v4920_v39, %v3117_v26  ;;  %v3141_v62 = vsel %vm3138_vm15, %v3140_v31, %v3136_v40  ;;  %v2361_v58 = vadd.f32 %v6545_v21, %v6116_v11  ;;  %v6546_v26 = vld [vmem:[#allocation26_spill] sm:$0xff] }
 0xac0   :  { %v3145_v44 = vmul.f32 %v4922_v8, %v3111_v32  ;;  %v3126_v18 = vsel %vm3123_vm11, %v3125_v56, %v3121_v3  ;;  %v2390_v38 = vadd.f32 %v6546_v26, %v6118_v14 }
 0xac1   :  { %v3144_v61 = vmul.f32 %v3126_v18, %v6239_v59  ;;  %v6544_v59 = vld [vmem:[#allocation40_spill] sm:$0xff] }
 0xac2   :  { %v2419_v30 = vadd.f32 %v6544_v59, %v6122_v52 }
 0xac3   :  { %v6283_v19 = vadd.f32 %v3145_v44, %v3144_v61 }
 0xac5   :  { %4923 = vtanh.f32 %v6283_v19 }
 0xacb   :  { %v4924_v39 = vpop.eup %4923 }
 0xacc   :  { %v3148_v55 = vmul.f32 %v4924_v39, %v3141_v62 }
 0xace   :  { %v3149_v24 = vpack.c.bf16 %v3148_v55, %v3148_v55 }
 0xad0   :  { %3151 = vst [vmem:[#allocation4 + $0xc] sm:$0xf] %v3149_v24  ;;  %3164 = vmatmul.bf16.vlgmr.msra.gmra.mxu2 %v3149_v24  ;;  %3177 = vmatmul.bf16.vlgmr.msrb.gmra.mxu3 %v3149_v24 }
 0xad1   :  { %3190 = vmatmul.bf16.vlgmr.msrb.gmra.mxu0 %v3149_v24  ;;  %3203 = vmatmul.bf16.vlgmr.msra.gmra.mxu1 %v3149_v24  ;;  %v6547_v24 = vld [vmem:[#allocation33_spill] sm:$0xff] }
 0xad2   :  { %3408 = vmatpush.bf16.msra.mxu2 %v5919_v5  ;;  %3421 = vmatpush.bf16.msrb.mxu3 %v5923_v25  ;;  %v2448_v59 = vadd.f32 %v6547_v24, %v6538_v48 }
 0xad3   :  { %3434 = vmatpush.bf16.msrb.mxu0 %v5979_v45  ;;  %3447 = vmatpush.bf16.msra.mxu1 %v5982_v13 }
 0xad6   :  { %3409 = vmatpush.bf16.msra.mxu2 %v5927_v34  ;;  %3422 = vmatpush.bf16.msrb.mxu3 %v5929_v42 }
 0xad7   :  { %3435 = vmatpush.bf16.msrb.mxu0 %v5988_v43  ;;  %3448 = vmatpush.bf16.msra.mxu1 %v5991_v47 }
 0xada   :  { %3410 = vmatpush.bf16.msra.mxu2 %v5935_v57  ;;  %3423 = vmatpush.bf16.msrb.mxu3 %v5937_v10 }
 0xadb   :  { %3436 = vmatpush.bf16.msrb.mxu0 %v5997_v0  ;;  %3449 = vmatpush.bf16.msra.mxu1 %v6001_v28 }
 0xade   :  { %3411 = vmatpush.bf16.msra.mxu2 %v5943_v15  ;;  %3424 = vmatpush.bf16.msrb.mxu3 %v5945_v46 }
 0xadf   :  { %3437 = vmatpush.bf16.msrb.mxu0 %v6005_v27  ;;  %3450 = vmatpush.bf16.msra.mxu1 %v6007_v54 }
 0xae2   :  { %3412 = vmatpush.bf16.msra.mxu2 %v5951_v23  ;;  %3425 = vmatpush.bf16.msrb.mxu3 %v5953_v33 }
 0xae3   :  { %3438 = vmatpush.bf16.msrb.mxu0 %v6013_v37  ;;  %3451 = vmatpush.bf16.msra.mxu1 %v6017_v9 }
 0xae6   :  { %3413 = vmatpush.bf16.msra.mxu2 %v5959_v63  ;;  %3426 = vmatpush.bf16.msrb.mxu3 %v5961_v6 }
 0xae7   :  { %3439 = vmatpush.bf16.msrb.mxu0 %v6021_v50  ;;  %3452 = vmatpush.bf16.msra.mxu1 %v6023_v4 }
 0xaea   :  { %3414 = vmatpush.bf16.msra.mxu2 %v5967_v35  ;;  %3427 = vmatpush.bf16.msrb.mxu3 %v5969_v29 }
 0xaeb   :  { %3440 = vmatpush.bf16.msrb.mxu0 %v6030_v17  ;;  %3453 = vmatpush.bf16.msra.mxu1 %v6034_v7 }
 0xaee   :  { %3415 = vmatpush.bf16.msra.mxu2 %v5975_v2  ;;  %3428 = vmatpush.bf16.msrb.mxu3 %v5977_v41 }
 0xaef   :  { %3441 = vmatpush.bf16.msrb.mxu0 %v6039_v20  ;;  %3454 = vmatpush.bf16.msra.mxu1 %v6041_v36 }
 0xb4e   :  { %v3191_v16 = vpop.f32.mrf.mxu0  ;;  %v3204_v51 = vpop.f32.mrf.mxu1 }
 0xb4f   :  { %v3210_v12 = vadd.f32 %v3191_v16, %v2419_v30 }
 0xb51   :  { %v4479_v49 = vmul.f32 -1.442695, %v3210_v12  ;;  %v3211_v12 = vadd.f32 %v3204_v51, %v2448_v59 }
 0xb53   :  { %4925 = vpow2.f32 %v4479_v49  ;;  %v3165_v56 = vpop.f32.mrf.mxu2  ;;  %v3178_v8 = vpop.f32.mrf.mxu3 }
 0xb54   :  { %v3208_v32 = vadd.f32 %v3165_v56, %v2361_v58  ;;  %v3209_v3 = vadd.f32 %v3178_v8, %v2390_v38 }
 0xb56   :  { %v4477_v1 = vmul.f32 -1.442695, %v3208_v32  ;;  %v4478_v44 = vmul.f32 -1.442695, %v3209_v3  ;;  %v3193_v18 = vpop.f32.mrf.mxu0  ;;  %v3206_v61 = vpop.f32.mrf.mxu1 }
 0xb58   :  { %4927 = vpow2.f32 %v4477_v1 }
 0xb59   :  { %v4926_v60 = vpop.eup %4925  ;;  %4929 = vpow2.f32 %v4478_v44 }
 0xb5a   :  { %v3223_v40 = vadd.f32 1.0, %v4926_v60 }
 0xb5b   :  { %v3167_v22 = vpop.f32.mrf.mxu2  ;;  %v3180_v53 = vpop.f32.mrf.mxu3 }
 0xb5c   :  { %4931 = vrcp.f32 %v3223_v40  ;;  %vm3259_vm9 = vweird.f32 %v3223_v40 }
 0xb5e   :  { %v4928_v31 = vpop.eup %4927 }
 0xb5f   :  { %v4930_v39 = vpop.eup %4929  ;;  %v3221_v62 = vadd.f32 1.0, %v4928_v31 }
 0xb60   :  { %v3222_v55 = vadd.f32 1.0, %v4930_v39 }
 0xb61   :  { %4933 = vrcp.f32 %v3221_v62  ;;  %v3235_v56 = vand.u32 2147483648, %v3221_v62  ;;  %v3233_v3 = vand.u32 2147483647, %v3221_v62  ;;  %vm3229_vm2 = vweird.f32 %v3221_v62 }
 0xb62   :  { %4935 = vrcp.f32 %v3222_v55  ;;  %v4932_v30 = vpop.eup %4931  ;;  %v3250_v1 = vand.u32 2147483648, %v3222_v55  ;;  %v3248_v18 = vand.u32 2147483647, %v3222_v55  ;;  %vm3244_vm4 = vweird.f32 %v3222_v55 }
 0xb63   :  { %v3255_v26 = vmul.f32 %v4932_v30, %v3223_v40  ;;  %4937 = vtanh.f32 %v3211_v12  ;;  %v3236_v51 = vor.u32 1.1754944e-38, %v3235_v56  ;;  %vm3234_vm5 = vcmp.eq.f32.partialorder %v3233_v3, 8.507059e+37 }
 0xb64   :  { %v3251_v31 = vor.u32 1.1754944e-38, %v3250_v1  ;;  %vm3249_vm7 = vcmp.eq.f32.partialorder %v3248_v18, 8.507059e+37  ;;  %vm3260_vm8 = vweird.f32 %v4932_v30  ;;  %v3265_v56 = vand.u32 2147483648, %v3223_v40 }
 0xb65   :  { %v3256_v61 = vsub.f32 1.0, %v3255_v26  ;;  %vm3261_vm10 = vmor %vm3259_vm9, %vm3260_vm8 }
 0xb67   :  { %v4934_v16 = vpop.eup %4933  ;;  %v3257_v12 = vmul.f32 %v4932_v30, %v3256_v61 }
 0xb68   :  { %v4936_v49 = vpop.eup %4935  ;;  %v3225_v21 = vmul.f32 %v4934_v16, %v3221_v62  ;;  %vm3230_vm0 = vweird.f32 %v4934_v16 }
 0xb69   :  { %v3240_v58 = vmul.f32 %v4936_v49, %v3222_v55  ;;  %vm3245_vm1 = vweird.f32 %v4936_v49  ;;  %vm3231_vm3 = vmor %vm3229_vm2, %vm3230_vm0  ;;  %v4938_v39 = vpop.eup %4937  ;;  %v3258_v62 = vadd.f32 %v4932_v30, %v3257_v12  ;;  %v3263_v55 = vand.u32 2147483647, %v3223_v40 }
 0xb6a   :  { %v3226_v38 = vsub.f32 1.0, %v3225_v21  ;;  %vm3246_vm6 = vmor %vm3244_vm4, %vm3245_vm1 }
 0xb6b   :  { %v3241_v8 = vsub.f32 1.0, %v3240_v58  ;;  %vm3264_vm11 = vcmp.eq.f32.partialorder %v3263_v55, 8.507059e+37 }
 0xb6c   :  { %v3227_v32 = vmul.f32 %v4934_v16, %v3226_v38 }
 0xb6d   :  { %v3242_v44 = vmul.f32 %v4936_v49, %v3241_v8  ;;  %v3266_v8 = vor.u32 1.1754944e-38, %v3265_v56 }
 0xb6e   :  { %v3228_v60 = vadd.f32 %v4934_v16, %v3227_v32 }
 0xb6f   :  { %v3243_v22 = vadd.f32 %v4936_v49, %v3242_v44 }
 0xb70   :  { %v3232_v53 = vsel %vm3231_vm3, %v4934_v16, %v3228_v60  ;;  %v3262_v16 = vsel %vm3261_vm10, %v4932_v30, %v3258_v62 }
 0xb71   :  { %v3237_v24 = vsel %vm3234_vm5, %v3236_v51, %v3232_v53  ;;  %v3247_v59 = vsel %vm3246_vm6, %v4936_v49, %v3243_v22  ;;  %v3267_v32 = vsel %vm3264_vm11, %v3266_v8, %v3262_v16 }
 0xb72   :  { %v3271_v21 = vmul.f32 %v4938_v39, %v3237_v24  ;;  %v3252_v58 = vsel %vm3249_vm7, %v3251_v31, %v3247_v59 }
 0xb73   :  { %v3270_v38 = vmul.f32 %v3252_v58, %v6283_v19 }
 0xb75   :  { %v6327_v26 = vadd.f32 %v3271_v21, %v3270_v38 }
 0xb77   :  { %4939 = vtanh.f32 %v6327_v26 }
 0xb7d   :  { %v4940_v49 = vpop.eup %4939 }
 0xb7e   :  { %v3274_v3 = vmul.f32 %v4940_v49, %v3267_v32 }
 0xb80   :  { %v3275_v1 = vpack.c.bf16 %v3274_v3, %v3274_v3 }
 0xb82   :  { %3277 = vst [vmem:[#allocation4 + $0x10] sm:$0xf] %v3275_v1  ;;  %3290 = vmatmul.bf16.vlgmr.msrb.gmra.mxu2 %v3275_v1  ;;  %3303 = vmatmul.bf16.vlgmr.msra.gmra.mxu3 %v3275_v1 }
 0xb83   :  { %3316 = vmatmul.bf16.vlgmr.msra.gmra.mxu0 %v3275_v1  ;;  %3329 = vmatmul.bf16.vlgmr.msrb.gmra.mxu1 %v3275_v1 }
 0xb84   :  { %3534 = vmatpush.bf16.msrb.mxu2 %v5919_v5  ;;  %3547 = vmatpush.bf16.msra.mxu3 %v5923_v25  ;;  %v6548_v5 = vld [vmem:[#allocation35_spill] sm:$0xff] }
 0xb85   :  { %3560 = vmatpush.bf16.msra.mxu0 %v5979_v45  ;;  %3573 = vmatpush.bf16.msrb.mxu1 %v5982_v13  ;;  %v2421_v25 = vadd.f32 %v6548_v5, %v6122_v52 }
 0xb88   :  { %3535 = vmatpush.bf16.msrb.mxu2 %v5927_v34  ;;  %3548 = vmatpush.bf16.msra.mxu3 %v5929_v42 }
 0xb89   :  { %3561 = vmatpush.bf16.msra.mxu0 %v5988_v43  ;;  %3574 = vmatpush.bf16.msrb.mxu1 %v5991_v47 }
 0xb8c   :  { %3536 = vmatpush.bf16.msrb.mxu2 %v5935_v57  ;;  %3549 = vmatpush.bf16.msra.mxu3 %v5937_v10 }
 0xb8d   :  { %3562 = vmatpush.bf16.msra.mxu0 %v5997_v0  ;;  %3575 = vmatpush.bf16.msrb.mxu1 %v6001_v28 }
 0xb90   :  { %3537 = vmatpush.bf16.msrb.mxu2 %v5943_v15  ;;  %3550 = vmatpush.bf16.msra.mxu3 %v5945_v46  ;;  %v6549_v15 = vld [vmem:[#allocation20_spill] sm:$0xff] }
 0xb91   :  { %3563 = vmatpush.bf16.msra.mxu0 %v6005_v27  ;;  %3576 = vmatpush.bf16.msrb.mxu1 %v6007_v54  ;;  %v2363_v46 = vadd.f32 %v6549_v15, %v6116_v11 }
 0xb94   :  { %3538 = vmatpush.bf16.msrb.mxu2 %v5951_v23  ;;  %3551 = vmatpush.bf16.msra.mxu3 %v5953_v33  ;;  %v6550_v23 = vld [vmem:[#allocation25_spill] sm:$0xff] }
 0xb95   :  { %3564 = vmatpush.bf16.msra.mxu0 %v6013_v37  ;;  %3577 = vmatpush.bf16.msrb.mxu1 %v6017_v9  ;;  %v2392_v33 = vadd.f32 %v6550_v23, %v6118_v14 }
 0xb98   :  { %3539 = vmatpush.bf16.msrb.mxu2 %v5959_v63  ;;  %3552 = vmatpush.bf16.msra.mxu3 %v5961_v6 }
 0xb99   :  { %3565 = vmatpush.bf16.msra.mxu0 %v6021_v50  ;;  %3578 = vmatpush.bf16.msrb.mxu1 %v6023_v4  ;;  %v6551_v50 = vld [vmem:[#allocation34_spill] sm:$0xff] }
 0xb9a   :  { %v2450_v4 = vadd.f32 %v6551_v50, %v6538_v48  ;;  %v4706_v50 = vld [vmem:[#allocation15 + $0x28] sm:$0xff] }
 0xb9c   :  { %3540 = vmatpush.bf16.msrb.mxu2 %v5967_v35  ;;  %3553 = vmatpush.bf16.msra.mxu3 %v5969_v29 }
 0xb9d   :  { %3566 = vmatpush.bf16.msra.mxu0 %v6030_v17  ;;  %3579 = vmatpush.bf16.msrb.mxu1 %v6034_v7 }
 0xba0   :  { %3541 = vmatpush.bf16.msrb.mxu2 %v5975_v2  ;;  %3554 = vmatpush.bf16.msra.mxu3 %v5977_v41 }
 0xba1   :  { %3567 = vmatpush.bf16.msra.mxu0 %v6039_v20  ;;  %3580 = vmatpush.bf16.msrb.mxu1 %v6041_v36 }
 0xc00   :  { %v3317_v34 = vpop.f32.mrf.mxu0  ;;  %v3330_v42 = vpop.f32.mrf.mxu1 }
 0xc01   :  { %v3336_v57 = vadd.f32 %v3317_v34, %v2421_v25  ;;  %v3337_v20 = vadd.f32 %v3330_v42, %v2450_v4 }
 0xc03   :  { %v4482_v10 = vmul.f32 -1.442695, %v3336_v57 }
 0xc05   :  { %4941 = vpow2.f32 %v4482_v10  ;;  %v3291_v63 = vpop.f32.mrf.mxu2  ;;  %v3304_v6 = vpop.f32.mrf.mxu3 }
 0xc06   :  { %v3334_v35 = vadd.f32 %v3291_v63, %v2363_v46  ;;  %v3335_v29 = vadd.f32 %v3304_v6, %v2392_v33 }
 0xc08   :  { %v4480_v2 = vmul.f32 -1.442695, %v3334_v35  ;;  %v4481_v41 = vmul.f32 -1.442695, %v3335_v29  ;;  %v3319_v45 = vpop.f32.mrf.mxu0  ;;  %v3332_v13 = vpop.f32.mrf.mxu1  ;;  %v4708_v35 = vld [vmem:[#allocation15 + $0x38] sm:$0xff]  ;;  %v6553_v29 = vld [vmem:[#allocation38_spill] sm:$0xff] }
 0xc0a   :  { %4943 = vpow2.f32 %v4480_v2  ;;  %v2366_v2 = vadd.f32 %v6553_v29, %v6116_v11 }
 0xc0b   :  { %v4942_v43 = vpop.eup %4941  ;;  %4945 = vpow2.f32 %v4481_v41  ;;  %v6554_v41 = vld [vmem:[#allocation27_spill] sm:$0xff] }
 0xc0c   :  { %v3349_v28 = vadd.f32 1.0, %v4942_v43  ;;  %v2395_v45 = vadd.f32 %v6554_v41, %v6118_v14 }
 0xc0d   :  { %v3293_v47 = vpop.f32.mrf.mxu2  ;;  %v3306_v0 = vpop.f32.mrf.mxu3 }
 0xc0e   :  { %4947 = vrcp.f32 %v3349_v28  ;;  %v3391_v1 = vand.u32 2147483648, %v3349_v28  ;;  %vm3385_vm5 = vweird.f32 %v3349_v28  ;;  %v3389_v5 = vand.u32 2147483647, %v3349_v28  ;;  %v4707_v47 = vld [vmem:[#allocation15 + $0x30] sm:$0xff] }
 0xc10   :  { %v4944_v27 = vpop.eup %4943  ;;  %v3392_v34 = vor.u32 1.1754944e-38, %v3391_v1  ;;  %vm3390_vm7 = vcmp.eq.f32.partialorder %v3389_v5, 8.507059e+37 }
 0xc11   :  { %v4946_v54 = vpop.eup %4945  ;;  %v3347_v37 = vadd.f32 1.0, %v4944_v27 }
 0xc12   :  { %v3348_v9 = vadd.f32 1.0, %v4946_v54 }
 0xc13   :  { %4949 = vrcp.f32 %v3347_v37  ;;  %v3361_v18 = vand.u32 2147483648, %v3347_v37  ;;  %v3359_v51 = vand.u32 2147483647, %v3347_v37  ;;  %vm3355_vm14 = vweird.f32 %v3347_v37 }
 0xc14   :  { %4951 = vrcp.f32 %v3348_v9  ;;  %v4948_v17 = vpop.eup %4947  ;;  %v3376_v22 = vand.u32 2147483648, %v3348_v9  ;;  %v3374_v31 = vand.u32 2147483647, %v3348_v9  ;;  %vm3370_vm0 = vweird.f32 %v3348_v9 }
 0xc15   :  { %v3381_v30 = vmul.f32 %v4948_v17, %v3349_v28  ;;  %4953 = vtanh.f32 %v3337_v20  ;;  %v3362_v59 = vor.u32 1.1754944e-38, %v3361_v18  ;;  %vm3360_vm1 = vcmp.eq.f32.partialorder %v3359_v51, 8.507059e+37  ;;  %v4705_v20 = vld [vmem:[#allocation15 + $0x20] sm:$0xff]  ;;  %v4704_v18 = vld [vmem:[#allocation15 + $0x18] sm:$0xff] }
 0xc16   :  { %v3377_v58 = vor.u32 1.1754944e-38, %v3376_v22  ;;  %vm3375_vm3 = vcmp.eq.f32.partialorder %v3374_v31, 8.507059e+37  ;;  %vm3386_vm4 = vweird.f32 %v4948_v17 }
 0xc17   :  { %v3382_v39 = vsub.f32 1.0, %v3381_v30  ;;  %vm3387_vm6 = vmor %vm3385_vm5, %vm3386_vm4 }
 0xc19   :  { %v4950_v7 = vpop.eup %4949  ;;  %v3383_v55 = vmul.f32 %v4948_v17, %v3382_v39 }
 0xc1a   :  { %v4952_v36 = vpop.eup %4951  ;;  %v3351_v19 = vmul.f32 %v4950_v7, %v3347_v37  ;;  %vm3356_vm12 = vweird.f32 %v4950_v7 }
 0xc1b   :  { %v3366_v40 = vmul.f32 %v4952_v36, %v3348_v9  ;;  %vm3371_vm13 = vweird.f32 %v4952_v36  ;;  %vm3357_vm15 = vmor %vm3355_vm14, %vm3356_vm12  ;;  %v4954_v38 = vpop.eup %4953  ;;  %v3384_v3 = vadd.f32 %v4948_v17, %v3383_v55 }
 0xc1c   :  { %v3352_v44 = vsub.f32 1.0, %v3351_v19  ;;  %vm3372_vm2 = vmor %vm3370_vm0, %vm3371_vm13 }
 0xc1d   :  { %v3367_v61 = vsub.f32 1.0, %v3366_v40  ;;  %v3388_v25 = vsel %vm3387_vm6, %v4948_v17, %v3384_v3 }
 0xc1e   :  { %v3353_v60 = vmul.f32 %v4950_v7, %v3352_v44  ;;  %v3393_v57 = vsel %vm3390_vm7, %v3392_v34, %v3388_v25 }
 0xc1f   :  { %v3368_v53 = vmul.f32 %v4952_v36, %v3367_v61  ;;  %v4703_v61 = vld [vmem:[#allocation15 + $0x10] sm:$0xff] }
 0xc20   :  { %v3354_v24 = vadd.f32 %v4950_v7, %v3353_v60  ;;  %v6555_v60 = vld [vmem:[#allocation36_spill] sm:$0xff] }
 0xc21   :  { %v3369_v12 = vadd.f32 %v4952_v36, %v3368_v53  ;;  %v2453_v51 = vadd.f32 %v6555_v60, %v6538_v48 }
 0xc22   :  { %v3358_v21 = vsel %vm3357_vm15, %v4950_v7, %v3354_v24 }
 0xc23   :  { %v3363_v62 = vsel %vm3360_vm1, %v3362_v59, %v3358_v21  ;;  %v3373_v56 = vsel %vm3372_vm2, %v4952_v36, %v3369_v12  ;;  %v4702_v59 = vld [vmem:[#allocation15 + $0x8] sm:$0xff] }
 0xc24   :  { %v3397_v16 = vmul.f32 %v4954_v38, %v3363_v62  ;;  %v3378_v8 = vsel %vm3375_vm3, %v3377_v58, %v3373_v56 }
 0xc25   :  { %v3396_v49 = vmul.f32 %v3378_v8, %v6327_v26  ;;  %v6552_v26 = vld [vmem:[#allocation41_spill] sm:$0xff]  ;;  %v4701_v8 = vld [vmem:[#allocation15] sm:$0xff] }
 0xc26   :  { %v2424_v46 = vadd.f32 %v6552_v26, %v6122_v52 }
 0xc27   :  { %v6371_v32 = vadd.f32 %v3397_v16, %v3396_v49 }
 0xc29   :  { %4955 = vtanh.f32 %v6371_v32 }
 0xc2f   :  { %v4956_v42 = vpop.eup %4955 }
 0xc30   :  { %v3400_v10 = vmul.f32 %v4956_v42, %v3393_v57 }
 0xc32   :  { %v3401_v15 = vpack.c.bf16 %v3400_v10, %v3400_v10 }
 0xc34   :  { %3403 = vst [vmem:[#allocation4 + $0x14] sm:$0xf] %v3401_v15  ;;  %3416 = vmatmul.bf16.vlgmr.msra.gmra.mxu2 %v3401_v15  ;;  %3429 = vmatmul.bf16.vlgmr.msrb.gmra.mxu3 %v3401_v15 }
 0xc35   :  { %3442 = vmatmul.bf16.vlgmr.msrb.gmra.mxu0 %v3401_v15  ;;  %3455 = vmatmul.bf16.vlgmr.msra.gmra.mxu1 %v3401_v15 }
 0xc36   :  { %3756 = vmatpush.bf16.msra.mxu2 %v4708_v35 }
 0xc3a   :  { %3757 = vmatpush.bf16.msra.mxu2 %v4707_v47 }
 0xc3e   :  { %3758 = vmatpush.bf16.msra.mxu2 %v4706_v50 }
 0xc42   :  { %3759 = vmatpush.bf16.msra.mxu2 %v4705_v20 }
 0xc46   :  { %3760 = vmatpush.bf16.msra.mxu2 %v4704_v18 }
 0xc4a   :  { %3761 = vmatpush.bf16.msra.mxu2 %v4703_v61 }
 0xc4e   :  { %3762 = vmatpush.bf16.msra.mxu2 %v4702_v59 }
 0xc52   :  { %3763 = vmatpush.bf16.msra.mxu2 %v4701_v8 }
 0xcb2   :  { %v3443_v23 = vpop.f32.mrf.mxu0  ;;  %v3456_v33 = vpop.f32.mrf.mxu1 }
 0xcb3   :  { %v3462_v63 = vadd.f32 %v3443_v23, %v2424_v46  ;;  %v3463_v31 = vadd.f32 %v3456_v33, %v2453_v51 }
 0xcb5   :  { %v4485_v6 = vmul.f32 -1.442695, %v3462_v63 }
 0xcb7   :  { %4957 = vpow2.f32 %v4485_v6  ;;  %v3417_v13 = vpop.f32.mrf.mxu2  ;;  %v3430_v43 = vpop.f32.mrf.mxu3 }
 0xcb8   :  { %v3460_v0 = vadd.f32 %v3417_v13, %v2366_v2  ;;  %v3461_v28 = vadd.f32 %v3430_v43, %v2395_v45 }
 0xcba   :  { %v4483_v27 = vmul.f32 -1.442695, %v3460_v0  ;;  %v4484_v54 = vmul.f32 -1.442695, %v3461_v28  ;;  %v3445_v37 = vpop.f32.mrf.mxu0  ;;  %v3458_v9 = vpop.f32.mrf.mxu1  ;;  %v4697_v0 = vld [vmem:[#allocation4] sm:$0xff]  ;;  %v4698_v28 = vld [vmem:[#allocation4 + $0x8] sm:$0xff] }
 0xcbc   :  { %4959 = vpow2.f32 %v4483_v27  ;;  %v4699_v27 = vld [vmem:[#allocation4 + $0x10] sm:$0xff] }
 0xcbd   :  { %v4958_v4 = vpop.eup %4957  ;;  %4961 = vpow2.f32 %v4484_v54  ;;  %v6556_v54 = vld [vmem:[#allocation37_spill] sm:$0xff] }
 0xcbe   :  { %v6380_v36 = vadd.f32 1.0, %v4958_v4  ;;  %v2426_v37 = vadd.f32 %v6556_v54, %v6122_v52 }
 0xcbf   :  { %v3419_v17 = vpop.f32.mrf.mxu2  ;;  %v3432_v7 = vpop.f32.mrf.mxu3 }
 0xcc0   :  { %4963 = vrcp.f32 %v6380_v36  ;;  %v3517_v29 = vand.u32 2147483648, %v6380_v36  ;;  %vm3511_vm1 = vweird.f32 %v6380_v36  ;;  %v3515_v2 = vand.u32 2147483647, %v6380_v36  ;;  %v6557_v7 = vld [vmem:[#allocation29_spill] sm:$0xff] }
 0xcc1   :  { %v2368_v20 = vadd.f32 %v6557_v7, %v6116_v11 }
 0xcc2   :  { %v4960_v19 = vpop.eup %4959  ;;  %v3518_v45 = vor.u32 1.1754944e-38, %v3517_v29  ;;  %vm3516_vm3 = vcmp.eq.f32.partialorder %v3515_v2, 8.507059e+37 }
 0xcc3   :  { %v4962_v40 = vpop.eup %4961  ;;  %v3473_v30 = vadd.f32 1.0, %v4960_v19 }
 0xcc4   :  { %v3474_v44 = vadd.f32 1.0, %v4962_v40 }
 0xcc5   :  { %4965 = vrcp.f32 %v3473_v30  ;;  %v3487_v38 = vand.u32 2147483648, %v3473_v30  ;;  %v3485_v55 = vand.u32 2147483647, %v3473_v30  ;;  %vm3481_vm10 = vweird.f32 %v3473_v30 }
 0xcc6   :  { %4967 = vrcp.f32 %v3474_v44  ;;  %v4964_v22 = vpop.eup %4963  ;;  %v3502_v16 = vand.u32 2147483648, %v3474_v44  ;;  %v3500_v3 = vand.u32 2147483647, %v3474_v44  ;;  %vm3496_vm12 = vweird.f32 %v3474_v44 }
 0xcc7   :  { %v3507_v21 = vmul.f32 %v4964_v22, %v6380_v36  ;;  %4969 = vtanh.f32 %v3463_v31  ;;  %v3488_v25 = vor.u32 1.1754944e-38, %v3487_v38  ;;  %vm3486_vm13 = vcmp.eq.f32.partialorder %v3485_v55, 8.507059e+37  ;;  %v6558_v36 = vld [vmem:[#allocation28_spill] sm:$0xff]  ;;  %v6559_v38 = vld [vmem:[#allocation42_spill] sm:$0xff] }
 0xcc8   :  { %v3503_v57 = vor.u32 1.1754944e-38, %v3502_v16  ;;  %vm3501_vm15 = vcmp.eq.f32.partialorder %v3500_v3, 8.507059e+37  ;;  %vm3512_vm0 = vweird.f32 %v4964_v22  ;;  %v2397_v19 = vadd.f32 %v6558_v36, %v6118_v14 }
 0xcc9   :  { %v3508_v1 = vsub.f32 1.0, %v3507_v21  ;;  %vm3513_vm2 = vmor %vm3511_vm1, %vm3512_vm0 }
 0xccb   :  { %v4966_v53 = vpop.eup %4965  ;;  %v3509_v46 = vmul.f32 %v4964_v22, %v3508_v1 }
 0xccc   :  { %v4968_v39 = vpop.eup %4967  ;;  %v3477_v24 = vmul.f32 %v4966_v53, %v3473_v30  ;;  %vm3482_vm8 = vweird.f32 %v4966_v53 }
 0xccd   :  { %v3492_v12 = vmul.f32 %v4968_v39, %v3474_v44  ;;  %vm3497_vm9 = vweird.f32 %v4968_v39  ;;  %vm3483_vm11 = vmor %vm3481_vm10, %vm3482_vm8  ;;  %v4970_v10 = vpop.eup %4969  ;;  %v3510_v35 = vadd.f32 %v4964_v22, %v3509_v46 }
 0xcce   :  { %v3478_v58 = vsub.f32 1.0, %v3477_v24  ;;  %vm3498_vm14 = vmor %vm3496_vm12, %vm3497_vm9 }
 0xccf   :  { %v3493_v62 = vsub.f32 1.0, %v3492_v12  ;;  %v3514_v41 = vsel %vm3513_vm2, %v4964_v22, %v3510_v35  ;;  %v6405_v12 = vld [vmem:[%s6460_s14] ss:$0 sm:$0xff] }
 0xcd0   :  { %v3479_v56 = vmul.f32 %v4966_v53, %v3478_v58  ;;  %v3519_v43 = vsel %vm3516_vm3, %v3518_v45, %v3514_v41 }
 0xcd1   :  { %v3494_v49 = vmul.f32 %v4968_v39, %v3493_v62  ;;  %v2455_v62 = vadd.f32 %v6559_v38, %v6538_v48 }
 0xcd2   :  { %v3480_v5 = vadd.f32 %v4966_v53, %v3479_v56 }
 0xcd3   :  { %v3495_v34 = vadd.f32 %v4968_v39, %v3494_v49 }
 0xcd4   :  { %v3484_v42 = vsel %vm3483_vm11, %v4966_v53, %v3480_v5 }
 0xcd5   :  { %v3489_v15 = vsel %vm3486_vm13, %v3488_v25, %v3484_v42  ;;  %v3499_v26 = vsel %vm3498_vm14, %v4968_v39, %v3495_v34 }
 0xcd6   :  { %v3523_v23 = vmul.f32 %v4970_v10, %v3489_v15  ;;  %v3504_v33 = vsel %vm3501_vm15, %v3503_v57, %v3499_v26 }
 0xcd7   :  { %v3522_v63 = vmul.f32 %v3504_v33, %v6371_v32 }
 0xcd9   :  { %v6387_v6 = vadd.f32 %v3523_v23, %v3522_v63 }
 0xcdb   :  { %4971 = vtanh.f32 %v6387_v6 }
 0xce1   :  { %v4972_v13 = vpop.eup %4971 }
 0xce2   :  { %v3526_v47 = vmul.f32 %v4972_v13, %v3519_v43 }
 0xce4   :  { %v3527_v32 = vpack.c.bf16 %v3526_v47, %v3526_v47 }
 0xce6   :  { %3529 = vst [vmem:[#allocation4 + $0x18] sm:$0xf] %v3527_v32  ;;  %3542 = vmatmul.bf16.vlgmr.msrb.gmra.mxu2 %v3527_v32  ;;  %3555 = vmatmul.bf16.vlgmr.msra.gmra.mxu3 %v3527_v32 }
 0xce7   :  { %3568 = vmatmul.bf16.vlgmr.msra.gmra.mxu0 %v3527_v32  ;;  %3581 = vmatmul.bf16.vlgmr.msrb.gmra.mxu1 %v3527_v32 }
 0xcf6   :  { %3764 = vmatmul.bf16.vlgmr.msra.gmra.mxu2 %v4697_v0 }
 0xd06   :  { %3769 = vmatmul.bf16.gmra.mxu2 %v4698_v28 }
 0xd16   :  { %3774 = vmatmul.bf16.gmra.mxu2 %v4699_v27 }
 0xd64   :  { %v3569_v9 = vpop.f32.mrf.mxu0  ;;  %v3582_v50 = vpop.f32.mrf.mxu1 }
 0xd65   :  { %v3588_v4 = vadd.f32 %v3569_v9, %v2426_v37  ;;  %v3589_v16 = vadd.f32 %v3582_v50, %v2455_v62 }
 0xd67   :  { %v4488_v17 = vmul.f32 -1.442695, %v3588_v4 }
 0xd69   :  { %4973 = vpow2.f32 %v4488_v17  ;;  %v3543_v40 = vpop.f32.mrf.mxu2  ;;  %v3556_v30 = vpop.f32.mrf.mxu3 }
 0xd6a   :  { %v3586_v44 = vadd.f32 %v3543_v40, %v2368_v20  ;;  %v3587_v18 = vadd.f32 %v3556_v30, %v2397_v19 }
 0xd6c   :  { %v4486_v61 = vmul.f32 -1.442695, %v3586_v44  ;;  %v4487_v60 = vmul.f32 -1.442695, %v3587_v18  ;;  %v3571_v51 = vpop.f32.mrf.mxu0  ;;  %v3584_v22 = vpop.f32.mrf.mxu1 }
 0xd6e   :  { %4975 = vpow2.f32 %v4486_v61 }
 0xd6f   :  { %v4974_v52 = vpop.eup %4973  ;;  %4977 = vpow2.f32 %v4487_v60 }
 0xd70   :  { %v6399_v39 = vadd.f32 1.0, %v4974_v52 }
 0xd71   :  { %v3545_v53 = vpop.f32.mrf.mxu2  ;;  %v3558_v31 = vpop.f32.mrf.mxu3 }
 0xd72   :  { %4979 = vrcp.f32 %v6399_v39  ;;  %v3643_v9 = vand.u32 2147483648, %v6399_v39  ;;  %vm3637_vm13 = vweird.f32 %v6399_v39  ;;  %v3641_v50 = vand.u32 2147483647, %v6399_v39 }
 0xd74   :  { %v4976_v11 = vpop.eup %4975  ;;  %vm3642_vm15 = vcmp.eq.f32.partialorder %v3641_v50, 8.507059e+37 }
 0xd75   :  { %v4978_v24 = vpop.eup %4977  ;;  %v3599_v59 = vadd.f32 1.0, %v4976_v11 }
 0xd76   :  { %v3600_v14 = vadd.f32 1.0, %v4978_v24 }
 0xd77   :  { %4981 = vrcp.f32 %v3599_v59  ;;  %v3611_v25 = vand.u32 2147483647, %v3599_v59  ;;  %v3613_v34 = vand.u32 2147483648, %v3599_v59  ;;  %vm3607_vm6 = vweird.f32 %v3599_v59 }
 0xd78   :  { %4983 = vrcp.f32 %v3600_v14  ;;  %v4980_v56 = vpop.eup %4979  ;;  %v3628_v48 = vand.u32 2147483648, %v3600_v14  ;;  %v3626_v46 = vand.u32 2147483647, %v3600_v14  ;;  %vm3622_vm8 = vweird.f32 %v3600_v14 }
 0xd79   :  { %v3765_v21 = vpop.f32.mrf.mxu2  ;;  %v3633_v1 = vmul.f32 %v4980_v56, %v6399_v39  ;;  %4985 = vtanh.f32 %v3589_v16  ;;  %v3614_v63 = vor.u32 1.1754944e-38, %v3613_v34  ;;  %vm3612_vm9 = vcmp.eq.f32.partialorder %v3611_v25, 8.507059e+37 }
 0xd7a   :  { %v3766_v58 = vadd.f32 %v6405_v12, %v3765_v21  ;;  %v3629_v2 = vor.u32 1.1754944e-38, %v3628_v48  ;;  %vm3627_vm11 = vcmp.eq.f32.partialorder %v3626_v46, 8.507059e+37  ;;  %vm3638_vm12 = vweird.f32 %v4980_v56 }
 0xd7b   :  { %v3634_v23 = vsub.f32 1.0, %v3633_v1  ;;  %vm3639_vm14 = vmor %vm3637_vm13, %vm3638_vm12 }
 0xd7c   :  { %3785 = vst [vmem:[%s6461_s15] sm:$0xff] %v3766_v58 }
 0xd7d   :  { %v4982_v55 = vpop.eup %4981  ;;  %v3635_v43 = vmul.f32 %v4980_v56, %v3634_v23 }
 0xd7e   :  { %v4984_v8 = vpop.eup %4983  ;;  %v3603_v49 = vmul.f32 %v4982_v55, %v3599_v59  ;;  %vm3608_vm4 = vweird.f32 %v4982_v55 }
 0xd7f   :  { %v3618_v3 = vmul.f32 %v4984_v8, %v3600_v14  ;;  %vm3623_vm5 = vweird.f32 %v4984_v8  ;;  %vm3609_vm7 = vmor %vm3607_vm6, %vm3608_vm4  ;;  %v4986_v41 = vpop.eup %4985  ;;  %v3636_v37 = vadd.f32 %v4980_v56, %v3635_v43 }
 0xd80   :  { %v3604_v5 = vsub.f32 1.0, %v3603_v49  ;;  %vm3624_vm10 = vmor %vm3622_vm8, %vm3623_vm5 }
 0xd81   :  { %v3619_v42 = vsub.f32 1.0, %v3618_v3  ;;  %v3767_v57 = vpop.f32.mrf.mxu2  ;;  %v3640_v4 = vsel %vm3639_vm14, %v4980_v56, %v3636_v37 }
 0xd82   :  { %v3605_v10 = vmul.f32 %v4982_v55, %v3604_v5  ;;  %v3768_v15 = vadd.f32 %v6405_v12, %v3767_v57 }
 0xd83   :  { %v3620_v26 = vmul.f32 %v4984_v8, %v3619_v42 }
 0xd84   :  { %v3606_v33 = vadd.f32 %v4982_v55, %v3605_v10  ;;  %3786 = vst [vmem:[%s6461_s15 + $0x8] sm:$0xff] %v3768_v15 }
 0xd85   :  { %v3621_v35 = vadd.f32 %v4984_v8, %v3620_v26 }
 0xd86   :  { %v3610_v29 = vsel %vm3609_vm7, %v4982_v55, %v3606_v33 }
 0xd87   :  { %v3615_v45 = vsel %vm3612_vm9, %v3614_v63, %v3610_v29  ;;  %v3625_v13 = vsel %vm3624_vm10, %v4984_v8, %v3621_v35 }
 0xd88   :  { %v3649_v47 = vmul.f32 %v4986_v41, %v3615_v45  ;;  %v3630_v32 = vsel %vm3627_vm11, %v3629_v2, %v3625_v13 }
 0xd89   :  { %v3648_v0 = vmul.f32 %v3630_v32, %v6387_v6  ;;  %v3770_v28 = vpop.f32.mrf.mxu2  ;;  %v3644_v6 = vor.u32 1.1754944e-38, %v3643_v9 }
 0xd8a   :  { %v3771_v27 = vadd.f32 %v6405_v12, %v3770_v28 }
 0xd8b   :  { %v3650_v54 = vadd.f32 %v3649_v47, %v3648_v0  ;;  %v3645_v36 = vsel %vm3642_vm15, %v3644_v6, %v3640_v4 }
 0xd8c   :  { %3787 = vst [vmem:[%s6461_s15 + $0x10] sm:$0xff] %v3771_v27 }
 0xd8d   :  { %4987 = vtanh.f32 %v3650_v54 }
 0xd91   :  { %v3772_v17 = vpop.f32.mrf.mxu2 }
 0xd92   :  { %v3773_v7 = vadd.f32 %v6405_v12, %v3772_v17 }
 0xd93   :  { %v4988_v20 = vpop.eup %4987 }
 0xd94   :  { %v3652_v19 = vmul.f32 %v4988_v20, %v3645_v36  ;;  %3788 = vst [vmem:[%s6461_s15 + $0x18] sm:$0xff] %v3773_v7 }
 0xd96   :  { %v3653_v40 = vpack.c.bf16 %v3652_v19, %v3652_v19 }
 0xd98   :  { %3655 = vst [vmem:[#allocation4 + $0x1c] sm:$0xf] %v3653_v40 }
 0xd99   :  { %v3775_v30 = vpop.f32.mrf.mxu2 }
 0xd9a   :  { %v3776_v44 = vadd.f32 %v6405_v12, %v3775_v30 }
 0xd9c   :  { %3789 = vst [vmem:[%s6461_s15 + $0x20] sm:$0xff] %v3776_v44 }
 0xd9f   :  { %v4700_v18 = vld [vmem:[#allocation4 + $0x18] sm:$0xff] }
 0xda0   :  { %3779 = vmatmul.bf16.gmra.mxu2 %v4700_v18 }
 0xda1   :  { %v3777_v61 = vpop.f32.mrf.mxu2 }
 0xda2   :  { %v3778_v60 = vadd.f32 %v6405_v12, %v3777_v61 }
 0xda4   :  { %3790 = vst [vmem:[%s6461_s15 + $0x28] sm:$0xff] %v3778_v60 }
 0xe23   :  { %v3780_v51 = vpop.f32.mrf.mxu2 }
 0xe24   :  { %v3781_v22 = vadd.f32 %v6405_v12, %v3780_v51 }
 0xe26   :  { %3791 = vst [vmem:[%s6461_s15 + $0x30] sm:$0xff] %v3781_v22 }
 0xe2b   :  { %v3782_v52 = vpop.f32.mrf.mxu2 }
 0xe2c   :  { %v3783_v53 = vadd.f32 %v6405_v12, %v3782_v52 }
 0xe2e   :  { %3792 = vst [vmem:[%s6461_s15 + $0x38] sm:$0xff] %v3783_v53 }
 0xe2f   :  { %3797 = vsyncpa [#allocation6], 1 }
 0xe30   :  { %3798 = vsyncpa [#allocation8], 1 }
 0xe31   :  { %3799 = vsyncpa [#allocation11], 1 }
 0xe32   :  { %3800 = vsyncpa [#allocation14], 1 }

</bundles_post_ra>
